<compile_context>
chip_gen: v5e
topology: v5e:2x2
jax: 0.10.0
libtpu: 0.0.40
codegen_flags: <defaults>
</compile_context>

<pallas_src>
import functools

import jax
import jax.numpy as jnp
from jax import lax
from jax.experimental import pallas as pl
from jax.experimental.pallas import tpu as pltpu

_BN_EPS = 1e-5


# ----------------------------------------------------------------------------- Pallas kernel
def _mobileone_fused_kernel(x_ref, wdw_ref, bdw_ref, wpw_ref, bpw_ref, o_ref, *, wp, lo):
    """One image per grid step.

    x_ref:   (1, L, C_in)    zero-padded NHWC plane flattened to ((H+2)*(W+2)+tail, C_in)
    wdw_ref: (9, C_in)       fused depthwise 3x3 taps (row = dy*3+dx)
    bdw_ref: (1, C_in)       fused depthwise bias
    wpw_ref: (C_in, C_out)   fused pointwise weight
    bpw_ref: (1, C_out)      fused pointwise bias
    o_ref:   (1, Lo, C_out)  flattened output rows (Lo = H*(W+2); junk cols dropped by wrapper)
    """
    xf = x_ref[0]                      # (L, C_in) -- channels on the lane axis
    taps = wdw_ref[...]                # (9, C_in)
    c_in = xf.shape[-1]

    # Depthwise 3x3: nine sublane-offset shifted MACs (VPU, exact f32).
    acc = None
    for dy in range(3):
        for dx in range(3):
            off = dy * wp + dx
            win = lax.slice(xf, (off, 0), (off + lo, c_in))              # (Lo, C_in)
            tap = lax.slice(taps, (3 * dy + dx, 0), (3 * dy + dx + 1, c_in))  # (1, C_in)
            term = win * tap
            acc = term if acc is None else acc + term

    y = jnp.maximum(acc + bdw_ref[...], 0.0)                             # bias + ReLU

    # Pointwise 1x1 conv == lane-dense matmul over channels (MXU), bias + ReLU.
    z = jnp.dot(y, wpw_ref[...], preferred_element_type=jnp.float32)
    z = jnp.maximum(z + bpw_ref[...], 0.0)
    o_ref[0] = z.astype(o_ref.dtype)


# --------------------------------------------------------------------- branch reparameterization
def _fuse_branches(params, c_in, c_out, k, stride):
    """Fold eval-mode BN into the convs and sum all parallel branches (MobileOne reparam)."""

    def scale(bn, idx=None):
        g = bn["gamma"] if idx is None else bn["gamma"][idx]
        v = bn["var"] if idx is None else bn["var"][idx]
        return g / jnp.sqrt(v + _BN_EPS)

    def shift(bn, s, idx=None):
        b = bn["beta"] if idx is None else bn["beta"][idx]
        m = bn["mean"] if idx is None else bn["mean"][idx]
        return b - m * s

    has_identity = (c_in == c_out) and (stride == 1)

    # depthwise stage: k x (3x3 dw + BN)  +  (1x1 dw + BN)  +  identity BN
    kdw = jnp.zeros((3, 3, c_in), jnp.float32)
    bdw = jnp.zeros((c_in,), jnp.float32)
    for i in range(k):
        s = scale(params["dw3_bn"], i)                               # (c_in,)
        w = params["dw3_w"][i][:, 0]                                 # (c_in, 3, 3)
        kdw = kdw + jnp.transpose(w, (1, 2, 0)) * s[None, None, :]
        bdw = bdw + shift(params["dw3_bn"], s, i)
    s = scale(params["dw1_bn"])
    kdw = kdw.at[1, 1].add(params["dw1_w"][:, 0, 0, 0] * s)          # 1x1 tap -> center
    bdw = bdw + shift(params["dw1_bn"], s)
    if has_identity:
        s = scale(params["dw_id_bn"])
        kdw = kdw.at[1, 1].add(s)
        bdw = bdw + shift(params["dw_id_bn"], s)

    # pointwise stage: k x (1x1 conv + BN)  +  identity BN
    wpw = jnp.zeros((c_in, c_out), jnp.float32)
    bpw = jnp.zeros((c_out,), jnp.float32)
    for i in range(k):
        s = scale(params["pw_bn"], i)                                # (c_out,)
        w = params["pw_w"][i][:, :, 0, 0]                            # (c_out, c_in)
        wpw = wpw + (w * s[:, None]).T
        bpw = bpw + shift(params["pw_bn"], s, i)
    if has_identity:
        s = scale(params["pw_id_bn"])
        wpw = wpw + jnp.diag(s)
        bpw = bpw + shift(params["pw_id_bn"], s)

    return kdw.reshape(9, c_in), bdw.reshape(1, c_in), wpw, bpw.reshape(1, c_out)


# ----------------------------------------------------------------------------------- wrapper
@functools.partial(jax.jit, static_argnames=("k", "stride"))
def mobileone_block_forward(x, params, *, k, stride=1):
    """MobileOneBlock.forward (non-deploy arch, eval-mode BN) on NCHW input."""
    if stride != 1:
        # TODO(synk): strided path (the flat-slab addressing assumes stride 1; module default is 1).
        raise NotImplementedError("stride != 1 not supported by this Pallas kernel")

    n, c_in, h, w = x.shape
    c_out = params["pw_w"].shape[1]
    hp, wp = h + 2, w + 2                       # zero-padded extent for the 3x3 / pad=1 conv
    ho, wo = h, w                               # stride-1 output extent
    lo = ho * wp                                # flattened output rows (incl. 2 junk cols/row)
    l_in = max(hp * wp, lo + 2 * wp + 2)
    l_in = ((l_in + 7) // 8) * 8                # round the sublane dim up to a full vreg row

    wdw, bdw, wpw, bpw = _fuse_branches(params, c_in, c_out, k, stride)

    # NCHW -> NHWC relayout with the conv zero-padding folded in (single fused XLA copy),
    # flattened to (N, L, C_in) so the kernel sees 2-D lane-dense slabs.
    xt = jnp.transpose(x, (0, 2, 3, 1)).astype(jnp.float32)
    xp = jnp.pad(xt, ((0, 0), (1, 1), (1, 1), (0, 0)))
    xf = jnp.pad(xp.reshape(n, hp * wp, c_in), ((0, 0), (0, l_in - hp * wp), (0, 0)))

    kernel = functools.partial(_mobileone_fused_kernel, wp=wp, lo=lo)
    out_flat = pl.pallas_call(
        kernel,
        out_shape=jax.ShapeDtypeStruct((n, lo, c_out), jnp.float32),
        grid_spec=pltpu.PrefetchScalarGridSpec(
            num_scalar_prefetch=0,
            grid=(n,),                                              # one whole image per step
            in_specs=[
                pl.BlockSpec((1, l_in, c_in), lambda i: (i, 0, 0)),
                pl.BlockSpec((9, c_in), lambda i: (0, 0)),
                pl.BlockSpec((1, c_in), lambda i: (0, 0)),
                pl.BlockSpec((c_in, c_out), lambda i: (0, 0)),
                pl.BlockSpec((1, c_out), lambda i: (0, 0)),
            ],
            out_specs=pl.BlockSpec((1, lo, c_out), lambda i: (i, 0, 0)),
        ),
        compiler_params=pltpu.CompilerParams(
            dimension_semantics=("parallel",),                      # batch splits across TCs
        ),
    )(xf, wdw, bdw, wpw, bpw)

    # Drop the 2 junk columns per row and go back to NCHW (fused XLA copy).
    out = out_flat.reshape(n, ho, wp, c_out)[:, :, :wo, :]
    return jnp.transpose(out, (0, 3, 1, 2))


# -------------------------------------------------------------------- params + plain-JAX reference
def _init_bn(key, shape):
    k1, k2, k3, k4 = jax.random.split(key, 4)
    return {
        "gamma": 1.0 + 0.1 * jax.random.normal(k1, shape, jnp.float32),
        "beta": 0.1 * jax.random.normal(k2, shape, jnp.float32),
        "mean": 0.1 * jax.random.normal(k3, shape, jnp.float32),
        "var": jax.random.uniform(k4, shape, jnp.float32, minval=0.5, maxval=1.5),
    }


def init_mobileone_params(key, c_in, c_out, k, stride=1):
    keys = jax.random.split(key, 8)
    params = {
        "dw3_w": 0.2 * jax.random.normal(keys[0], (k, c_in, 1, 3, 3), jnp.float32),
        "dw3_bn": _init_bn(keys[1], (k, c_in)),
        "dw1_w": 0.2 * jax.random.normal(keys[2], (c_in, 1, 1, 1), jnp.float32),
        "dw1_bn": _init_bn(keys[3], (c_in,)),
        "pw_w": 0.2 * jax.random.normal(keys[4], (k, c_out, c_in, 1, 1), jnp.float32),
        "pw_bn": _init_bn(keys[5], (k, c_out)),
    }
    if c_in == c_out and stride == 1:
        params["dw_id_bn"] = _init_bn(keys[6], (c_in,))
        params["pw_id_bn"] = _init_bn(keys[7], (c_in,))
    return params


def reference_forward(x, params, *, k, stride=1):
    """Branch-by-branch plain-JAX forward mirroring MobileOneBlock.forward (eval-mode BN)."""
    c_in = x.shape[1]
    c_out = params["pw_w"].shape[1]
    prec = jax.lax.Precision.HIGHEST

    def bn(t, bnp, idx=None):
        g, b, m, v = (bnp[name] if idx is None else bnp[name][idx]
                      for name in ("gamma", "beta", "mean", "var"))
        inv = g / jnp.sqrt(v + _BN_EPS)
        return t * inv[None, :, None, None] + (b - m * inv)[None, :, None, None]

    def dwconv(t, w, pad):
        return lax.conv_general_dilated(
            t, w, (stride, stride), ((pad, pad), (pad, pad)),
            dimension_numbers=("NCHW", "OIHW", "NCHW"),
            feature_group_count=c_in, precision=prec)

    def pwconv(t, w):
        return lax.conv_general_dilated(
            t, w, (1, 1), ((0, 0), (0, 0)),
            dimension_numbers=("NCHW", "OIHW", "NCHW"), precision=prec)

    has_identity = (c_in == c_out) and (stride == 1)

    id_out = bn(x, params["dw_id_bn"]) if has_identity else 0.0
    x3 = [bn(dwconv(x, params["dw3_w"][i], 1), params["dw3_bn"], i) for i in range(k)]
    x1 = bn(dwconv(x, params["dw1_w"], 0), params["dw1_bn"])
    t = jax.nn.relu(id_out + x1 + sum(x3))

    id_out2 = bn(t, params["pw_id_bn"]) if has_identity else 0.0
    p1 = [bn(pwconv(t, params["pw_w"][i]), params["pw_bn"], i) for i in range(k)]
    return jax.nn.relu(id_out2 + sum(p1))


# --------------------------------------------------------------------------------------- main
if __name__ == "__main__":
    key = jax.random.PRNGKey(0)
    kx, kp = jax.random.split(key)

    N, C_IN, H, W = 2, 32, 16, 16          # small, but lane-meaningful channel count
    C_OUT, K_BRANCHES, STRIDE = 32, 4, 1   # in==out & stride==1 -> identity-BN branches exist

    x = jax.random.normal(kx, (N, C_IN, H, W), dtype=jnp.float32)
    params = init_mobileone_params(kp, C_IN, C_OUT, K_BRANCHES, STRIDE)

    out = mobileone_block_forward(x, params, k=K_BRANCHES, stride=STRIDE)
    out = jax.block_until_ready(out)

    ref = reference_forward(x, params, k=K_BRANCHES, stride=STRIDE)
    assert out.shape == ref.shape == (N, C_OUT, H, W), (out.shape, ref.shape)
    # Tolerance leaves headroom for the MXU's default (bf16-pass) f32 matmul precision inside
    # the kernel vs. the HIGHEST-precision reference convs; real bugs produce O(1) errors.
    max_err = float(jnp.max(jnp.abs(out - ref)))
    assert jnp.allclose(out, ref, rtol=2e-2, atol=5e-2), f"max abs err {max_err}"
    print("KERNEL_OK")
</pallas_src>

<mosaic_0001>
module attributes {stable_mosaic.version = 11 : i64} {
  func.func @_mobileone_fused_kernel(%arg0: i32, %arg1: memref<1x328x32xf32, #tpu.memory_space<vmem>>, %arg2: memref<9x32xf32, #tpu.memory_space<vmem>>, %arg3: memref<1x32xf32, #tpu.memory_space<vmem>>, %arg4: memref<32x32xf32, #tpu.memory_space<vmem>>, %arg5: memref<1x32xf32, #tpu.memory_space<vmem>>, %arg6: memref<1x288x32xf32, #tpu.memory_space<vmem>>) attributes {dimension_semantics = [#tpu.dimension_semantics<parallel>], iteration_bounds = array<i64: 2>, scalar_prefetch = 0 : i64, scratch_operands = 0 : i64, tpu.core_type = #tpu.core_type<tc>, window_params = [{transform_indices = @transform_0, window_bounds = array<i64: 1, 328, 32>}, {pipeline_mode = #tpu.pipeline_mode<synchronous>, transform_indices = @transform_1, window_bounds = array<i64: 9, 32>}, {pipeline_mode = #tpu.pipeline_mode<synchronous>, transform_indices = @transform_2, window_bounds = array<i64: 1, 32>}, {pipeline_mode = #tpu.pipeline_mode<synchronous>, transform_indices = @transform_3, window_bounds = array<i64: 32, 32>}, {pipeline_mode = #tpu.pipeline_mode<synchronous>, transform_indices = @transform_4, window_bounds = array<i64: 1, 32>}, {transform_indices = @transform_5, window_bounds = array<i64: 1, 288, 32>}]} {
    %c0 = arith.constant 0 : index
    %c0_0 = arith.constant 0 : index
    %c0_1 = arith.constant 0 : index
    %0 = vector.load %arg1[%c0, %c0_0, %c0_1] : memref<1x328x32xf32, #tpu.memory_space<vmem>>, vector<1x328x32xf32>
    %1 = vector.shape_cast %0 : vector<1x328x32xf32> to vector<328x32xf32>
    %c0_2 = arith.constant 0 : index
    %c0_3 = arith.constant 0 : index
    %2 = vector.load %arg2[%c0_2, %c0_3] : memref<9x32xf32, #tpu.memory_space<vmem>>, vector<9x32xf32>
    %3 = vector.extract_strided_slice %1 {offsets = [0, 0], sizes = [288, 32], strides = [1, 1]} : vector<328x32xf32> to vector<288x32xf32>
    %4 = vector.extract_strided_slice %2 {offsets = [0, 0], sizes = [1, 32], strides = [1, 1]} : vector<9x32xf32> to vector<1x32xf32>
    %5 = vector.broadcast %4 : vector<1x32xf32> to vector<288x32xf32>
    %6 = arith.mulf %3, %5 : vector<288x32xf32>
    %7 = vector.extract_strided_slice %1 {offsets = [1, 0], sizes = [288, 32], strides = [1, 1]} : vector<328x32xf32> to vector<288x32xf32>
    %8 = vector.extract_strided_slice %2 {offsets = [1, 0], sizes = [1, 32], strides = [1, 1]} : vector<9x32xf32> to vector<1x32xf32>
    %9 = vector.broadcast %8 : vector<1x32xf32> to vector<288x32xf32>
    %10 = arith.mulf %7, %9 : vector<288x32xf32>
    %11 = arith.addf %6, %10 : vector<288x32xf32>
    %12 = vector.extract_strided_slice %1 {offsets = [2, 0], sizes = [288, 32], strides = [1, 1]} : vector<328x32xf32> to vector<288x32xf32>
    %13 = vector.extract_strided_slice %2 {offsets = [2, 0], sizes = [1, 32], strides = [1, 1]} : vector<9x32xf32> to vector<1x32xf32>
    %14 = vector.broadcast %13 : vector<1x32xf32> to vector<288x32xf32>
    %15 = arith.mulf %12, %14 : vector<288x32xf32>
    %16 = arith.addf %11, %15 : vector<288x32xf32>
    %17 = vector.extract_strided_slice %1 {offsets = [18, 0], sizes = [288, 32], strides = [1, 1]} : vector<328x32xf32> to vector<288x32xf32>
    %18 = vector.extract_strided_slice %2 {offsets = [3, 0], sizes = [1, 32], strides = [1, 1]} : vector<9x32xf32> to vector<1x32xf32>
    %19 = vector.broadcast %18 : vector<1x32xf32> to vector<288x32xf32>
    %20 = arith.mulf %17, %19 : vector<288x32xf32>
    %21 = arith.addf %16, %20 : vector<288x32xf32>
    %22 = vector.extract_strided_slice %1 {offsets = [19, 0], sizes = [288, 32], strides = [1, 1]} : vector<328x32xf32> to vector<288x32xf32>
    %23 = vector.extract_strided_slice %2 {offsets = [4, 0], sizes = [1, 32], strides = [1, 1]} : vector<9x32xf32> to vector<1x32xf32>
    %24 = vector.broadcast %23 : vector<1x32xf32> to vector<288x32xf32>
    %25 = arith.mulf %22, %24 : vector<288x32xf32>
    %26 = arith.addf %21, %25 : vector<288x32xf32>
    %27 = vector.extract_strided_slice %1 {offsets = [20, 0], sizes = [288, 32], strides = [1, 1]} : vector<328x32xf32> to vector<288x32xf32>
    %28 = vector.extract_strided_slice %2 {offsets = [5, 0], sizes = [1, 32], strides = [1, 1]} : vector<9x32xf32> to vector<1x32xf32>
    %29 = vector.broadcast %28 : vector<1x32xf32> to vector<288x32xf32>
    %30 = arith.mulf %27, %29 : vector<288x32xf32>
    %31 = arith.addf %26, %30 : vector<288x32xf32>
    %32 = vector.extract_strided_slice %1 {offsets = [36, 0], sizes = [288, 32], strides = [1, 1]} : vector<328x32xf32> to vector<288x32xf32>
    %33 = vector.extract_strided_slice %2 {offsets = [6, 0], sizes = [1, 32], strides = [1, 1]} : vector<9x32xf32> to vector<1x32xf32>
    %34 = vector.broadcast %33 : vector<1x32xf32> to vector<288x32xf32>
    %35 = arith.mulf %32, %34 : vector<288x32xf32>
    %36 = arith.addf %31, %35 : vector<288x32xf32>
    %37 = vector.extract_strided_slice %1 {offsets = [37, 0], sizes = [288, 32], strides = [1, 1]} : vector<328x32xf32> to vector<288x32xf32>
    %38 = vector.extract_strided_slice %2 {offsets = [7, 0], sizes = [1, 32], strides = [1, 1]} : vector<9x32xf32> to vector<1x32xf32>
    %39 = vector.broadcast %38 : vector<1x32xf32> to vector<288x32xf32>
    %40 = arith.mulf %37, %39 : vector<288x32xf32>
    %41 = arith.addf %36, %40 : vector<288x32xf32>
    %42 = vector.extract_strided_slice %1 {offsets = [38, 0], sizes = [288, 32], strides = [1, 1]} : vector<328x32xf32> to vector<288x32xf32>
    %43 = vector.extract_strided_slice %2 {offsets = [8, 0], sizes = [1, 32], strides = [1, 1]} : vector<9x32xf32> to vector<1x32xf32>
    %44 = vector.broadcast %43 : vector<1x32xf32> to vector<288x32xf32>
    %45 = arith.mulf %42, %44 : vector<288x32xf32>
    %46 = arith.addf %41, %45 : vector<288x32xf32>
    %c0_4 = arith.constant 0 : index
    %c0_5 = arith.constant 0 : index
    %47 = vector.load %arg3[%c0_4, %c0_5] : memref<1x32xf32, #tpu.memory_space<vmem>>, vector<1x32xf32>
    %48 = vector.broadcast %47 : vector<1x32xf32> to vector<288x32xf32>
    %49 = arith.addf %46, %48 : vector<288x32xf32>
    %cst = arith.constant 0.000000e+00 : f32
    %50 = vector.broadcast %cst : f32 to vector<288x32xf32>
    %51 = arith.maximumf %49, %50 : vector<288x32xf32>
    %c0_6 = arith.constant 0 : index
    %c0_7 = arith.constant 0 : index
    %52 = vector.load %arg4[%c0_6, %c0_7] : memref<32x32xf32, #tpu.memory_space<vmem>>, vector<32x32xf32>
    %cst_8 = arith.constant dense<0.000000e+00> : vector<288x32xf32>
    %53 = tpu.matmul %51, %52, %cst_8 {dimension_numbers = #tpu.dot_dimension_numbers<[1], [0], [0], [1], [0, 0, 1, 1], [], []>} : vector<288x32xf32>, vector<32x32xf32>, vector<288x32xf32> -> vector<288x32xf32>
    %c0_9 = arith.constant 0 : index
    %c0_10 = arith.constant 0 : index
    %54 = vector.load %arg5[%c0_9, %c0_10] : memref<1x32xf32, #tpu.memory_space<vmem>>, vector<1x32xf32>
    %55 = vector.broadcast %54 : vector<1x32xf32> to vector<288x32xf32>
    %56 = arith.addf %53, %55 : vector<288x32xf32>
    %cst_11 = arith.constant 0.000000e+00 : f32
    %57 = vector.broadcast %cst_11 : f32 to vector<288x32xf32>
    %58 = arith.maximumf %56, %57 : vector<288x32xf32>
    %c0_12 = arith.constant 0 : index
    %c0_13 = arith.constant 0 : index
    %c0_14 = arith.constant 0 : index
    %59 = vector.load %arg6[%c0_12, %c0_13, %c0_14] : memref<1x288x32xf32, #tpu.memory_space<vmem>>, vector<1x288x32xf32>
    %60 = vector.shape_cast %59 : vector<1x288x32xf32> to vector<288x32xf32>
    %61 = vector.shape_cast %58 : vector<288x32xf32> to vector<1x288x32xf32>
    tpu.vector_store %arg6[%c0_12, %c0_13, %c0_14], %61 {strides = array<i32>} : memref<1x288x32xf32, #tpu.memory_space<vmem>>, vector<1x288x32xf32>,
    return
  }
  func.func @transform_0(%arg0: i32) -> (i32, i32, i32) {
    %c0_i32 = arith.constant 0 : i32
    %c0_i32_0 = arith.constant 0 : i32
    %c0_i32_1 = arith.constant 0 : i32
    return %arg0, %c0_i32, %c0_i32_0 : i32, i32, i32
  }
  func.func @transform_1(%arg0: i32) -> (i32, i32) {
    %c0_i32 = arith.constant 0 : i32
    %c0_i32_0 = arith.constant 0 : i32
    %c0_i32_1 = arith.constant 0 : i32
    return %c0_i32, %c0_i32_0 : i32, i32
  }
  func.func @transform_2(%arg0: i32) -> (i32, i32) {
    %c0_i32 = arith.constant 0 : i32
    %c0_i32_0 = arith.constant 0 : i32
    %c0_i32_1 = arith.constant 0 : i32
    return %c0_i32, %c0_i32_0 : i32, i32
  }
  func.func @transform_3(%arg0: i32) -> (i32, i32) {
    %c0_i32 = arith.constant 0 : i32
    %c0_i32_0 = arith.constant 0 : i32
    %c0_i32_1 = arith.constant 0 : i32
    return %c0_i32, %c0_i32_0 : i32, i32
  }
  func.func @transform_4(%arg0: i32) -> (i32, i32) {
    %c0_i32 = arith.constant 0 : i32
    %c0_i32_0 = arith.constant 0 : i32
    %c0_i32_1 = arith.constant 0 : i32
    return %c0_i32, %c0_i32_0 : i32, i32
  }
  func.func @transform_5(%arg0: i32) -> (i32, i32, i32) {
    %c0_i32 = arith.constant 0 : i32
    %c0_i32_0 = arith.constant 0 : i32
    %c0_i32_1 = arith.constant 0 : i32
    return %arg0, %c0_i32, %c0_i32_0 : i32, i32, i32
  }
}

</mosaic_0001>

<bundles_post_ra>
// kernel: mobileone_block_forward.1
= control target key start
LH: loop header
LB: loop body
LE: loop exit
PB: predicated region body
PF: predicated region fallthrough
CT: control target
= control target key end

     0   :  { %s2662_s18 = smov 0   ;;  %s6003_s0 = inlined_call_operand.vmem [shape: f32[2,328,32], index: 0, kind: input, shape index: {}]   ;;  %s6004_s1 = inlined_call_operand.vmem [shape: f32[9,32], index: 1, kind: input, shape index: {}]   ;;  %s6005_s2 = inlined_call_operand.vmem [shape: f32[1,32], index: 2, kind: input, shape index: {}]   ;;  %s6006_s3 = inlined_call_operand.vmem [shape: f32[32,32], index: 3, kind: input, shape index: {}]   ;;  %s6007_s4 = inlined_call_operand.vmem [shape: f32[1,32], index: 4, kind: input, shape index: {}]   ;;  %s6008_s5 = inlined_call_operand.vmem [shape: f32[2,288,32], index: 5, kind: output, shape index: {}]  }
   0x1 LB: > { %s2516_s19 = sadd.s32 4294967295, %s2630_s18   ;;  %p2520_p0 = scmp.ge.s32.totalorder %s2630_s18, 1  ;;  %s2630_s18 = sphi %s2662_s18, %s15_s18  }
   0x2   : > { %p187_p1 = scmp.lt.s32.totalorder %s2630_s18, 3 }
   0x4   : > { %p188_p2 = pnand %p2520_p0, %p187_p1 }
   0x6   : > { %191 = sbr.rel (%p188_p2) target bundleno = 552 (0x228), region = 40 }
   0xb   : > { %v2150_v0 = vld [vmem:[%s6006_s3 + $0x18] sm:$0xff]  ;;  %v2149_v1 = vld [vmem:[%s6006_s3 + $0x10] sm:$0xff]  ;;  %p215_p3 = scmp.lt.s32.totalorder %s2516_s19, 1  ;;  %v266_v2 = vld [vmem:[%s6004_s1] sm:$0xff]  ;;  %vm380_vm0 = vcmask 1046528   ;;  %vm601_vm1 = vcmask 1045504  }
   0xc   : > { %2562 = vmatpush.msra.mxu2 %v2150_v0  ;;  %2563 = vmatpush.msra.mxu3 %v2150_v0  ;;  %v2148_v3 = vld [vmem:[%s6006_s3 + $0x8] sm:$0xff]  ;;  %v2147_v4 = vld [vmem:[%s6006_s3] sm:$0xff]  ;;  %v2688_v5 = vperm.slane %v266_v2, 0  ;;  %v2690_v6 = vperm.slane %v266_v2, 1  ;;  %v2692_v7 = vperm.slane %v266_v2, 2  ;;  %v2694_v8 = vperm.slane %v266_v2, 3 }
   0xd   : > { %2276 = vmatpush.msra.mxu0 %v2150_v0  ;;  %2561 = vmatpush.msra.mxu1 %v2150_v0  ;;  %s6895_s19 = smov (!%p215_p3, %s2516_s19), 1  ;;  %v2696_v9 = vperm.slane %v266_v2, 4  ;;  %vm1042_vm2 = vcmask 1044480   ;;  %vm1263_vm3 = vcmask 1043456   ;;  %v2710_v13 = vperm.slane %v266_v2, 5 }
   0xe   : > { %2565 = vmatpush.msra.mxu2 %v2149_v1  ;;  %2566 = vmatpush.msra.mxu3 %v2149_v1  ;;  %s2573_s30 = smul.u32 328, %s6895_s19  ;;  %v2712_v14 = vperm.slane %v266_v2, 6  ;;  %v2714_v15 = vperm.slane %v266_v2, 7  ;;  %vm1704_vm4 = vcmask 1042432   ;;  %vm1925_vm5 = vcmask 1041408  }
   0xf   : > { %2277 = vmatpush.msra.mxu0 %v2149_v1  ;;  %2564 = vmatpush.msra.mxu1 %v2149_v1  ;;  %v2780_v39 = vld [vmem:[%s6004_s1 + $0x8] ss:$0 sm:$0xff]  ;;  %vm2155_vm6 = vcmask 261120   ;;  %s2574_s25 = smul.u32 288, %s6895_s19 }
  0x10   : > { %2568 = vmatpush.msra.mxu2 %v2148_v3  ;;  %2569 = vmatpush.msra.mxu3 %v2148_v3  ;;  %s2701_s8 = scalar_lea.vmem %s6003_s0, %s2573_s30 }
  0x11   : > { %2278 = vmatpush.msra.mxu0 %v2148_v3  ;;  %2567 = vmatpush.msra.mxu1 %v2148_v3  ;;  %v243_v10 = vld [vmem:[%s2701_s8 + $0x90] sm:$0xff]  ;;  %v2705_v11 = vld [vmem:[%s2701_s8 + $0x98] sm:$0xff]  ;;  %v2708_v12 = vld [vmem:[%s2701_s8 + $0xa0] sm:$0xff]  ;;  %s5872_s27 = scalar_lea.vmem %s6008_s5, %s2574_s25 }
  0x12   : > { %2571 = vmatpush.msra.mxu2 %v2147_v4  ;;  %2572 = vmatpush.msra.mxu3 %v2147_v4  ;;  %v2717_v16 = vld [vmem:[%s2701_s8 + $0xa8] sm:$0xff]  ;;  %v287_v17 = vmul.f32 %v2688_v5, %v243_v10  ;;  %v2721_v18 = vmul.f32 %v2690_v6, %v243_v10  ;;  %v2725_v19 = vmul.f32 %v2690_v6, %v2705_v11  ;;  %v2747_v25 = vld [vmem:[%s2701_s8 + $0xb0] sm:$0xff]  ;;  %v2757_v30 = vld [vmem:[%s2701_s8 + $0xb8] sm:$0xff] }
  0x13   : > { %6392 = vst [vmem:[#allocation2_spill] sm:$0xff] %v2717_v16  ;;  %v2728_v20 = vmul.f32 %v2692_v7, %v243_v10  ;;  %2279 = vmatpush.msra.mxu0 %v2147_v4  ;;  %v2732_v21 = vmul.f32 %v2692_v7, %v2705_v11  ;;  %v2736_v22 = vmul.f32 %v2694_v8, %v2708_v12  ;;  %v252_v52 = vld [vmem:[%s2701_s8 + $0xd8] sm:$0xff]  ;;  %v2832_v57 = vld [vmem:[%s2701_s8 + $0xe0] sm:$0xff]  ;;  %v2837_v61 = vld [vmem:[%s2701_s8 + $0xe8] sm:$0xff] }
  0x14   : > { %6393 = vst [vmem:[#allocation3_spill] sm:$0xff] %v2721_v18  ;;  %v2740_v23 = vmul.f32 %v2694_v8, %v2717_v16  ;;  %v2744_v24 = vmul.f32 %v2696_v9, %v2708_v12  ;;  %2570 = vmatpush.msra.mxu1 %v2147_v4  ;;  %v6016_v26 = vrot.slane %v2721_v18, 1  ;;  %v6032_v27 = vrot.slane %v2725_v19, 1  ;;  %v2848_v2 = vld [vmem:[%s2701_s8 + $0xf0] sm:$0xff] }
  0x15   : > { %6394 = vst [vmem:[#allocation4_spill] sm:$0xff] %v2728_v20  ;;  %v6015_v28 = vrot.slane %v2728_v20, 2  ;;  %v2754_v29 = vmul.f32 %v2696_v9, %v2717_v16  ;;  %v6031_v31 = vrot.slane %v2732_v21, 2  ;;  %v6014_v32 = vrot.slane %v2736_v22, 2 }
  0x16   : > { %6395 = vst [vmem:[#allocation5_spill] sm:$0xff] %v2736_v22  ;;  %v6030_v33 = vrot.slane %v2740_v23, 2  ;;  %v6013_v34 = vrot.slane %v2744_v24, 3  ;;  %v419_v35 = vsel %vm380_vm0, %v6016_v26, %v6032_v27  ;;  %v2771_v37 = vmul.f32 %v2710_v13, %v2708_v12 }
  0x17   : > { %6396 = vst [vmem:[#allocation6_spill] sm:$0xff] %v2744_v24  ;;  %v6029_v36 = vrot.slane %v2754_v29, 3  ;;  %v2775_v38 = vmul.f32 %v2710_v13, %v2717_v16  ;;  %v508_v40 = vadd.f32 %v419_v35, %v287_v17  ;;  %v640_v41 = vsel %vm601_vm1, %v6015_v28, %v6031_v31 }
  0x18   : > { %6397 = vst [vmem:[#allocation7_spill] sm:$0xff] %v2747_v25  ;;  %v860_v42 = vsel %vm601_vm1, %v6014_v32, %v6030_v33  ;;  %v2794_v43 = vmul.f32 %v2712_v14, %v2747_v25  ;;  %v6012_v45 = vrot.slane %v2771_v37, 4  ;;  %v2805_v47 = vmul.f32 %v2712_v14, %v2757_v30  ;;  %v2899_v32 = vld [vmem:[%s2701_s8 + $0x100] sm:$0xff] }
  0x19   : > { %6398 = vst [vmem:[#allocation8_spill] sm:$0xff] %v2757_v30  ;;  %v1081_v44 = vsel %vm1042_vm2, %v6013_v34, %v6029_v36  ;;  %v6020_v46 = vrot.slane %v2775_v38, 4  ;;  %v729_v48 = vadd.f32 %v640_v41, %v508_v40  ;;  %v2810_v50 = vmul.f32 %v2714_v15, %v2747_v25  ;;  %v2896_v34 = vld [vmem:[%s2701_s8 + $0xf8] sm:$0xff] }
  0x1a   : > { %6399 = vst [vmem:[#allocation9_spill] sm:$0xff] %v2771_v37  ;;  %v6011_v49 = vrot.slane %v2794_v43, 4  ;;  %v2814_v51 = vmul.f32 %v2714_v15, %v2757_v30  ;;  %v6019_v54 = vrot.slane %v2805_v47, 4  ;;  %v2825_v55 = vmul.f32 %v2780_v39, %v2747_v25 }
  0x1b   : > { %6400 = vst [vmem:[#allocation10_spill] sm:$0xff] %v2794_v43  ;;  %v1302_v53 = vsel %vm1263_vm3, %v6012_v45, %v6020_v46  ;;  %v2829_v56 = vmul.f32 %v2780_v39, %v2757_v30  ;;  %v949_v58 = vadd.f32 %v860_v42, %v729_v48  ;;  %v6009_v59 = vrot.slane %v2810_v50, 5 }
  0x1c   : > { %6401 = vst [vmem:[#allocation11_spill] sm:$0xff] %v2810_v50  ;;  %v6018_v60 = vrot.slane %v2814_v51, 5  ;;  %v296_v62 = vmul.f32 %v2688_v5, %v252_v52  ;;  %v1522_v63 = vsel %vm1263_vm3, %v6011_v49, %v6019_v54  ;;  %v6010_v0 = vrot.slane %v2825_v55, 6 }
  0x1d   : > { %6402 = vst [vmem:[#allocation12_spill] sm:$0xff] %v2825_v55  ;;  %v6017_v1 = vrot.slane %v2829_v56, 6  ;;  %v2851_v3 = vmul.f32 %v2690_v6, %v252_v52  ;;  %v1170_v4 = vadd.f32 %v1081_v44, %v949_v58  ;;  %v2860_v17 = vmul.f32 %v2690_v6, %v2832_v57 }
  0x1e   : > { %6403 = vst [vmem:[#allocation13_spill] sm:$0xff] %v2848_v2  ;;  %v1743_v10 = vsel %vm1704_vm4, %v6009_v59, %v6018_v60  ;;  %v2863_v35 = vmul.f32 %v2692_v7, %v252_v52  ;;  %v2873_v42 = vmul.f32 %v2692_v7, %v2832_v57  ;;  %v2877_v44 = vmul.f32 %v2694_v8, %v2837_v61 }
  0x1f   : > { %6404 = vst [vmem:[#allocation14_spill] sm:$0xff] %v2851_v3  ;;  %v1964_v40 = vsel %vm1925_vm5, %v6010_v0, %v6017_v1  ;;  %v6021_v41 = vrot.slane %v2851_v3, 1  ;;  %v1391_v48 = vadd.f32 %v1302_v53, %v1170_v4  ;;  %v6026_v52 = vrot.slane %v2860_v17, 1  ;;  %v234_v3 = vld [vmem:[%s2701_s8 + $0x48] sm:$0xff] }
  0x20   : > { %6405 = vst [vmem:[#allocation15_spill] sm:$0xff] %v2863_v35  ;;  %v6022_v58 = vrot.slane %v2863_v35, 2  ;;  %v2883_v59 = vmul.f32 %v2694_v8, %v2848_v2  ;;  %v6023_v0 = vrot.slane %v2873_v42, 2  ;;  %v6024_v49 = vrot.slane %v2877_v44, 2 }
  0x21   : > { %6406 = vst [vmem:[#allocation16_spill] sm:$0xff] %v2877_v44  ;;  %v2889_v45 = vmul.f32 %v2696_v9, %v2837_v61  ;;  %v2893_v53 = vmul.f32 %v2696_v9, %v2848_v2  ;;  %v1611_v4 = vadd.f32 %v1522_v63, %v1391_v48  ;;  %v437_v28 = vsel %vm380_vm0, %v6021_v41, %v6026_v52  ;;  %v2921_v41 = vld [vmem:[%s6005_s2] ss:$0 sm:$0xff] }
  0x22   : > { %6408 = vst [vmem:[#allocation18_spill] sm:$0xff] %v2896_v34  ;;  %v6025_v26 = vrot.slane %v2883_v59, 2  ;;  %v2909_v1 = vmul.f32 %v2710_v13, %v2837_v61  ;;  %v517_v60 = vadd.f32 %v437_v28, %v296_v62  ;;  %v658_v63 = vsel %vm601_vm1, %v6022_v58, %v6023_v0  ;;  %v3024_v44 = vld [vmem:[%s2701_s8 + $0x20] sm:$0xff] }
  0x23   : > { %6407 = vst [vmem:[#allocation17_spill] sm:$0xff] %v2889_v45  ;;  %v6027_v48 = vrot.slane %v2889_v45, 3  ;;  %v6028_v54 = vrot.slane %v2893_v53, 3  ;;  %v1832_v46 = vadd.f32 %v1743_v10, %v1611_v4  ;;  %v2930_v62 = vmul.f32 %v2710_v13, %v2848_v2 }
  0x24   : > { %6409 = vst [vmem:[#allocation19_spill] sm:$0xff] %v2899_v32  ;;  %v878_v28 = vsel %vm601_vm1, %v6024_v49, %v6025_v26  ;;  %v6036_v58 = vrot.slane %v2909_v1, 4  ;;  %v738_v0 = vadd.f32 %v658_v63, %v517_v60  ;;  %v2940_v4 = vmul.f32 %v2712_v14, %v2896_v34 }
  0x25   : > { %6410 = vst [vmem:[#allocation20_spill] sm:$0xff] %v2909_v1  ;;  %v1099_v10 = vsel %vm1042_vm2, %v6027_v48, %v6028_v54  ;;  %v2944_v49 = vmul.f32 %v2712_v14, %v2899_v32  ;;  %v2053_v26 = vadd.f32 %v1964_v40, %v1832_v46  ;;  %v6037_v52 = vrot.slane %v2930_v62, 4  ;;  %v225_v40 = vld [vmem:[%s2701_s8] sm:$0xff] }
  0x26   : > { %6411 = vst [vmem:[#allocation21_spill] sm:$0xff] %v2940_v4  ;;  %v2949_v60 = vmul.f32 %v2714_v15, %v2896_v34  ;;  %v2953_v63 = vmul.f32 %v2714_v15, %v2899_v32  ;;  %v958_v48 = vadd.f32 %v878_v28, %v738_v0  ;;  %v2959_v46 = vmul.f32 %v2780_v39, %v2896_v34  ;;  %v2971_v28 = vld [vmem:[%s2701_s8 + $0x8] sm:$0xff] }
  0x27   : > { %v6039_v36 = vrot.slane %v2944_v49, 4  ;;  %v2093_v33 = vadd.f32 %v2921_v41, %v2053_v26  ;;  %v1320_v31 = vsel %vm1263_vm3, %v6036_v58, %v6037_v52  ;;  %v6414_v55 = vrot.slane %v2940_v4, 4  ;;  %v2984_v58 = vld [vmem:[%s2701_s8 + $0x10] sm:$0xff]  ;;  %v2987_v52 = vld [vmem:[%s2701_s8 + $0x18] sm:$0xff]  ;;  %6418 = vst [vmem:[#allocation25_spill] sm:$0xff] %v3024_v44 }
  0x28   : > { %6412 = vst [vmem:[#allocation22_spill] sm:$0xff] %v2949_v60  ;;  %v6042_v0 = vrot.slane %v2953_v63, 5  ;;  %v1179_v54 = vadd.f32 %v1099_v10, %v958_v48  ;;  %v2980_v26 = vmul.f32 %v2780_v39, %v2899_v32  ;;  %v6416_v48 = vrot.slane %v2949_v60, 5 }
  0x29   : > { %6413 = vst [vmem:[#allocation23_spill] sm:$0xff] %v2959_v46  ;;  %v1540_v50 = vsel %vm1263_vm3, %v6414_v55, %v6039_v36  ;;  %v2129_v27 = vmax.f32 %v2093_v33, 0.0  ;;  %v269_v37 = vmul.f32 %v2688_v5, %v225_v40  ;;  %v306_v55 = vmul.f32 %v2690_v6, %v225_v40 }
  0x2a   : > { %6415 = vst [vmem:[#allocation24_spill] sm:$0xff] %v2987_v52  ;;  %v1761_v10 = vsel %vm1704_vm4, %v6416_v48, %v6042_v0  ;;  %v1400_v36 = vadd.f32 %v1320_v31, %v1179_v54  ;;  %v6050_v24 = vrot.slane %v2980_v26, 6  ;;  %v2999_v43 = vmul.f32 %v2690_v6, %v2971_v28 }
  0x2b   : > { %v527_v33 = vmul.f32 %v2692_v7, %v225_v40  ;;  %2541 = vmatmul.msk.f32.vlgmr.msra.gmra.mxu2 %vm2155_vm6, %v2129_v27  ;;  %v381_v22 = vrot.slane %v306_v55, 1  ;;  %v3005_v48 = vmul.f32 %v2692_v7, %v2971_v28  ;;  %v748_v31 = vmul.f32 %v2694_v8, %v2984_v58 }
  0x2c   : > { %v3011_v54 = vmul.f32 %v2694_v8, %v2987_v52  ;;  %v1620_v0 = vadd.f32 %v1540_v50, %v1400_v36  ;;  %v6417_v40 = vrot.slane %v2959_v46, 6  ;;  %v6052_v27 = vrot.slane %v2999_v43, 1  ;;  %v3027_v36 = vld [vmem:[%s2701_s8 + $0x28] sm:$0xff] }
  0x2d   : > { %v602_v55 = vrot.slane %v527_v33, 2  ;;  %v6055_v18 = vrot.slane %v3005_v48, 2  ;;  %v822_v60 = vrot.slane %v748_v31, 2  ;;  %v968_v1 = vmul.f32 %v2696_v9, %v2984_v58  ;;  %6419 = vst [vmem:[#allocation26_spill] sm:$0xff] %v3027_v36 }
  0x2e   : > { %v1982_v20 = vsel %vm1925_vm5, %v6417_v40, %v6050_v24  ;;  %v6054_v4 = vrot.slane %v3011_v54, 2  ;;  %v1841_v45 = vadd.f32 %v1761_v10, %v1620_v0  ;;  %v383_v50 = vsel %vm380_vm0, %v381_v22, %v6052_v27 }
  0x2f   : > { %v3034_v33 = vmul.f32 %v2696_v9, %v2987_v52  ;;  %v1189_v31 = vmul.f32 %v2710_v13, %v2984_v58  ;;  %v490_v40 = vadd.f32 %v383_v50, %v269_v37  ;;  %v604_v0 = vsel %vm601_vm1, %v602_v55, %v6055_v18 }
  0x30   : > { %v824_v10 = vsel %vm601_vm1, %v822_v60, %v6054_v4  ;;  %v1043_v24 = vrot.slane %v968_v1, 3  ;;  %v2062_v46 = vadd.f32 %v1982_v20, %v1841_v45  ;;  %v3047_v27 = vmul.f32 %v2710_v13, %v2987_v52  ;;  %v3069_v52 = vld [vmem:[%s2701_s8 + $0x50] sm:$0xff] }
  0x31   : > { %v6059_v22 = vrot.slane %v3034_v33, 3  ;;  %v1264_v35 = vrot.slane %v1189_v31, 4  ;;  %v711_v37 = vadd.f32 %v604_v0, %v490_v40  ;;  %v1410_v50 = vmul.f32 %v2712_v14, %v3024_v44  ;;  %6422 = vst [vmem:[#allocation29_spill] sm:$0xff] %v3069_v52 }
  0x32   : > { %v3053_v55 = vmul.f32 %v2712_v14, %v3027_v36  ;;  %v1630_v20 = vmul.f32 %v2714_v15, %v3024_v44  ;;  %v2102_v45 = vadd.f32 %v2921_v41, %v2062_v46  ;;  %v6065_v60 = vrot.slane %v3047_v27, 4 }
  0x33   : > { %v1045_v1 = vsel %vm1042_vm2, %v1043_v24, %v6059_v22  ;;  %v3064_v31 = vmul.f32 %v2714_v15, %v3027_v36  ;;  %v931_v40 = vadd.f32 %v824_v10, %v711_v37  ;;  %v1484_v0 = vrot.slane %v1410_v50, 4  ;;  %v3085_v50 = vld [vmem:[%s2701_s8 + $0x58] sm:$0xff] }
  0x34   : > { %6420 = vst [vmem:[#allocation27_spill] sm:$0xff] %v3053_v55  ;;  %v6064_v4 = vrot.slane %v3053_v55, 4  ;;  %v1705_v18 = vrot.slane %v1630_v20, 5  ;;  %v2138_v46 = vmax.f32 %v2102_v45, 0.0  ;;  %v1266_v24 = vsel %vm1263_vm3, %v1264_v35, %v6065_v60  ;;  %v3088_v20 = vld [vmem:[%s2701_s8 + $0x60] sm:$0xff] }
  0x35   : > { %6421 = vst [vmem:[#allocation28_spill] sm:$0xff] %v3064_v31  ;;  %v6068_v22 = vrot.slane %v3064_v31, 5  ;;  %v1851_v32 = vmul.f32 %v2780_v39, %v3024_v44  ;;  %v1152_v2 = vadd.f32 %v1045_v1, %v931_v40  ;;  %v3082_v37 = vmul.f32 %v2780_v39, %v3027_v36 }
  0x36   : > { %v1486_v10 = vsel %vm1263_vm3, %v1484_v0, %v6064_v4  ;;  %6423 = vst [vmem:[#allocation30_spill] sm:$0xff] %v3088_v20  ;;  %v278_v35 = vmul.f32 %v2688_v5, %v234_v3  ;;  %2550 = vmatmul.msk.f32.vlgmr.msra.gmra.mxu3 %vm2155_vm6, %v2138_v46  ;;  %v3096_v40 = vmul.f32 %v2690_v6, %v234_v3 }
  0x37   : > { %v1707_v45 = vsel %vm1704_vm4, %v1705_v18, %v6068_v22  ;;  %v1926_v1 = vrot.slane %v1851_v32, 6  ;;  %v3100_v0 = vmul.f32 %v2690_v6, %v3069_v52  ;;  %v1373_v4 = vadd.f32 %v1266_v24, %v1152_v2  ;;  %v3126_v18 = vld [vmem:[%s2701_s8 + $0x68] sm:$0xff] }
  0x38   : > { %6424 = vst [vmem:[#allocation31_spill] sm:$0xff] %v3096_v40  ;;  %v6076_v60 = vrot.slane %v3082_v37, 6  ;;  %v3104_v36 = vmul.f32 %v2692_v7, %v234_v3  ;;  %v3108_v46 = vmul.f32 %v2692_v7, %v3069_v52  ;;  %v3114_v22 = vmul.f32 %v2694_v8, %v3085_v50 }
  0x39   : > { %6425 = vst [vmem:[#allocation32_spill] sm:$0xff] %v3100_v0  ;;  %v6079_v32 = vrot.slane %v3100_v0, 1  ;;  %v3118_v2 = vmul.f32 %v2694_v8, %v3088_v20  ;;  %v1593_v24 = vadd.f32 %v1486_v10, %v1373_v4  ;;  %v6431_v31 = vrot.slane %v3096_v40, 1 }
  0x3a   : > { %6426 = vst [vmem:[#allocation33_spill] sm:$0xff] %v3104_v36  ;;  %v1928_v3 = vsel %vm1925_vm5, %v1926_v1, %v6076_v60  ;;  %v6080_v16 = vrot.slane %v3108_v46, 2  ;;  %v6082_v52 = vrot.slane %v3114_v22, 2  ;;  %v3137_v10 = vmul.f32 %v2696_v9, %v3085_v50  ;;  %v3140_v60 = vld [vmem:[%s2701_s8 + $0x70] sm:$0xff] }
  0x3b   : > { %6427 = vst [vmem:[#allocation34_spill] sm:$0xff] %v3108_v46  ;;  %v401_v55 = vsel %vm380_vm0, %v6431_v31, %v6079_v32  ;;  %v6083_v4 = vrot.slane %v3118_v2, 2  ;;  %v1814_v1 = vadd.f32 %v1707_v45, %v1593_v24  ;;  %v6434_v0 = vrot.slane %v3104_v36, 2 }
  0x3c   : > { %6428 = vst [vmem:[#allocation35_spill] sm:$0xff] %v3114_v22  ;;  %v499_v30 = vadd.f32 %v401_v55, %v278_v35  ;;  %v3149_v31 = vmul.f32 %v2696_v9, %v3088_v20  ;;  %v3159_v55 = vmul.f32 %v2710_v13, %v3085_v50  ;;  %v3163_v35 = vmul.f32 %v2710_v13, %v3088_v20 }
  0x3d   : > { %6429 = vst [vmem:[#allocation36_spill] sm:$0xff] %v3118_v2  ;;  %v622_v40 = vsel %vm601_vm1, %v6434_v0, %v6080_v16  ;;  %v842_v32 = vsel %vm601_vm1, %v6082_v52, %v6083_v4  ;;  %v2035_v0 = vadd.f32 %v1928_v3, %v1814_v1  ;;  %v3168_v36 = vmul.f32 %v2712_v14, %v3126_v18 }
  0x3e   : > { %6430 = vst [vmem:[#allocation37_spill] sm:$0xff] %v3126_v18  ;;  %v720_v24 = vadd.f32 %v622_v40, %v499_v30  ;;  %v6090_v16 = vrot.slane %v3149_v31, 3  ;;  %v6091_v4 = vrot.slane %v3163_v35, 4  ;;  %v3174_v45 = vmul.f32 %v2712_v14, %v3140_v60 }
  0x3f   : > { %6432 = vst [vmem:[#allocation38_spill] sm:$0xff] %v3137_v10  ;;  %v3178_v22 = vmul.f32 %v2714_v15, %v3126_v18  ;;  %v2075_v30 = vadd.f32 %v2921_v41, %v2035_v0  ;;  %v6439_v3 = vrot.slane %v3137_v10, 3  ;;  %v6095_v52 = vrot.slane %v3168_v36, 4 }
  0x40   : > { %6433 = vst [vmem:[#allocation39_spill] sm:$0xff] %v3140_v60  ;;  %v940_v40 = vadd.f32 %v842_v32, %v720_v24  ;;  %v6440_v20 = vrot.slane %v3159_v55, 4  ;;  %v6096_v46 = vrot.slane %v3174_v45, 4  ;;  %v3195_v32 = vmul.f32 %v2714_v15, %v3140_v60 }
  0x41   : > { %6435 = vst [vmem:[#allocation40_spill] sm:$0xff] %v3159_v55  ;;  %v1063_v1 = vsel %vm1042_vm2, %v6439_v3, %v6090_v16  ;;  %v2111_v24 = vmax.f32 %v2075_v30, 0.0  ;;  %v3200_v3 = vmul.f32 %v2780_v39, %v3126_v18  ;;  %v3204_v16 = vmul.f32 %v2780_v39, %v3140_v60  ;;  %v3222_v60 = vld [vmem:[%s2701_s8 + $0xc0] sm:$0xff] }
  0x42   : > { %6436 = vst [vmem:[#allocation41_spill] sm:$0xff] %v3168_v36  ;;  %v1284_v2 = vsel %vm1263_vm3, %v6440_v20, %v6091_v4  ;;  %v1161_v10 = vadd.f32 %v1063_v1, %v940_v40  ;;  %v1504_v20 = vsel %vm1263_vm3, %v6095_v52, %v6096_v46  ;;  %v6100_v4 = vrot.slane %v3195_v32, 5 }
  0x43   : > { %6437 = vst [vmem:[#allocation42_spill] sm:$0xff] %v3174_v45  ;;  %v288_v30 = vmul.f32 %v2688_v5, %v2705_v11  ;;  %v3216_v40 = vmul.f32 %v2690_v6, %v2708_v12  ;;  %2523 = vmatmul.msk.f32.vlgmr.msra.gmra.mxu0 %vm2155_vm6, %v2111_v24  ;;  %v6103_v0 = vrot.slane %v3200_v3, 6  ;;  %v6104_v55 = vrot.slane %v3204_v16, 6 }
  0x44   : > { %6438 = vst [vmem:[#allocation43_spill] sm:$0xff] %v3178_v22  ;;  %v1382_v1 = vadd.f32 %v1284_v2, %v1161_v10  ;;  %v3226_v52 = vmul.f32 %v2692_v7, %v2708_v12  ;;  %v6446_v11 = vrot.slane %v3178_v22, 5  ;;  %v3236_v2 = vmul.f32 %v2694_v8, %v2747_v25 }
  0x45   : > { %6441 = vst [vmem:[#allocation44_spill] sm:$0xff] %v3195_v32  ;;  %v6108_v36 = vrot.slane %v3216_v40, 1  ;;  %v3240_v10 = vmul.f32 %v2696_v9, %v2747_v25  ;;  %v1946_v32 = vsel %vm1925_vm5, %v6103_v0, %v6104_v55 }
  0x46   : > { %6442 = vst [vmem:[#allocation45_spill] sm:$0xff] %v3200_v3  ;;  %v1725_v46 = vsel %vm1704_vm4, %v6446_v11, %v6100_v4  ;;  %v1602_v24 = vadd.f32 %v1504_v20, %v1382_v1  ;;  %v6115_v22 = vrot.slane %v3226_v52, 2  ;;  %v3250_v11 = vmul.f32 %v2710_v13, %v2747_v25 }
  0x47   : > { %6443 = vst [vmem:[#allocation46_spill] sm:$0xff] %v3204_v16  ;;  %v6447_v4 = vrot.slane %v2725_v19, 1  ;;  %v6114_v20 = vrot.slane %v3236_v2, 2  ;;  %v6110_v1 = vrot.slane %v3240_v10, 3  ;;  %v3261_v3 = vmul.f32 %v2712_v14, %v3222_v60 }
  0x48   : > { %6444 = vst [vmem:[#allocation47_spill] sm:$0xff] %v3216_v40  ;;  %v1823_v0 = vadd.f32 %v1725_v46, %v1602_v24  ;;  %v6448_v25 = vrot.slane %v2732_v21, 2  ;;  %v6112_v19 = vrot.slane %v3250_v11, 4  ;;  %v6450_v16 = vrot.slane %v2754_v29, 3 }
  0x49   : > { %6445 = vst [vmem:[#allocation48_spill] sm:$0xff] %v3222_v60  ;;  %v421_v45 = vsel %vm380_vm0, %v6447_v4, %v6108_v36  ;;  %v6449_v4 = vrot.slane %v2740_v23, 2  ;;  %v3282_v21 = vmul.f32 %v2714_v15, %v3222_v60  ;;  %v6452_v23 = vrot.slane %v2775_v38, 4 }
  0x4a   : > { %v509_v55 = vadd.f32 %v421_v45, %v288_v30  ;;  %v642_v40 = vsel %vm601_vm1, %v6448_v25, %v6115_v22  ;;  %v1083_v46 = vsel %vm1042_vm2, %v6450_v16, %v6110_v1  ;;  %v6111_v45 = vrot.slane %v3261_v3, 4 }
  0x4b   : > { %v862_v36 = vsel %vm601_vm1, %v6449_v4, %v6114_v20  ;;  %6451 = vst [vmem:[#allocation49_spill] sm:$0xff] %v3282_v21  ;;  %v2044_v25 = vadd.f32 %v1946_v32, %v1823_v0  ;;  %v1304_v24 = vsel %vm1263_vm3, %v6452_v23, %v6112_v19  ;;  %v3291_v29 = vmul.f32 %v2780_v39, %v3222_v60 }
  0x4c   : > { %v730_v30 = vadd.f32 %v642_v40, %v509_v55  ;;  %v6453_v16 = vrot.slane %v2805_v47, 4  ;;  %v6113_v1 = vrot.slane %v3282_v21, 5  ;;  %v297_v55 = vmul.f32 %v2688_v5, %v2832_v57  ;;  %v3317_v57 = vld [vmem:[%s2701_s8 + $0x108] sm:$0xff] }
  0x4d   : > { %v3303_v38 = vmul.f32 %v2690_v6, %v2837_v61  ;;  %v2084_v32 = vadd.f32 %v2921_v41, %v2044_v25  ;;  %v6128_v40 = vrot.slane %v3291_v29, 6  ;;  %v3309_v23 = vmul.f32 %v2692_v7, %v2837_v61  ;;  %6455 = vst [vmem:[#allocation50_spill] sm:$0xff] %v3317_v57 }
  0x4e   : > { %v1524_v4 = vsel %vm1263_vm3, %v6453_v16, %v6111_v45  ;;  %v950_v0 = vadd.f32 %v862_v36, %v730_v30  ;;  %v6454_v47 = vrot.slane %v2814_v51, 5  ;;  %v3322_v25 = vmul.f32 %v2694_v8, %v2896_v34 }
  0x4f   : > { %v6119_v45 = vrot.slane %v3303_v38, 1  ;;  %v3326_v36 = vmul.f32 %v2696_v9, %v2896_v34  ;;  %v2120_v30 = vmax.f32 %v2084_v32, 0.0  ;;  %v6456_v51 = vrot.slane %v2829_v56, 6 }
  0x50   : > { %v1745_v16 = vsel %vm1704_vm4, %v6454_v47, %v6113_v1  ;;  %v1171_v19 = vadd.f32 %v1083_v46, %v950_v0  ;;  %v6127_v1 = vrot.slane %v3309_v23, 2  ;;  %v6457_v20 = vrot.slane %v2860_v17, 1 }
  0x51   : > { %v1966_v47 = vsel %vm1925_vm5, %v6456_v51, %v6128_v40  ;;  %v6121_v60 = vrot.slane %v3322_v25, 2  ;;  %v6120_v21 = vrot.slane %v3326_v36, 3  ;;  %v3343_v46 = vmul.f32 %v2710_v13, %v2896_v34  ;;  %2532 = vmatmul.msk.f32.vlgmr.msra.gmra.mxu1 %vm2155_vm6, %v2120_v30 }
  0x52   : > { %v439_v22 = vsel %vm380_vm0, %v6457_v20, %v6119_v45  ;;  %v1392_v56 = vadd.f32 %v1304_v24, %v1171_v19  ;;  %v6458_v0 = vrot.slane %v2873_v42, 2  ;;  %v3353_v20 = vmul.f32 %v2712_v14, %v3317_v57 }
  0x53   : > { %v518_v32 = vadd.f32 %v439_v22, %v297_v55  ;;  %v6459_v51 = vrot.slane %v2883_v59, 2  ;;  %v6460_v22 = vrot.slane %v2893_v53, 3  ;;  %v6122_v42 = vrot.slane %v3343_v46, 4 }
  0x54   : > { %v660_v17 = vsel %vm601_vm1, %v6458_v0, %v6127_v1  ;;  %v3368_v24 = vmul.f32 %v2714_v15, %v3317_v57  ;;  %v1612_v55 = vadd.f32 %v1524_v4, %v1392_v56  ;;  %v6124_v0 = vrot.slane %v3353_v20, 4 }
  0x55   : > { %v880_v45 = vsel %vm601_vm1, %v6459_v51, %v6121_v60  ;;  %v1101_v19 = vsel %vm1042_vm2, %v6460_v22, %v6120_v21  ;;  %v739_v30 = vadd.f32 %v660_v17, %v518_v32  ;;  %v3373_v59 = vmul.f32 %v2780_v39, %v3317_v57 }
  0x56   : > { %v6461_v53 = vrot.slane %v2930_v62, 4  ;;  %v6123_v22 = vrot.slane %v3368_v24, 5  ;;  %v270_v21 = vmul.f32 %v2688_v5, %v2971_v28  ;;  %v3385_v4 = vmul.f32 %v2690_v6, %v2984_v58 }
  0x57   : > { %v1833_v56 = vadd.f32 %v1745_v16, %v1612_v55  ;;  %v959_v32 = vadd.f32 %v880_v45, %v739_v30  ;;  %v6462_v17 = vrot.slane %v2944_v49, 4  ;;  %v6125_v60 = vrot.slane %v3373_v59, 6 }
  0x58   : > { %v1322_v51 = vsel %vm1263_vm3, %v6461_v53, %v6122_v42  ;;  %v6463_v53 = vrot.slane %v2953_v63, 5  ;;  %v6126_v42 = vrot.slane %v3385_v4, 1  ;;  %v3401_v16 = vmul.f32 %v2692_v7, %v2984_v58 }
  0x59   : > { %v1542_v62 = vsel %vm1263_vm3, %v6462_v17, %v6124_v0  ;;  %v3405_v45 = vmul.f32 %v2694_v8, %v3024_v44  ;;  %v2054_v49 = vadd.f32 %v1966_v47, %v1833_v56  ;;  %v1180_v55 = vadd.f32 %v1101_v19, %v959_v32  ;;  %v3413_v17 = vld [vmem:[%s2701_s8 + $0x30] sm:$0xff] }
  0x5a   : > { %v1763_v28 = vsel %vm1704_vm4, %v6463_v53, %v6123_v22  ;;  %v6464_v30 = vrot.slane %v2980_v26, 6  ;;  %6465 = vst [vmem:[#allocation51_spill] sm:$0xff] %v3413_v17  ;;  %v3417_v53 = vmul.f32 %v2696_v9, %v3024_v44  ;;  %v6466_v22 = vrot.slane %v2999_v43, 1 }
  0x5b   : > { %v6133_v47 = vrot.slane %v3401_v16, 2  ;;  %v6129_v19 = vrot.slane %v3405_v45, 2  ;;  %v3428_v26 = vmul.f32 %v2710_v13, %v3024_v44  ;;  %v2094_v56 = vadd.f32 %v2921_v41, %v2054_v49 }
  0x5c   : > { %v1984_v63 = vsel %vm1925_vm5, %v6464_v30, %v6125_v60  ;;  %v385_v0 = vsel %vm380_vm0, %v6466_v22, %v6126_v42  ;;  %v1401_v32 = vadd.f32 %v1322_v51, %v1180_v55  ;;  %v6131_v60 = vrot.slane %v3417_v53, 3 }
  0x5d   : > { %v491_v30 = vadd.f32 %v385_v0, %v270_v21  ;;  %v6467_v43 = vrot.slane %v3005_v48, 2  ;;  %v6468_v42 = vrot.slane %v3011_v54, 2  ;;  %v6130_v40 = vrot.slane %v3428_v26, 4 }
  0x5e   : > { %v3445_v51 = vmul.f32 %v2712_v14, %v3413_v17  ;;  %v2130_v21 = vmax.f32 %v2094_v56, 0.0  ;;  %v1621_v0 = vadd.f32 %v1542_v62, %v1401_v32  ;;  %v6469_v48 = vrot.slane %v3034_v33, 3  ;;  %v6471_v32 = vld [vmem:[#allocation29_spill] sm:$0xff] }
  0x5f   : > { %v606_v22 = vsel %vm601_vm1, %v6467_v43, %v6133_v47  ;;  %v826_v1 = vsel %vm601_vm1, %v6468_v42, %v6129_v19  ;;  %v6470_v54 = vrot.slane %v3047_v27, 4  ;;  %v3460_v19 = vmul.f32 %v2714_v15, %v3413_v17 }
  0x60   : > { %v712_v49 = vadd.f32 %v606_v22, %v491_v30  ;;  %v1047_v55 = vsel %vm1042_vm2, %v6469_v48, %v6131_v60  ;;  %v6132_v43 = vrot.slane %v3445_v51, 4  ;;  %v3464_v62 = vmul.f32 %v2780_v39, %v3413_v17  ;;  %2542 = vmatmul.msk.f32.gmra.mxu2 %vm2155_vm6, %v2130_v21  ;;  %v6472_v22 = vld [vmem:[#allocation27_spill] sm:$0xff] }
  0x61   : > { %v1268_v42 = vsel %vm1263_vm3, %v6470_v54, %v6130_v40  ;;  %v1842_v33 = vadd.f32 %v1763_v28, %v1621_v0  ;;  %v279_v27 = vmul.f32 %v2688_v5, %v6471_v32  ;;  %v3471_v30 = vmul.f32 %v2690_v6, %v3085_v50  ;;  %v6474_v32 = vld [vmem:[#allocation28_spill] sm:$0xff] }
  0x62   : > { %v932_v56 = vadd.f32 %v826_v1, %v712_v49  ;;  %v6473_v48 = vrot.slane %v6472_v22, 4  ;;  %v6134_v40 = vrot.slane %v3460_v19, 5  ;;  %v6137_v60 = vrot.slane %v3464_v62, 6 }
  0x63   : > { %v3482_v1 = vmul.f32 %v2692_v7, %v3085_v50  ;;  %v2063_v28 = vadd.f32 %v1984_v63, %v1842_v33  ;;  %v3487_v49 = vmul.f32 %v2694_v8, %v3126_v18  ;;  %v6475_v22 = vrot.slane %v6474_v32, 5  ;;  %v3500_v63 = vld [vmem:[%s2701_s8 + $0x78] sm:$0xff] }
  0x64   : > { %v1488_v54 = vsel %vm1263_vm3, %v6473_v48, %v6132_v43  ;;  %v1153_v21 = vadd.f32 %v1047_v55, %v932_v56  ;;  %v6476_v43 = vrot.slane %v3082_v37, 6  ;;  %6477 = vst [vmem:[#allocation29_spill] sm:$0xff] %v3500_v63  ;;  %v3505_v33 = vmul.f32 %v2696_v9, %v3126_v18 }
  0x65   : > { %v1709_v48 = vsel %vm1704_vm4, %v6475_v22, %v6134_v40  ;;  %v6146_v55 = vrot.slane %v3482_v1, 2  ;;  %v2103_v56 = vadd.f32 %v2921_v41, %v2063_v28  ;;  %v6478_v32 = vrot.slane %v3471_v30, 1  ;;  %v6479_v22 = vld [vmem:[#allocation32_spill] sm:$0xff] }
  0x66   : > { %v1930_v47 = vsel %vm1925_vm5, %v6476_v43, %v6137_v60  ;;  %v1374_v0 = vadd.f32 %v1268_v42, %v1153_v21  ;;  %v6480_v40 = vrot.slane %v6479_v22, 1  ;;  %v6145_v37 = vrot.slane %v3487_v49, 2  ;;  %v6481_v60 = vld [vmem:[#allocation34_spill] sm:$0xff] }
  0x67   : > { %v6482_v44 = vrot.slane %v6481_v60, 2  ;;  %v6144_v34 = vrot.slane %v3505_v33, 3  ;;  %v3522_v42 = vmul.f32 %v2710_v13, %v3126_v18  ;;  %v2139_v28 = vmax.f32 %v2103_v56, 0.0  ;;  %v6500_v18 = vld [vmem:[#allocation47_spill] sm:$0xff] }
  0x68   : > { %v403_v17 = vsel %vm380_vm0, %v6480_v40, %v6478_v32  ;;  %v1594_v21 = vadd.f32 %v1488_v54, %v1374_v0  ;;  %v6483_v40 = vld [vmem:[#allocation36_spill] sm:$0xff]  ;;  %v3541_v54 = vmul.f32 %v2714_v15, %v3500_v63 }
  0x69   : > { %v500_v43 = vadd.f32 %v403_v17, %v279_v27  ;;  %v624_v57 = vsel %vm601_vm1, %v6482_v44, %v6146_v55  ;;  %v6484_v32 = vrot.slane %v6483_v40, 2  ;;  %v3531_v27 = vmul.f32 %v2712_v14, %v3500_v63  ;;  %2551 = vmatmul.msk.f32.gmra.mxu3 %vm2155_vm6, %v2139_v28 }
  0x6a   : > { %v6486_v44 = vrot.slane %v3149_v31, 3  ;;  %v6147_v56 = vrot.slane %v3522_v42, 4  ;;  %6487 = vst [vmem:[#allocation28_spill] sm:$0xff] %v3541_v54  ;;  %v1815_v0 = vadd.f32 %v1709_v48, %v1594_v21  ;;  %v289_v31 = vmul.f32 %v2688_v5, %v2708_v12  ;;  %v6490_v48 = vld [vmem:[#allocation2_spill] sm:$0xff] }
  0x6b   : > { %v844_v17 = vsel %vm601_vm1, %v6484_v32, %v6145_v37  ;;  %6485 = vst [vmem:[#allocation27_spill] sm:$0xff] %v3531_v27  ;;  %v721_v60 = vadd.f32 %v624_v57, %v500_v43  ;;  %v6150_v40 = vrot.slane %v3531_v27, 4  ;;  %v3547_v57 = vmul.f32 %v2780_v39, %v3500_v63  ;;  %v6492_v37 = vld [vmem:[#allocation42_spill] sm:$0xff] }
  0x6c   : > { %v1065_v22 = vsel %vm1042_vm2, %v6486_v44, %v6144_v34  ;;  %v6489_v32 = vrot.slane %v3163_v35, 4  ;;  %v6151_v28 = vrot.slane %v3541_v54, 5  ;;  %v3559_v21 = vmul.f32 %v2690_v6, %v6490_v48 }
  0x6d   : > { %6488 = vst [vmem:[#allocation32_spill] sm:$0xff] %v3547_v57  ;;  %v941_v43 = vadd.f32 %v844_v17, %v721_v60  ;;  %v2036_v34 = vadd.f32 %v1930_v47, %v1815_v0  ;;  %v6493_v55 = vrot.slane %v6492_v37, 4  ;;  %v6156_v17 = vrot.slane %v3547_v57, 6  ;;  %v6496_v0 = vld [vmem:[#allocation8_spill] sm:$0xff] }
  0x6e   : > { %v1286_v44 = vsel %vm1263_vm3, %v6489_v32, %v6147_v56  ;;  %6491 = vst [vmem:[#allocation34_spill] sm:$0xff] %v3559_v21  ;;  %v3569_v35 = vmul.f32 %v2692_v7, %v6490_v48  ;;  %v6494_v32 = vld [vmem:[#allocation44_spill] sm:$0xff]  ;;  %v6164_v47 = vrot.slane %v3559_v21, 1  ;;  %v3579_v37 = vmul.f32 %v2694_v8, %v6496_v0 }
  0x6f   : > { %v1506_v12 = vsel %vm1263_vm3, %v6493_v55, %v6150_v40  ;;  %v1162_v60 = vadd.f32 %v1065_v22, %v941_v43  ;;  %v6495_v56 = vrot.slane %v6494_v32, 5  ;;  %v2076_v55 = vadd.f32 %v2921_v41, %v2036_v34  ;;  %v6497_v40 = vld [vmem:[#allocation46_spill] sm:$0xff]  ;;  %v3588_v43 = vld [vmem:[%s2701_s8 + $0xc8] sm:$0xff] }
  0x70   : > { %v6498_v48 = vrot.slane %v6497_v40, 6  ;;  %6499 = vst [vmem:[#allocation36_spill] sm:$0xff] %v3588_v43  ;;  %v6162_v32 = vrot.slane %v3569_v35, 2  ;;  %v6501_v54 = vrot.slane %v6500_v18, 1  ;;  %v6160_v57 = vrot.slane %v3579_v37, 2 }
  0x71   : > { %v1727_v63 = vsel %vm1704_vm4, %v6495_v56, %v6151_v28  ;;  %v3593_v56 = vmul.f32 %v2696_v9, %v6496_v0  ;;  %v1383_v28 = vadd.f32 %v1286_v44, %v1162_v60  ;;  %v3603_v40 = vmul.f32 %v2710_v13, %v6496_v0 }
  0x72   : > { %v1948_v22 = vsel %vm1925_vm5, %v6498_v48, %v6156_v17  ;;  %v423_v34 = vsel %vm380_vm0, %v6501_v54, %v6164_v47  ;;  %v2112_v48 = vmax.f32 %v2076_v55, 0.0  ;;  %v6502_v27 = vrot.slane %v3226_v52, 2 }
  0x73   : > { %v510_v17 = vadd.f32 %v423_v34, %v289_v31  ;;  %v6159_v60 = vrot.slane %v3593_v56, 3  ;;  %v1603_v21 = vadd.f32 %v1506_v12, %v1383_v28  ;;  %v6503_v18 = vrot.slane %v3236_v2, 2 }
  0x74   : > { %v644_v44 = vsel %vm601_vm1, %v6502_v27, %v6162_v32  ;;  %v6161_v0 = vrot.slane %v3603_v40, 4  ;;  %v3619_v31 = vmul.f32 %v2712_v14, %v3588_v43  ;;  %2524 = vmatmul.msk.f32.gmra.mxu0 %vm2155_vm6, %v2112_v48  ;;  %v6504_v27 = vrot.slane %v3240_v10, 3 }
  0x75   : > { %v864_v54 = vsel %vm601_vm1, %v6503_v18, %v6160_v57  ;;  %v731_v52 = vadd.f32 %v644_v44, %v510_v17  ;;  %v3629_v2 = vmul.f32 %v2714_v15, %v3588_v43  ;;  %v3633_v12 = vmul.f32 %v2780_v39, %v3588_v43 }
  0x76   : > { %v1085_v28 = vsel %vm1042_vm2, %v6504_v27, %v6159_v60  ;;  %v1824_v55 = vadd.f32 %v1727_v63, %v1603_v21  ;;  %v6505_v34 = vrot.slane %v3250_v11, 4  ;;  %v6163_v48 = vrot.slane %v3619_v31, 4  ;;  %v6506_v60 = vld [vmem:[#allocation13_spill] sm:$0xff] }
  0x77   : > { %v298_v10 = vmul.f32 %v2688_v5, %v2837_v61  ;;  %v951_v44 = vadd.f32 %v864_v54, %v731_v52  ;;  %v6168_v18 = vrot.slane %v3629_v2, 5  ;;  %v6167_v27 = vrot.slane %v3633_v12, 6  ;;  %v6510_v54 = vld [vmem:[#allocation19_spill] sm:$0xff] }
  0x78   : > { %v1306_v17 = vsel %vm1263_vm3, %v6505_v34, %v6161_v0  ;;  %v3647_v57 = vmul.f32 %v2690_v6, %v6506_v60  ;;  %v2045_v63 = vadd.f32 %v1948_v22, %v1824_v55  ;;  %v6508_v11 = vrot.slane %v3261_v3, 4  ;;  %v3655_v34 = vld [vmem:[%s2701_s8 + $0x110] sm:$0xff]  ;;  %v6511_v22 = vld [vmem:[#allocation49_spill] sm:$0xff] }
  0x79   : > { %6509 = vst [vmem:[#allocation42_spill] sm:$0xff] %v3655_v34  ;;  %v3659_v61 = vmul.f32 %v2692_v7, %v6506_v60  ;;  %v3663_v52 = vmul.f32 %v2694_v8, %v6510_v54  ;;  %v1172_v0 = vadd.f32 %v1085_v28, %v951_v44  ;;  %v6512_v55 = vrot.slane %v6511_v22, 5 }
  0x7a   : > { %6507 = vst [vmem:[#allocation2_spill] sm:$0xff] %v3647_v57  ;;  %v1526_v21 = vsel %vm1263_vm3, %v6508_v11, %v6163_v48  ;;  %v6513_v3 = vrot.slane %v3291_v29, 6  ;;  %v6169_v48 = vrot.slane %v3647_v57, 1  ;;  %v2085_v47 = vadd.f32 %v2921_v41, %v2045_v63 }
  0x7b   : > { %v1747_v32 = vsel %vm1704_vm4, %v6512_v55, %v6168_v18  ;;  %v6175_v43 = vrot.slane %v3659_v61, 2  ;;  %v6172_v28 = vrot.slane %v3663_v52, 2  ;;  %v3681_v44 = vmul.f32 %v2696_v9, %v6510_v54 }
  0x7c   : > { %v1968_v11 = vsel %vm1925_vm5, %v6513_v3, %v6167_v27  ;;  %v1393_v22 = vadd.f32 %v1306_v17, %v1172_v0  ;;  %v6514_v55 = vrot.slane %v3303_v38, 1  ;;  %v3690_v3 = vmul.f32 %v2710_v13, %v6510_v54 }
  0x7d   : > { %v3694_v63 = vmul.f32 %v2712_v14, %v3655_v34  ;;  %v2121_v27 = vmax.f32 %v2085_v47, 0.0  ;;  %v6515_v0 = vrot.slane %v3309_v23, 2  ;;  %v6516_v38 = vrot.slane %v3322_v25, 2 }
  0x7e   : > { %v441_v29 = vsel %vm380_vm0, %v6514_v55, %v6169_v48  ;;  %v1613_v54 = vadd.f32 %v1526_v21, %v1393_v22  ;;  %v6171_v48 = vrot.slane %v3681_v44, 3  ;;  %v6174_v57 = vrot.slane %v3690_v3, 4 }
  0x7f   : > { %v519_v18 = vadd.f32 %v441_v29, %v298_v10  ;;  %v662_v17 = vsel %vm601_vm1, %v6515_v0, %v6175_v43  ;;  %v882_v55 = vsel %vm601_vm1, %v6516_v38, %v6172_v28  ;;  %v6173_v47 = vrot.slane %v3694_v63, 4  ;;  %2533 = vmatmul.msk.f32.gmra.mxu1 %vm2155_vm6, %v2121_v27  ;;  %v3742_v28 = vld [vmem:[%s2701_s8 + $0x38] sm:$0xff] }
  0x80   : > { %v3712_v23 = vmul.f32 %v2714_v15, %v3655_v34  ;;  %v3716_v25 = vmul.f32 %v2780_v39, %v3655_v34  ;;  %v271_v21 = vmul.f32 %v2688_v5, %v2984_v58  ;;  %v1834_v22 = vadd.f32 %v1747_v32, %v1613_v54  ;;  %6522 = vst [vmem:[#allocation8_spill] sm:$0xff] %v3742_v28 }
  0x81   : > { %v740_v10 = vadd.f32 %v662_v17, %v519_v18  ;;  %v6518_v29 = vrot.slane %v3326_v36, 3  ;;  %v6519_v18 = vrot.slane %v3343_v46, 4  ;;  %v6520_v17 = vrot.slane %v3353_v20, 4  ;;  %v6521_v36 = vld [vmem:[#allocation24_spill] sm:$0xff] }
  0x82   : > { %6517 = vst [vmem:[#allocation44_spill] sm:$0xff] %v3712_v23  ;;  %v6186_v32 = vrot.slane %v3712_v23, 5  ;;  %v6179_v54 = vrot.slane %v3716_v25, 6  ;;  %v3746_v46 = vmul.f32 %v2692_v7, %v6521_v36 }
  0x83   : > { %v1103_v0 = vsel %vm1042_vm2, %v6518_v29, %v6171_v48  ;;  %v1324_v27 = vsel %vm1263_vm3, %v6519_v18, %v6174_v57  ;;  %v1544_v38 = vsel %vm1263_vm3, %v6520_v17, %v6173_v47  ;;  %v960_v58 = vadd.f32 %v882_v55, %v740_v10  ;;  %v6523_v18 = vld [vmem:[#allocation26_spill] sm:$0xff] }
  0x84   : > { %v3739_v29 = vmul.f32 %v2690_v6, %v6521_v36  ;;  %v2055_v48 = vadd.f32 %v1968_v11, %v1834_v22  ;;  %v3750_v20 = vmul.f32 %v2694_v8, %v6523_v18  ;;  %v3754_v55 = vmul.f32 %v2696_v9, %v6523_v18 }
  0x85   : > { %v1181_v10 = vadd.f32 %v1103_v0, %v960_v58  ;;  %v6524_v17 = vrot.slane %v3368_v24, 5  ;;  %v6525_v22 = vrot.slane %v3373_v59, 6  ;;  %v6185_v34 = vrot.slane %v3746_v46, 2 }
  0x86   : > { %v6180_v57 = vrot.slane %v3739_v29, 1  ;;  %v2095_v43 = vadd.f32 %v2921_v41, %v2055_v48  ;;  %v6184_v0 = vrot.slane %v3750_v20, 2  ;;  %v6181_v58 = vrot.slane %v3754_v55, 3 }
  0x87   : > { %v1765_v11 = vsel %vm1704_vm4, %v6524_v17, %v6186_v32  ;;  %v1986_v47 = vsel %vm1925_vm5, %v6525_v22, %v6179_v54  ;;  %v1402_v23 = vadd.f32 %v1324_v27, %v1181_v10  ;;  %v6526_v24 = vrot.slane %v3385_v4, 1 }
  0x88   : > { %v3778_v59 = vmul.f32 %v2710_v13, %v6523_v18  ;;  %v3782_v48 = vmul.f32 %v2712_v14, %v3742_v28  ;;  %v2131_v22 = vmax.f32 %v2095_v43, 0.0  ;;  %v6527_v27 = vrot.slane %v3401_v16, 2 }
  0x89   : > { %v387_v17 = vsel %vm380_vm0, %v6526_v24, %v6180_v57  ;;  %v6528_v4 = vrot.slane %v3405_v45, 2  ;;  %v1622_v18 = vadd.f32 %v1544_v38, %v1402_v23  ;;  %v6529_v57 = vrot.slane %v3417_v53, 3 }
  0x8a   : > { %v492_v54 = vadd.f32 %v387_v17, %v271_v21  ;;  %v608_v10 = vsel %vm601_vm1, %v6527_v27, %v6185_v34  ;;  %v6182_v21 = vrot.slane %v3778_v59, 4  ;;  %v6183_v17 = vrot.slane %v3782_v48, 4  ;;  %2543 = vmatmul.msk.f32.gmra.mxu2 %vm2155_vm6, %v2131_v22 }
  0x8b   : > { %v828_v24 = vsel %vm601_vm1, %v6528_v4, %v6184_v0  ;;  %v1049_v43 = vsel %vm1042_vm2, %v6529_v57, %v6181_v58  ;;  %v3804_v27 = vmul.f32 %v2714_v15, %v3742_v28  ;;  %v3808_v45 = vmul.f32 %v2780_v39, %v3742_v28  ;;  %v3852_v0 = vld [vmem:[%s2701_s8 + $0x80] sm:$0xff] }
  0x8c   : > { %v713_v16 = vadd.f32 %v608_v10, %v492_v54  ;;  %v280_v53 = vmul.f32 %v2688_v5, %v3085_v50  ;;  %v1843_v57 = vadd.f32 %v1765_v11, %v1622_v18  ;;  %v6530_v23 = vrot.slane %v3428_v26, 4  ;;  %v6532_v10 = vld [vmem:[#allocation30_spill] sm:$0xff]  ;;  %6536 = vst [vmem:[#allocation46_spill] sm:$0xff] %v3852_v0 }
  0x8d   : > { %v6531_v54 = vrot.slane %v3445_v51, 4  ;;  %v3824_v4 = vmul.f32 %v2690_v6, %v6532_v10  ;;  %v6187_v50 = vrot.slane %v3804_v27, 5  ;;  %v6188_v11 = vrot.slane %v3808_v45, 6 }
  0x8e   : > { %v1270_v38 = vsel %vm1263_vm3, %v6530_v23, %v6182_v21  ;;  %v933_v58 = vadd.f32 %v828_v24, %v713_v16  ;;  %v3830_v26 = vmul.f32 %v2692_v7, %v6532_v10  ;;  %v2064_v18 = vadd.f32 %v1986_v47, %v1843_v57  ;;  %v6533_v21 = vld [vmem:[#allocation39_spill] sm:$0xff] }
  0x8f   : > { %v1490_v22 = vsel %vm1263_vm3, %v6531_v54, %v6183_v17  ;;  %v6189_v23 = vrot.slane %v3824_v4, 1  ;;  %v3835_v51 = vmul.f32 %v2694_v8, %v6533_v21  ;;  %v3839_v54 = vmul.f32 %v2696_v9, %v6533_v21 }
  0x90   : > { %v1154_v24 = vadd.f32 %v1049_v43, %v933_v58  ;;  %v6534_v16 = vrot.slane %v3460_v19, 5  ;;  %v6535_v47 = vrot.slane %v3464_v62, 6  ;;  %v6192_v34 = vrot.slane %v3830_v26, 2 }
  0x91   : > { %v2104_v32 = vadd.f32 %v2921_v41, %v2064_v18  ;;  %v6537_v58 = vrot.slane %v3471_v30, 1  ;;  %v6191_v43 = vrot.slane %v3835_v51, 2  ;;  %v3870_v18 = vmul.f32 %v2710_v13, %v6533_v21 }
  0x92   : > { %v1711_v17 = vsel %vm1704_vm4, %v6534_v16, %v6187_v50  ;;  %v1932_v57 = vsel %vm1925_vm5, %v6535_v47, %v6188_v11  ;;  %v6190_v16 = vrot.slane %v3839_v54, 3  ;;  %v1375_v62 = vadd.f32 %v1270_v38, %v1154_v24 }
  0x93   : > { %v405_v19 = vsel %vm380_vm0, %v6537_v58, %v6189_v23  ;;  %v6538_v47 = vrot.slane %v3482_v1, 2  ;;  %v2140_v30 = vmax.f32 %v2104_v32, 0.0  ;;  %v6539_v58 = vrot.slane %v3487_v49, 2 }
  0x94   : > { %v501_v50 = vadd.f32 %v405_v19, %v280_v53  ;;  %v6540_v53 = vrot.slane %v3505_v33, 3  ;;  %v3884_v1 = vmul.f32 %v2712_v14, %v3852_v0  ;;  %v1595_v24 = vadd.f32 %v1490_v22, %v1375_v62  ;;  %v6542_v22 = vld [vmem:[#allocation7_spill] sm:$0xff] }
  0x95   : > { %v626_v11 = vsel %vm601_vm1, %v6538_v47, %v6192_v34  ;;  %v846_v23 = vsel %vm601_vm1, %v6539_v58, %v6191_v43  ;;  %v6195_v32 = vrot.slane %v3870_v18, 4  ;;  %v3889_v19 = vmul.f32 %v2714_v15, %v3852_v0  ;;  %2552 = vmatmul.msk.f32.gmra.mxu3 %vm2155_vm6, %v2140_v30  ;;  %v2586_v47 = vld [vmem:[%s2701_s8 + $0xa8] sm:$0xff] }
  0x96   : > { %v1067_v38 = vsel %vm1042_vm2, %v6540_v53, %v6190_v16  ;;  %v722_v21 = vadd.f32 %v626_v11, %v501_v50  ;;  %v6196_v49 = vrot.slane %v3884_v1, 4  ;;  %v3895_v33 = vmul.f32 %v2780_v39, %v3852_v0  ;;  %v6544_v39 = vld [vmem:[#allocation27_spill] sm:$0xff] }
  0x97   : > { %v290_v58 = vmul.f32 %v2586_v47, %v2688_v5  ;;  %v3901_v50 = vmul.f32 %v2690_v6, %v6542_v22  ;;  %v1816_v11 = vadd.f32 %v1711_v17, %v1595_v24  ;;  %v6543_v30 = vrot.slane %v3522_v42, 4  ;;  %v6546_v24 = vld [vmem:[#allocation28_spill] sm:$0xff] }
  0x98   : > { %6541 = vst [vmem:[#allocation47_spill] sm:$0xff] %v3895_v33  ;;  %v942_v62 = vadd.f32 %v846_v23, %v722_v21  ;;  %v6197_v16 = vrot.slane %v3889_v19, 5  ;;  %v6545_v43 = vrot.slane %v6544_v39, 4  ;;  %v6201_v34 = vrot.slane %v3895_v33, 6  ;;  %v6549_v39 = vld [vmem:[#allocation48_spill] sm:$0xff] }
  0x99   : > { %v1288_v53 = vsel %vm1263_vm3, %v6543_v30, %v6195_v32  ;;  %v3918_v17 = vmul.f32 %v2692_v7, %v6542_v22  ;;  %v2037_v23 = vadd.f32 %v1932_v57, %v1816_v11  ;;  %v6547_v21 = vrot.slane %v6546_v24, 5  ;;  %v3926_v32 = vld [vmem:[%s2701_s8 + $0xd0] sm:$0xff] }
  0x9a   : > { %v1508_v47 = vsel %vm1263_vm3, %v6545_v43, %v6196_v49  ;;  %v1163_v42 = vadd.f32 %v1067_v38, %v942_v62  ;;  %6548 = vst [vmem:[#allocation13_spill] sm:$0xff] %v3926_v32  ;;  %v3930_v43 = vmul.f32 %v2694_v8, %v6549_v39  ;;  %v6550_v49 = vld [vmem:[#allocation32_spill] sm:$0xff]  ;;  %v6552_v57 = vrot.slane %v3901_v50, 1  ;;  %v6553_v38 = vld [vmem:[#allocation34_spill] sm:$0xff] }
  0x9b   : > { %v1729_v30 = vsel %vm1704_vm4, %v6547_v21, %v6197_v16  ;;  %v6551_v0 = vrot.slane %v6550_v49, 6  ;;  %v6554_v11 = vrot.slane %v6553_v38, 1  ;;  %v6202_v24 = vrot.slane %v3918_v17, 2 }
  0x9c   : > { %v3945_v21 = vmul.f32 %v2696_v9, %v6549_v39  ;;  %v2077_v16 = vadd.f32 %v2921_v41, %v2037_v23  ;;  %v1384_v28 = vadd.f32 %v1288_v53, %v1163_v42  ;;  %v6207_v49 = vrot.slane %v3930_v43, 2 }
  0x9d   : > { %v1950_v22 = vsel %vm1925_vm5, %v6551_v0, %v6201_v34  ;;  %v425_v62 = vsel %vm380_vm0, %v6554_v11, %v6552_v57  ;;  %v6555_v0 = vrot.slane %v3569_v35, 2  ;;  %v3957_v11 = vmul.f32 %v2710_v13, %v6549_v39 }
  0x9e   : > { %v511_v33 = vadd.f32 %v425_v62, %v290_v58  ;;  %v6203_v57 = vrot.slane %v3945_v21, 3  ;;  %v3961_v34 = vmul.f32 %v2712_v14, %v3926_v32  ;;  %v2113_v53 = vmax.f32 %v2077_v16, 0.0 }
  0x9f   : > { %v646_v38 = vsel %vm601_vm1, %v6555_v0, %v6202_v24  ;;  %v1604_v58 = vadd.f32 %v1508_v47, %v1384_v28  ;;  %v6556_v42 = vrot.slane %v3579_v37, 2  ;;  %v6557_v62 = vrot.slane %v3593_v56, 3 }
  0xa0   : > { %v732_v23 = vadd.f32 %v646_v38, %v511_v33  ;;  %v6205_v0 = vrot.slane %v3957_v11, 4  ;;  %v6204_v24 = vrot.slane %v3961_v34, 4  ;;  %v3977_v28 = vmul.f32 %v2714_v15, %v3926_v32  ;;  %2525 = vmatmul.msk.f32.gmra.mxu0 %vm2155_vm6, %v2113_v53  ;;  %v3983_v33 = vld [vmem:[%s6004_s1 + $0x8] ss:$0 sm:$0xff] }
  0xa1   : > { %v866_v35 = vsel %vm601_vm1, %v6556_v42, %v6207_v49  ;;  %v1087_v39 = vsel %vm1042_vm2, %v6557_v62, %v6203_v57  ;;  %v1825_v16 = vadd.f32 %v1729_v30, %v1604_v58  ;;  %v3987_v56 = vmul.f32 %v3983_v33, %v3926_v32  ;;  %v6561_v42 = vld [vmem:[#allocation18_spill] sm:$0xff] }
  0xa2   : > { %6558 = vst [vmem:[#allocation19_spill] sm:$0xff] %v3977_v28  ;;  %v952_v37 = vadd.f32 %v866_v35, %v732_v23  ;;  %v299_v47 = vmul.f32 %v2688_v5, %v6506_v60  ;;  %v6559_v38 = vrot.slane %v3603_v40, 4  ;;  %v6560_v53 = vrot.slane %v3619_v31, 4 }
  0xa3   : > { %v6206_v23 = vrot.slane %v3977_v28, 5  ;;  %v4004_v35 = vmul.f32 %v2690_v6, %v6561_v42  ;;  %v2046_v60 = vadd.f32 %v1950_v22, %v1825_v16  ;;  %v6211_v57 = vrot.slane %v3987_v56, 6 }
  0xa4   : > { %v1308_v30 = vsel %vm1263_vm3, %v6559_v38, %v6205_v0  ;;  %v1528_v58 = vsel %vm1263_vm3, %v6560_v53, %v6204_v24  ;;  %v1173_v62 = vadd.f32 %v1087_v39, %v952_v37  ;;  %v4009_v40 = vmul.f32 %v2692_v7, %v6561_v42  ;;  %v6563_v24 = vld [vmem:[#allocation50_spill] sm:$0xff]  ;;  %v4032_v42 = vld [vmem:[%s2701_s8 + $0x118] sm:$0xff] }
  0xa5   : > { %v6562_v31 = vrot.slane %v3629_v2, 5  ;;  %v6217_v53 = vrot.slane %v4004_v35, 1  ;;  %v4019_v0 = vmul.f32 %v2694_v8, %v6563_v24  ;;  %v4023_v22 = vmul.f32 %v2696_v9, %v6563_v24  ;;  %6565 = vst [vmem:[#allocation49_spill] sm:$0xff] %v4032_v42 }
  0xa6   : > { %v2086_v39 = vadd.f32 %v2921_v41, %v2046_v60  ;;  %v1394_v16 = vadd.f32 %v1308_v30, %v1173_v62  ;;  %v6564_v37 = vrot.slane %v3633_v12, 6  ;;  %v4044_v30 = vmul.f32 %v2710_v13, %v6563_v24 }
  0xa7   : > { %v1749_v38 = vsel %vm1704_vm4, %v6562_v31, %v6206_v23  ;;  %v6216_v31 = vrot.slane %v4009_v40, 2  ;;  %v6566_v23 = vld [vmem:[#allocation2_spill] sm:$0xff]  ;;  %v6214_v28 = vrot.slane %v4019_v0, 2  ;;  %v6212_v41 = vrot.slane %v4023_v22, 3 }
  0xa8   : > { %v1970_v2 = vsel %vm1925_vm5, %v6564_v37, %v6211_v57  ;;  %v6567_v49 = vrot.slane %v6566_v23, 1  ;;  %v2122_v12 = vmax.f32 %v2086_v39, 0.0  ;;  %v1614_v60 = vadd.f32 %v1528_v58, %v1394_v16 }
  0xa9   : > { %v6568_v37 = vrot.slane %v3659_v61, 2  ;;  %v6570_v24 = vrot.slane %v3681_v44, 3  ;;  %v4073_v16 = vmul.f32 %v3983_v33, %v4032_v42  ;;  %v6571_v44 = vrot.slane %v3690_v3, 4 }
  0xaa   : > { %v443_v32 = vsel %vm380_vm0, %v6567_v49, %v6217_v53  ;;  %v6569_v49 = vrot.slane %v3663_v52, 2  ;;  %2534 = vmatmul.msk.f32.gmra.mxu1 %vm2155_vm6, %v2122_v12  ;;  %v1835_v61 = vadd.f32 %v1749_v38, %v1614_v60  ;;  %v4069_v52 = vmul.f32 %v2714_v15, %v4032_v42  ;;  %v6572_v38 = vld [vmem:[#allocation25_spill] sm:$0xff]  ;;  %v4120_v53 = vld [vmem:[%s2701_s8 + $0x40] sm:$0xff] }
  0xab   : > { %v520_v62 = vadd.f32 %v443_v32, %v299_v47  ;;  %v664_v57 = vsel %vm601_vm1, %v6568_v37, %v6216_v31  ;;  %v1105_v39 = vsel %vm1042_vm2, %v6570_v24, %v6212_v41  ;;  %v6213_v32 = vrot.slane %v4044_v30, 4  ;;  %6578 = vst [vmem:[#allocation24_spill] sm:$0xff] %v4120_v53 }
  0xac   : > { %v884_v23 = vsel %vm601_vm1, %v6569_v49, %v6214_v28  ;;  %v4064_v47 = vmul.f32 %v2712_v14, %v4032_v42  ;;  %v4085_v12 = vmul.f32 %v2690_v6, %v6572_v38  ;;  %v2056_v60 = vadd.f32 %v1970_v2, %v1835_v61  ;;  %v6574_v28 = vld [vmem:[#allocation51_spill] sm:$0xff] }
  0xad   : > { %v741_v58 = vadd.f32 %v664_v57, %v520_v62  ;;  %v1326_v37 = vsel %vm1263_vm3, %v6571_v44, %v6213_v32  ;;  %v272_v57 = vmul.f32 %v2688_v5, %v6521_v36  ;;  %v6220_v24 = vrot.slane %v4069_v52, 5 }
  0xae   : > { %v6215_v49 = vrot.slane %v4064_v47, 4  ;;  %v6222_v41 = vrot.slane %v4073_v16, 6  ;;  %v6573_v3 = vrot.slane %v3694_v63, 4  ;;  %v6221_v32 = vrot.slane %v4085_v12, 1 }
  0xaf   : > { %v961_v62 = vadd.f32 %v884_v23, %v741_v58  ;;  %v4097_v36 = vmul.f32 %v2692_v7, %v6572_v38  ;;  %v4101_v2 = vmul.f32 %v2694_v8, %v6574_v28  ;;  %v4106_v23 = vld [vmem:[%s6005_s2] ss:$0 sm:$0xff]  ;;  %v6575_v58 = vld [vmem:[#allocation44_spill] sm:$0xff]  ;;  %v6577_v38 = vrot.slane %v3716_v25, 6 }
  0xb0   : > { %v1546_v44 = vsel %vm1263_vm3, %v6573_v3, %v6215_v49  ;;  %v2096_v61 = vadd.f32 %v4106_v23, %v2056_v60  ;;  %v6576_v3 = vrot.slane %v6575_v58, 5  ;;  %v6579_v42 = vrot.slane %v3739_v29, 1 }
  0xb1   : > { %v1182_v63 = vadd.f32 %v1105_v39, %v961_v62  ;;  %v1988_v31 = vsel %vm1925_vm5, %v6577_v38, %v6222_v41  ;;  %v6225_v60 = vrot.slane %v4097_v36, 2  ;;  %v6224_v62 = vrot.slane %v4101_v2, 2 }
  0xb2   : > { %v1767_v49 = vsel %vm1704_vm4, %v6576_v3, %v6220_v24  ;;  %v389_v39 = vsel %vm380_vm0, %v6579_v42, %v6221_v32  ;;  %v4131_v58 = vmul.f32 %v2696_v9, %v6574_v28  ;;  %v2132_v3 = vmax.f32 %v2096_v61, 0.0 }
  0xb3   : > { %v1403_v25 = vadd.f32 %v1326_v37, %v1182_v63  ;;  %v493_v24 = vadd.f32 %v389_v39, %v272_v57  ;;  %v4135_v38 = vmul.f32 %v2710_v13, %v6574_v28  ;;  %v6580_v29 = vrot.slane %v3746_v46, 2 }
  0xb4   : > { %v6581_v32 = vrot.slane %v3750_v20, 2  ;;  %v6223_v61 = vrot.slane %v4131_v58, 3  ;;  %v4150_v37 = vmul.f32 %v2712_v14, %v4120_v53  ;;  %2544 = vmatmul.msk.f32.gmra.mxu2 %vm2155_vm6, %v2132_v3  ;;  %v4156_v63 = vmul.f32 %v2714_v15, %v4120_v53 }
  0xb5   : > { %v610_v42 = vsel %vm601_vm1, %v6580_v29, %v6225_v60  ;;  %v1623_v28 = vadd.f32 %v1546_v44, %v1403_v25  ;;  %v6229_v46 = vrot.slane %v4135_v38, 4  ;;  %v6582_v20 = vrot.slane %v3754_v55, 3  ;;  %v6585_v60 = vld [vmem:[#allocation37_spill] sm:$0xff] }
  0xb6   : > { %v830_v41 = vsel %vm601_vm1, %v6581_v32, %v6224_v62  ;;  %v714_v57 = vadd.f32 %v610_v42, %v493_v24  ;;  %v6226_v39 = vrot.slane %v4150_v37, 4  ;;  %v4166_v3 = vmul.f32 %v3983_v33, %v4120_v53 }
  0xb7   : > { %v1051_v32 = vsel %vm1042_vm2, %v6582_v20, %v6223_v61  ;;  %v281_v24 = vmul.f32 %v2688_v5, %v6532_v10  ;;  %v1844_v44 = vadd.f32 %v1767_v49, %v1623_v28  ;;  %v6583_v29 = vrot.slane %v3778_v59, 4 }
  0xb8   : > { %v934_v25 = vadd.f32 %v830_v41, %v714_v57  ;;  %v6227_v42 = vrot.slane %v4156_v63, 5  ;;  %v6584_v20 = vrot.slane %v3782_v48, 4  ;;  %v6228_v62 = vrot.slane %v4166_v3, 6  ;;  %v4196_v57 = vld [vmem:[%s2701_s8 + $0x88] sm:$0xff] }
  0xb9   : > { %v1272_v55 = vsel %vm1263_vm3, %v6583_v29, %v6229_v46  ;;  %v4184_v10 = vmul.f32 %v2690_v6, %v6585_v60  ;;  %v4188_v41 = vmul.f32 %v2692_v7, %v6585_v60  ;;  %v2065_v59 = vadd.f32 %v1988_v31, %v1844_v44  ;;  %6587 = vst [vmem:[#allocation26_spill] sm:$0xff] %v4196_v57  ;;  %v6588_v29 = vld [vmem:[#allocation29_spill] sm:$0xff] }
  0xba   : > { %v1492_v61 = vsel %vm1263_vm3, %v6584_v20, %v6226_v39  ;;  %v1155_v49 = vadd.f32 %v1051_v32, %v934_v25  ;;  %v6586_v28 = vrot.slane %v3804_v27, 5  ;;  %v4200_v20 = vmul.f32 %v2694_v8, %v6588_v29 }
  0xbb   : > { %v6589_v39 = vrot.slane %v3808_v45, 6  ;;  %v6230_v31 = vrot.slane %v4184_v10, 1  ;;  %v6231_v32 = vrot.slane %v4188_v41, 2  ;;  %v4211_v27 = vmul.f32 %v2696_v9, %v6588_v29 }
  0xbc   : > { %v1713_v48 = vsel %vm1704_vm4, %v6586_v28, %v6227_v42  ;;  %v2105_v44 = vadd.f32 %v4106_v23, %v2065_v59  ;;  %v1376_v25 = vadd.f32 %v1272_v55, %v1155_v49  ;;  %v4217_v42 = vmul.f32 %v2710_v13, %v6588_v29 }
  0xbd   : > { %v1934_v60 = vsel %vm1925_vm5, %v6589_v39, %v6228_v62  ;;  %v6590_v45 = vrot.slane %v3824_v4, 1  ;;  %v6591_v62 = vrot.slane %v3830_v26, 2  ;;  %v6237_v55 = vrot.slane %v4211_v27, 3 }
  0xbe   : > { %v4232_v49 = vmul.f32 %v2712_v14, %v4196_v57  ;;  %v2141_v29 = vmax.f32 %v2105_v44, 0.0  ;;  %v1596_v46 = vadd.f32 %v1492_v61, %v1376_v25  ;;  %v6593_v4 = vrot.slane %v4200_v20, 2  ;;  %v2589_v25 = vld [vmem:[%s2701_s8 + $0xb0] sm:$0xff] }
  0xbf   : > { %v407_v39 = vsel %vm380_vm0, %v6590_v45, %v6230_v31  ;;  %v628_v59 = vsel %vm601_vm1, %v6591_v62, %v6231_v32  ;;  %v6594_v45 = vrot.slane %v3835_v51, 2  ;;  %v6595_v26 = vrot.slane %v3839_v54, 3 }
  0xc0   : > { %6592 = vst [vmem:[#allocation30_spill] sm:$0xff] %v4232_v49  ;;  %v502_v28 = vadd.f32 %v407_v39, %v281_v24  ;;  %v6235_v32 = vrot.slane %v4217_v42, 4  ;;  %v6234_v53 = vrot.slane %v4232_v49, 4  ;;  %v4248_v61 = vmul.f32 %v2714_v15, %v4196_v57  ;;  %2553 = vmatmul.msk.f32.gmra.mxu3 %vm2155_vm6, %v2141_v29 }
  0xc1   : > { %v848_v31 = vsel %vm601_vm1, %v6594_v45, %v6593_v4  ;;  %v1069_v62 = vsel %vm1042_vm2, %v6595_v26, %v6237_v55  ;;  %v1817_v24 = vadd.f32 %v1713_v48, %v1596_v46  ;;  %v4253_v44 = vmul.f32 %v3983_v33, %v4196_v57 }
  0xc2   : > { %6596 = vst [vmem:[#allocation39_spill] sm:$0xff] %v4248_v61  ;;  %v723_v51 = vadd.f32 %v628_v59, %v502_v28  ;;  %v291_v54 = vmul.f32 %v2589_v25, %v2688_v5  ;;  %v6597_v39 = vrot.slane %v3870_v18, 4  ;;  %v6598_v45 = vrot.slane %v3884_v1, 4  ;;  %v4269_v28 = vld [vmem:[%s2701_s8 + $0xb8] sm:$0xff] }
  0xc3   : > { %v6236_v48 = vrot.slane %v4248_v61, 5  ;;  %v4273_v59 = vmul.f32 %v4269_v28, %v2690_v6  ;;  %v2038_v29 = vadd.f32 %v1934_v60, %v1817_v24  ;;  %v6247_v18 = vrot.slane %v4253_v44, 6 }
  0xc4   : > { %v1290_v4 = vsel %vm1263_vm3, %v6597_v39, %v6235_v32  ;;  %v1510_v46 = vsel %vm1263_vm3, %v6598_v45, %v6234_v53  ;;  %v943_v26 = vadd.f32 %v848_v31, %v723_v51  ;;  %v4278_v25 = vmul.f32 %v4269_v28, %v2692_v7  ;;  %v6600_v53 = vld [vmem:[#allocation36_spill] sm:$0xff]  ;;  %v6601_v51 = vld [vmem:[#allocation47_spill] sm:$0xff] }
  0xc5   : > { %v6599_v1 = vrot.slane %v3889_v19, 5  ;;  %v6242_v45 = vrot.slane %v4273_v59, 1  ;;  %v4288_v32 = vmul.f32 %v2694_v8, %v6600_v53  ;;  %v4292_v60 = vmul.f32 %v2696_v9, %v6600_v53 }
  0xc6   : > { %v2078_v31 = vadd.f32 %v4106_v23, %v2038_v29  ;;  %v1164_v24 = vadd.f32 %v1069_v62, %v943_v26  ;;  %v6602_v19 = vrot.slane %v6601_v51, 6  ;;  %v6603_v55 = vrot.slane %v3901_v50, 1 }
  0xc7   : > { %v1731_v39 = vsel %vm1704_vm4, %v6599_v1, %v6236_v48  ;;  %v6246_v48 = vrot.slane %v4278_v25, 2  ;;  %v6244_v61 = vrot.slane %v4288_v32, 2  ;;  %v6243_v49 = vrot.slane %v4292_v60, 3 }
  0xc8   : > { %v1952_v1 = vsel %vm1925_vm5, %v6602_v19, %v6247_v18  ;;  %v427_v57 = vsel %vm380_vm0, %v6603_v55, %v6242_v45  ;;  %v4310_v62 = vmul.f32 %v2710_v13, %v6600_v53  ;;  %v2114_v29 = vmax.f32 %v2078_v31, 0.0  ;;  %v6612_v18 = vld [vmem:[#allocation42_spill] sm:$0xff] }
  0xc9   : > { %v1385_v26 = vadd.f32 %v1290_v4, %v1164_v24  ;;  %v512_v51 = vadd.f32 %v427_v57, %v291_v54  ;;  %v6605_v19 = vrot.slane %v3918_v17, 2  ;;  %v6606_v55 = vrot.slane %v3930_v43, 2  ;;  %v4329_v54 = vld [vmem:[%s2701_s8 + $0xd8] sm:$0xff] }
  0xca   : > { %6604 = vst [vmem:[#allocation7_spill] sm:$0xff] %v4310_v62  ;;  %v6607_v53 = vrot.slane %v3945_v21, 3  ;;  %v6245_v57 = vrot.slane %v4310_v62, 4  ;;  %v4333_v17 = vmul.f32 %v4329_v54, %v2712_v14  ;;  %2526 = vmatmul.msk.f32.gmra.mxu0 %vm2155_vm6, %v2114_v29  ;;  %v4338_v24 = vmul.f32 %v4329_v54, %v2714_v15  ;;  %v4353_v29 = vld [vmem:[%s2701_s8 + $0x100] sm:$0xff] }
  0xcb   : > { %v648_v50 = vsel %vm601_vm1, %v6605_v19, %v6246_v48  ;;  %v868_v45 = vsel %vm601_vm1, %v6606_v55, %v6244_v61  ;;  %6608 = vst [vmem:[#allocation27_spill] sm:$0xff] %v4329_v54  ;;  %v1605_v31 = vadd.f32 %v1510_v46, %v1385_v26  ;;  %v4342_v21 = vmul.f32 %v4329_v54, %v3983_v33  ;;  %v4386_v54 = vld [vmem:[%s2701_s8 + $0x120] sm:$0xff] }
  0xcc   : > { %v1089_v4 = vsel %vm1042_vm2, %v6607_v53, %v6243_v49  ;;  %6609 = vst [vmem:[#allocation28_spill] sm:$0xff] %v4333_v17  ;;  %v733_v43 = vadd.f32 %v648_v50, %v512_v51  ;;  %v6610_v19 = vrot.slane %v3957_v11, 4  ;;  %v6248_v53 = vrot.slane %v4333_v17, 4  ;;  %v2592_v49 = vld [vmem:[%s2701_s8 + $0xf8] sm:$0xff] }
  0xcd   : > { %v300_v46 = vmul.f32 %v2592_v49, %v2688_v5  ;;  %v4357_v26 = vmul.f32 %v4353_v29, %v2690_v6  ;;  %v1826_v51 = vadd.f32 %v1731_v39, %v1605_v31  ;;  %v6258_v61 = vrot.slane %v4338_v24, 5  ;;  %6617 = vst [vmem:[#allocation48_spill] sm:$0xff] %v4386_v54 }
  0xce   : > { %v1310_v55 = vsel %vm1263_vm3, %v6610_v19, %v6245_v57  ;;  %v953_v50 = vadd.f32 %v868_v45, %v733_v43  ;;  %v6611_v19 = vrot.slane %v3961_v34, 4  ;;  %v4369_v48 = vmul.f32 %v4353_v29, %v2692_v7  ;;  %v6613_v43 = vld [vmem:[#allocation19_spill] sm:$0xff] }
  0xcf   : > { %v4373_v39 = vmul.f32 %v2694_v8, %v6612_v18  ;;  %v2047_v45 = vadd.f32 %v1952_v1, %v1826_v51  ;;  %v6614_v11 = vrot.slane %v6613_v43, 5  ;;  %v6618_v17 = vrot.slane %v4357_v26, 1 }
  0xd0   : > { %v1530_v57 = vsel %vm1263_vm3, %v6611_v19, %v6248_v53  ;;  %v1174_v31 = vadd.f32 %v1089_v4, %v953_v50  ;;  %v6615_v19 = vrot.slane %v4342_v21, 6  ;;  %v6616_v53 = vrot.slane %v3987_v56, 6 }
  0xd1   : > { %v1751_v34 = vsel %vm1704_vm4, %v6614_v11, %v6258_v61  ;;  %v6619_v62 = vrot.slane %v4004_v35, 1  ;;  %v6255_v4 = vrot.slane %v4369_v48, 2  ;;  %v6254_v51 = vrot.slane %v4373_v39, 2 }
  0xd2   : > { %v1972_v49 = vsel %vm1925_vm5, %v6616_v53, %v6615_v19  ;;  %v4397_v50 = vmul.f32 %v2696_v9, %v6612_v18  ;;  %v2087_v56 = vadd.f32 %v4106_v23, %v2047_v45  ;;  %v1395_v11 = vadd.f32 %v1310_v55, %v1174_v31 }
  0xd3   : > { %v445_v1 = vsel %vm380_vm0, %v6619_v62, %v6618_v17  ;;  %v4402_v43 = vmul.f32 %v2710_v13, %v6612_v18  ;;  %v6620_v35 = vrot.slane %v4009_v40, 2  ;;  %v6621_v17 = vrot.slane %v4019_v0, 2 }
  0xd4   : > { %v521_v53 = vadd.f32 %v445_v1, %v300_v46  ;;  %v6253_v55 = vrot.slane %v4397_v50, 3  ;;  %v4417_v46 = vmul.f32 %v2712_v14, %v4386_v54  ;;  %v2123_v18 = vmax.f32 %v2087_v56, 0.0 }
  0xd5   : > { %v666_v62 = vsel %vm601_vm1, %v6620_v35, %v6255_v4  ;;  %v886_v19 = vsel %vm601_vm1, %v6621_v17, %v6254_v51  ;;  %v1615_v45 = vadd.f32 %v1530_v57, %v1395_v11  ;;  %v6257_v40 = vrot.slane %v4402_v43, 4 }
  0xd6   : > { %v742_v31 = vadd.f32 %v666_v62, %v521_v53  ;;  %v6622_v1 = vrot.slane %v4023_v22, 3  ;;  %v6256_v35 = vrot.slane %v4417_v46, 4  ;;  %v4428_v17 = vmul.f32 %v2714_v15, %v4386_v54  ;;  %2535 = vmatmul.msk.f32.gmra.mxu1 %vm2155_vm6, %v2123_v18  ;;  %v2594_v62 = vld [vmem:[%s2701_s8 + $0x20] sm:$0xff] }
  0xd7   : > { %v4432_v56 = vmul.f32 %v3983_v33, %v4386_v54  ;;  %v1836_v57 = vadd.f32 %v1751_v34, %v1615_v45  ;;  %v6623_v22 = vrot.slane %v4044_v30, 4 }
  0xd8   : > { %v1107_v0 = vsel %vm1042_vm2, %v6622_v1, %v6253_v55  ;;  %v962_v11 = vadd.f32 %v886_v19, %v742_v31  ;;  %v273_v1 = vmul.f32 %v2594_v62, %v2688_v5  ;;  %v6624_v55 = vrot.slane %v4064_v47, 4  ;;  %v4450_v19 = vld [vmem:[%s2701_s8 + $0x28] sm:$0xff]  ;;  %v6626_v47 = vld [vmem:[#allocation8_spill] sm:$0xff] }
  0xd9   : > { %v1328_v53 = vsel %vm1263_vm3, %v6623_v22, %v6257_v40  ;;  %v6260_v4 = vrot.slane %v4428_v17, 5  ;;  %v6259_v34 = vrot.slane %v4432_v56, 6  ;;  %v4454_v30 = vmul.f32 %v4450_v19, %v2690_v6 }
  0xda   : > { %v1548_v51 = vsel %vm1263_vm3, %v6624_v55, %v6256_v35  ;;  %v2057_v18 = vadd.f32 %v1972_v49, %v1836_v57  ;;  %v1183_v45 = vadd.f32 %v1107_v0, %v962_v11  ;;  %v4458_v31 = vmul.f32 %v4450_v19, %v2692_v7 }
  0xdb   : > { %6625 = vst [vmem:[#allocation32_spill] sm:$0xff] %v4454_v30  ;;  %v4462_v55 = vmul.f32 %v2694_v8, %v6626_v47  ;;  %v6627_v22 = vrot.slane %v4069_v52, 5  ;;  %v6628_v35 = vrot.slane %v4073_v16, 6  ;;  %v6261_v0 = vrot.slane %v4454_v30, 1 }
  0xdc   : > { %v4477_v57 = vmul.f32 %v2696_v9, %v6626_v47  ;;  %v2097_v11 = vadd.f32 %v4106_v23, %v2057_v18  ;;  %v1404_v40 = vadd.f32 %v1328_v53, %v1183_v45  ;;  %v6267_v61 = vrot.slane %v4458_v31, 2 }
  0xdd   : > { %v1769_v62 = vsel %vm1704_vm4, %v6627_v22, %v6260_v4  ;;  %v1990_v49 = vsel %vm1925_vm5, %v6628_v35, %v6259_v34  ;;  %v6629_v22 = vrot.slane %v4085_v12, 1  ;;  %v4490_v34 = vmul.f32 %v2710_v13, %v6626_v47  ;;  %v4493_v4 = vld [vmem:[%s2701_s8 + $0x48] sm:$0xff] }
  0xde   : > { %6630 = vst [vmem:[#allocation34_spill] sm:$0xff] %v4493_v4  ;;  %v4497_v53 = vmul.f32 %v4493_v4, %v2712_v14  ;;  %v2133_v18 = vmax.f32 %v2097_v11, 0.0  ;;  %v1624_v45 = vadd.f32 %v1548_v51, %v1404_v40  ;;  %v6632_v12 = vrot.slane %v4097_v36, 2 }
  0xdf   : > { %v391_v16 = vsel %vm380_vm0, %v6629_v22, %v6261_v0  ;;  %v6633_v47 = vrot.slane %v4462_v55, 2  ;;  %v6634_v0 = vrot.slane %v4101_v2, 2  ;;  %v6635_v54 = vrot.slane %v4477_v57, 3 }
  0xe0   : > { %6631 = vst [vmem:[#allocation18_spill] sm:$0xff] %v4497_v53  ;;  %v494_v52 = vadd.f32 %v391_v16, %v273_v1  ;;  %v612_v22 = vsel %vm601_vm1, %v6632_v12, %v6267_v61  ;;  %v6636_v30 = vrot.slane %v4131_v58, 3  ;;  %v6266_v40 = vrot.slane %v4490_v34, 4  ;;  %2545 = vmatmul.msk.f32.gmra.mxu2 %vm2155_vm6, %v2133_v18  ;;  %v4538_v18 = vld [vmem:[%s2701_s8 + $0x70] sm:$0xff] }
  0xe1   : > { %v832_v35 = vsel %vm601_vm1, %v6634_v0, %v6633_v47  ;;  %v6265_v1 = vrot.slane %v4497_v53, 4  ;;  %v1845_v36 = vadd.f32 %v1769_v62, %v1624_v45  ;;  %v4519_v16 = vmul.f32 %v4493_v4, %v2714_v15  ;;  %v2597_v0 = vld [vmem:[%s2701_s8 + $0x68] sm:$0xff] }
  0xe2   : > { %v1053_v51 = vsel %vm1042_vm2, %v6636_v30, %v6635_v54  ;;  %v715_v11 = vadd.f32 %v612_v22, %v494_v52  ;;  %v4523_v2 = vmul.f32 %v4493_v4, %v3983_v33  ;;  %v6637_v58 = vrot.slane %v4135_v38, 4 }
  0xe3   : > { %v6638_v30 = vrot.slane %v4150_v37, 4  ;;  %v282_v52 = vmul.f32 %v2597_v0, %v2688_v5  ;;  %v4542_v45 = vmul.f32 %v4538_v18, %v2690_v6  ;;  %v2066_v12 = vadd.f32 %v1990_v49, %v1845_v36 }
  0xe4   : > { %v1274_v54 = vsel %vm1263_vm3, %v6637_v58, %v6266_v40  ;;  %v935_v22 = vadd.f32 %v832_v35, %v715_v11  ;;  %v6271_v38 = vrot.slane %v4519_v16, 5  ;;  %v6276_v47 = vrot.slane %v4523_v2, 6 }
  0xe5   : > { %v1494_v62 = vsel %vm1263_vm3, %v6638_v30, %v6265_v1  ;;  %v6272_v58 = vrot.slane %v4542_v45, 1  ;;  %v4549_v37 = vmul.f32 %v4538_v18, %v2692_v7  ;;  %v6639_v30 = vld [vmem:[#allocation46_spill] sm:$0xff]  ;;  %v2106_v49 = vadd.f32 %v4106_v23, %v2066_v12 }
  0xe6   : > { %v4553_v0 = vmul.f32 %v2694_v8, %v6639_v30  ;;  %v4557_v1 = vmul.f32 %v2696_v9, %v6639_v30  ;;  %v1156_v35 = vadd.f32 %v1053_v51, %v935_v22  ;;  %v6640_v36 = vrot.slane %v4156_v63, 5 }
  0xe7   : > { %v6641_v40 = vrot.slane %v4166_v3, 6  ;;  %v6642_v4 = vrot.slane %v4184_v10, 1  ;;  %v6275_v51 = vrot.slane %v4549_v37, 2  ;;  %v2142_v22 = vmax.f32 %v2106_v49, 0.0 }
  0xe8   : > { %v1715_v11 = vsel %vm1704_vm4, %v6640_v36, %v6271_v38  ;;  %v6274_v12 = vrot.slane %v4553_v0, 2  ;;  %v6273_v63 = vrot.slane %v4557_v1, 3  ;;  %v1377_v36 = vadd.f32 %v1274_v54, %v1156_v35 }
  0xe9   : > { %v1936_v61 = vsel %vm1925_vm5, %v6641_v40, %v6276_v47  ;;  %v409_v53 = vsel %vm380_vm0, %v6642_v4, %v6272_v58  ;;  %v4580_v3 = vmul.f32 %v2710_v13, %v6639_v30  ;;  %v6643_v10 = vrot.slane %v4188_v41, 2  ;;  %2554 = vmatmul.msk.f32.gmra.mxu3 %vm2155_vm6, %v2142_v22 }
  0xea   : > { %v503_v38 = vadd.f32 %v409_v53, %v282_v52  ;;  %v6644_v40 = vrot.slane %v4200_v20, 2  ;;  %v6645_v53 = vrot.slane %v4211_v27, 3  ;;  %v4598_v52 = vld [vmem:[%s2701_s8 + $0x90] sm:$0xff]  ;;  %v1597_v41 = vadd.f32 %v1494_v62, %v1377_v36 }
  0xeb   : > { %v630_v4 = vsel %vm601_vm1, %v6643_v10, %v6275_v51  ;;  %6646 = vst [vmem:[#allocation50_spill] sm:$0xff] %v4598_v52  ;;  %v4602_v30 = vmul.f32 %v4598_v52, %v2712_v14  ;;  %v6280_v20 = vrot.slane %v4580_v3, 4  ;;  %v4608_v35 = vmul.f32 %v4598_v52, %v2714_v15 }
  0xec   : > { %v850_v58 = vsel %vm601_vm1, %v6644_v40, %v6274_v12  ;;  %v1071_v54 = vsel %vm1042_vm2, %v6645_v53, %v6273_v63  ;;  %v724_v49 = vadd.f32 %v630_v4, %v503_v38  ;;  %v4613_v10 = vmul.f32 %v4598_v52, %v3983_v33  ;;  %v4618_v53 = vld [vmem:[%s2701_s8 + $0xc0] sm:$0xff] }
  0xed   : > { %v6279_v27 = vrot.slane %v4602_v30, 4  ;;  %v292_v40 = vmul.f32 %v4269_v28, %v2688_v5  ;;  %v4622_v62 = vmul.f32 %v4618_v53, %v2690_v6  ;;  %v1818_v38 = vadd.f32 %v1715_v11, %v1597_v41  ;;  %v6648_v12 = vld [vmem:[#allocation30_spill] sm:$0xff]  ;;  %v6651_v41 = vld [vmem:[#allocation39_spill] sm:$0xff] }
  0xee   : > { %v944_v22 = vadd.f32 %v850_v58, %v724_v49  ;;  %v6647_v36 = vrot.slane %v4217_v42, 4  ;;  %v6281_v63 = vrot.slane %v4608_v35, 5  ;;  %v6649_v28 = vrot.slane %v6648_v12, 4  ;;  %v6653_v12 = vld [vmem:[#allocation13_spill] sm:$0xff] }
  0xef   : > { %v6283_v47 = vrot.slane %v4613_v10, 6  ;;  %v6282_v52 = vrot.slane %v4622_v62, 1  ;;  %v4639_v58 = vmul.f32 %v4618_v53, %v2692_v7  ;;  %v2039_v42 = vadd.f32 %v1936_v61, %v1818_v38 }
  0xf0   : > { %v1292_v4 = vsel %vm1263_vm3, %v6647_v36, %v6280_v20  ;;  %v1512_v51 = vsel %vm1263_vm3, %v6649_v28, %v6279_v27  ;;  %v1165_v11 = vadd.f32 %v1071_v54, %v944_v22  ;;  %v6652_v49 = vrot.slane %v6651_v41, 5 }
  0xf1   : > { %6650 = vst [vmem:[#allocation2_spill] sm:$0xff] %v4639_v58  ;;  %v4648_v28 = vmul.f32 %v2694_v8, %v6653_v12  ;;  %v6654_v27 = vrot.slane %v4253_v44, 6  ;;  %v6655_v61 = vrot.slane %v4273_v59, 1  ;;  %v6284_v38 = vrot.slane %v4639_v58, 2 }
  0xf2   : > { %v1733_v36 = vsel %vm1704_vm4, %v6652_v49, %v6281_v63  ;;  %v4663_v22 = vmul.f32 %v2696_v9, %v6653_v12  ;;  %v2079_v41 = vadd.f32 %v4106_v23, %v2039_v42  ;;  %v1386_v49 = vadd.f32 %v1292_v4, %v1165_v11 }
  0xf3   : > { %v1954_v20 = vsel %vm1925_vm5, %v6654_v27, %v6283_v47  ;;  %v429_v54 = vsel %vm380_vm0, %v6655_v61, %v6282_v52  ;;  %v6289_v44 = vrot.slane %v4648_v28, 2  ;;  %v6656_v27 = vrot.slane %v4278_v25, 2  ;;  %v4678_v47 = vld [vmem:[%s2701_s8 + $0xe0] sm:$0xff] }
  0xf4   : > { %v513_v63 = vadd.f32 %v429_v54, %v292_v40  ;;  %v6286_v61 = vrot.slane %v4663_v22, 3  ;;  %v4675_v52 = vmul.f32 %v2710_v13, %v6653_v12  ;;  %6657 = vst [vmem:[#allocation25_spill] sm:$0xff] %v4678_v47  ;;  %v4682_v4 = vmul.f32 %v4678_v47, %v2712_v14 }
  0xf5   : > { %v650_v59 = vsel %vm601_vm1, %v6656_v27, %v6284_v38  ;;  %v2115_v40 = vmax.f32 %v2079_v41, 0.0  ;;  %v1606_v42 = vadd.f32 %v1512_v51, %v1386_v49  ;;  %v6659_v25 = vrot.slane %v4288_v32, 2  ;;  %v6662_v49 = vld [vmem:[#allocation7_spill] sm:$0xff] }
  0xf6   : > { %6658 = vst [vmem:[#allocation51_spill] sm:$0xff] %v4682_v4  ;;  %v734_v11 = vadd.f32 %v650_v59, %v513_v63  ;;  %v6660_v12 = vrot.slane %v4292_v60, 3  ;;  %v6288_v38 = vrot.slane %v4675_v52, 4  ;;  %v6287_v58 = vrot.slane %v4682_v4, 4 }
  0xf7   : > { %v870_v54 = vsel %vm601_vm1, %v6659_v25, %v6289_v44  ;;  %v4698_v51 = vmul.f32 %v4678_v47, %v2714_v15  ;;  %2527 = vmatmul.msk.f32.gmra.mxu0 %vm2155_vm6, %v2115_v40  ;;  %v1827_v63 = vadd.f32 %v1733_v36, %v1606_v42  ;;  %v4703_v41 = vmul.f32 %v4678_v47, %v3983_v33  ;;  %v4719_v42 = vld [vmem:[%s2701_s8 + $0x108] sm:$0xff] }
  0xf8   : > { %v1091_v27 = vsel %vm1042_vm2, %v6660_v12, %v6286_v61  ;;  %v954_v32 = vadd.f32 %v870_v54, %v734_v11  ;;  %v301_v60 = vmul.f32 %v4353_v29, %v2688_v5  ;;  %v6663_v59 = vrot.slane %v6662_v49, 4  ;;  %v6664_v12 = vld [vmem:[#allocation28_spill] sm:$0xff] }
  0xf9   : > { %6661 = vst [vmem:[#allocation44_spill] sm:$0xff] %v4698_v51  ;;  %v6665_v61 = vrot.slane %v6664_v12, 4  ;;  %v6290_v40 = vrot.slane %v4698_v51, 5  ;;  %v4723_v29 = vmul.f32 %v4719_v42, %v2690_v6  ;;  %v2048_v11 = vadd.f32 %v1954_v20, %v1827_v63 }
  0xfa   : > { %v1312_v25 = vsel %vm1263_vm3, %v6663_v59, %v6288_v38  ;;  %v1175_v54 = vadd.f32 %v1091_v27, %v954_v32  ;;  %v6295_v49 = vrot.slane %v4703_v41, 6  ;;  %v4728_v59 = vmul.f32 %v4719_v42, %v2692_v7  ;;  %v6667_v38 = vld [vmem:[#allocation49_spill] sm:$0xff] }
  0xfb   : > { %v1532_v36 = vsel %vm1263_vm3, %v6665_v61, %v6287_v58  ;;  %v6666_v61 = vrot.slane %v4338_v24, 5  ;;  %v6296_v58 = vrot.slane %v4723_v29, 1  ;;  %v4738_v44 = vmul.f32 %v2694_v8, %v6667_v38 }
  0xfc   : > { %v4742_v20 = vmul.f32 %v2696_v9, %v6667_v38  ;;  %v2088_v27 = vadd.f32 %v4106_v23, %v2048_v11  ;;  %v1396_v63 = vadd.f32 %v1312_v25, %v1175_v54  ;;  %v6668_v32 = vrot.slane %v4342_v21, 6 }
  0xfd   : > { %v1753_v12 = vsel %vm1704_vm4, %v6666_v61, %v6290_v40  ;;  %v4751_v61 = vld [vmem:[%s2701_s8 + $0x128] sm:$0xff]  ;;  %v6301_v40 = vrot.slane %v4728_v59, 2  ;;  %v6670_v47 = vrot.slane %v4357_v26, 1  ;;  %v6299_v4 = vrot.slane %v4738_v44, 2 }
  0xfe   : > { %v1974_v24 = vsel %vm1925_vm5, %v6668_v32, %v6295_v49  ;;  %6669 = vst [vmem:[#allocation37_spill] sm:$0xff] %v4751_v61  ;;  %v6297_v25 = vrot.slane %v4742_v20, 3  ;;  %v4763_v11 = vmul.f32 %v2710_v13, %v6667_v38  ;;  %v2124_v21 = vmax.f32 %v2088_v27, 0.0 }
  0xff   : > { %v447_v51 = vsel %vm380_vm0, %v6670_v47, %v6296_v58  ;;  %v1616_v54 = vadd.f32 %v1532_v36, %v1396_v63  ;;  %v6671_v49 = vrot.slane %v4369_v48, 2  ;;  %v6672_v47 = vrot.slane %v4373_v39, 2 }
 0x100   : > { %v522_v32 = vadd.f32 %v447_v51, %v301_v60  ;;  %v6673_v38 = vrot.slane %v4397_v50, 3  ;;  %v6298_v51 = vrot.slane %v4763_v11, 4  ;;  %v4783_v60 = vmul.f32 %v2712_v14, %v4751_v61  ;;  %2536 = vmatmul.msk.f32.gmra.mxu1 %vm2155_vm6, %v2124_v21  ;;  %v4803_v21 = vld [vmem:[%s2701_s8 + $0x30] sm:$0xff] }
 0x101   : > { %v668_v26 = vsel %vm601_vm1, %v6671_v49, %v6301_v40  ;;  %v888_v58 = vsel %vm601_vm1, %v6672_v47, %v6299_v4  ;;  %v1837_v48 = vadd.f32 %v1753_v12, %v1616_v54  ;;  %v4788_v39 = vmul.f32 %v2714_v15, %v4751_v61  ;;  %v6677_v4 = vld [vmem:[#allocation24_spill] sm:$0xff] }
 0x102   : > { %v1109_v27 = vsel %vm1042_vm2, %v6673_v38, %v6297_v25  ;;  %6674 = vst [vmem:[#allocation29_spill] sm:$0xff] %v4783_v60  ;;  %v743_v36 = vadd.f32 %v668_v26, %v522_v32  ;;  %v4792_v49 = vmul.f32 %v3983_v33, %v4751_v61  ;;  %v6675_v50 = vrot.slane %v4402_v43, 4  ;;  %v6680_v40 = vld [vmem:[#allocation32_spill] sm:$0xff] }
 0x103   : > { %v6300_v47 = vrot.slane %v4783_v60, 4  ;;  %v274_v12 = vmul.f32 %v4450_v19, %v2688_v5  ;;  %v4807_v54 = vmul.f32 %v4803_v21, %v2690_v6  ;;  %v2058_v32 = vadd.f32 %v1974_v24, %v1837_v48 }
 0x104   : > { %v1330_v63 = vsel %vm1263_vm3, %v6675_v50, %v6298_v51  ;;  %v963_v26 = vadd.f32 %v888_v58, %v743_v36  ;;  %v6305_v38 = vrot.slane %v4788_v39, 5  ;;  %v6310_v25 = vrot.slane %v4792_v49, 6 }
 0x105   : > { %v6676_v43 = vrot.slane %v4417_v46, 4  ;;  %v6306_v19 = vrot.slane %v4807_v54, 1  ;;  %v4819_v51 = vmul.f32 %v4803_v21, %v2692_v7  ;;  %v4823_v24 = vmul.f32 %v2694_v8, %v6677_v4 }
 0x106   : > { %v2098_v58 = vadd.f32 %v4106_v23, %v2058_v32  ;;  %v1184_v48 = vadd.f32 %v1109_v27, %v963_v26  ;;  %v6678_v46 = vrot.slane %v4428_v17, 5  ;;  %v6681_v61 = vrot.slane %v6680_v40, 1 }
 0x107   : > { %v1550_v50 = vsel %vm1263_vm3, %v6676_v43, %v6300_v47  ;;  %v6679_v43 = vrot.slane %v4432_v56, 6  ;;  %v6309_v27 = vrot.slane %v4819_v51, 2  ;;  %v6307_v32 = vrot.slane %v4823_v24, 2 }
 0x108   : > { %v1771_v36 = vsel %vm1704_vm4, %v6678_v46, %v6305_v38  ;;  %v393_v60 = vsel %vm380_vm0, %v6681_v61, %v6306_v19  ;;  %v4845_v17 = vmul.f32 %v2696_v9, %v6677_v4  ;;  %v2134_v26 = vmax.f32 %v2098_v58, 0.0 }
 0x109   : > { %v1992_v47 = vsel %vm1925_vm5, %v6679_v43, %v6310_v25  ;;  %v1405_v46 = vadd.f32 %v1330_v63, %v1184_v48  ;;  %v495_v38 = vadd.f32 %v393_v60, %v274_v12  ;;  %v4849_v56 = vmul.f32 %v2710_v13, %v6677_v4  ;;  %v4863_v63 = vld [vmem:[%s2701_s8 + $0x50] sm:$0xff] }
 0x10a   : > { %v6682_v40 = vrot.slane %v4458_v31, 2  ;;  %v6683_v43 = vrot.slane %v4462_v55, 2  ;;  %v6308_v58 = vrot.slane %v4845_v17, 3  ;;  %6684 = vst [vmem:[#allocation36_spill] sm:$0xff] %v4863_v63  ;;  %v4867_v4 = vmul.f32 %v4863_v63, %v2712_v14  ;;  %2546 = vmatmul.msk.f32.gmra.mxu2 %vm2155_vm6, %v2134_v26 }
 0x10b   : > { %v1625_v31 = vadd.f32 %v1550_v50, %v1405_v46  ;;  %v6314_v12 = vrot.slane %v4849_v56, 4  ;;  %v4873_v55 = vmul.f32 %v4863_v63, %v2714_v15  ;;  %v6685_v48 = vrot.slane %v4477_v57, 3 }
 0x10c   : > { %v614_v61 = vsel %vm601_vm1, %v6682_v40, %v6309_v27  ;;  %v834_v19 = vsel %vm601_vm1, %v6683_v43, %v6307_v32  ;;  %v6313_v43 = vrot.slane %v4867_v4, 4  ;;  %v4883_v32 = vmul.f32 %v4863_v63, %v3983_v33  ;;  %v4900_v63 = vld [vmem:[%s2701_s8 + $0x78] sm:$0xff] }
 0x10d   : > { %v716_v60 = vadd.f32 %v614_v61, %v495_v38  ;;  %v1055_v40 = vsel %vm1042_vm2, %v6685_v48, %v6308_v58  ;;  %v283_v38 = vmul.f32 %v4538_v18, %v2688_v5  ;;  %v1846_v50 = vadd.f32 %v1771_v36, %v1625_v31  ;;  %v6687_v48 = vld [vmem:[#allocation18_spill] sm:$0xff] }
 0x10e   : > { %v6686_v46 = vrot.slane %v4490_v34, 4  ;;  %v6316_v57 = vrot.slane %v4873_v55, 5  ;;  %v6688_v58 = vrot.slane %v6687_v48, 4  ;;  %v6315_v25 = vrot.slane %v4883_v32, 6 }
 0x10f   : > { %v936_v26 = vadd.f32 %v834_v19, %v716_v60  ;;  %v4904_v18 = vmul.f32 %v4900_v63, %v2690_v6  ;;  %v4908_v34 = vmul.f32 %v4900_v63, %v2692_v7  ;;  %v2067_v19 = vadd.f32 %v1992_v47, %v1846_v50  ;;  %v6692_v60 = vld [vmem:[#allocation26_spill] sm:$0xff] }
 0x110   : > { %v1276_v61 = vsel %vm1263_vm3, %v6686_v46, %v6314_v12  ;;  %v1496_v27 = vsel %vm1263_vm3, %v6688_v58, %v6313_v43  ;;  %v6691_v31 = vrot.slane %v4519_v16, 5  ;;  %v4917_v46 = vmul.f32 %v2694_v8, %v6692_v60 }
 0x111   : > { %6689 = vst [vmem:[#allocation47_spill] sm:$0xff] %v4904_v18  ;;  %v1157_v36 = vadd.f32 %v1055_v40, %v936_v26  ;;  %v6693_v48 = vrot.slane %v4523_v2, 6  ;;  %v6317_v12 = vrot.slane %v4904_v18, 1  ;;  %v6318_v47 = vrot.slane %v4908_v34, 2 }
 0x112   : > { %6690 = vst [vmem:[#allocation42_spill] sm:$0xff] %v4908_v34  ;;  %v1717_v58 = vsel %vm1704_vm4, %v6691_v31, %v6316_v57  ;;  %v4928_v40 = vmul.f32 %v2696_v9, %v6692_v60  ;;  %v2107_v16 = vadd.f32 %v4106_v23, %v2067_v19  ;;  %v4934_v31 = vmul.f32 %v2710_v13, %v6692_v60  ;;  %v4948_v19 = vld [vmem:[%s2701_s8 + $0x98] sm:$0xff] }
 0x113   : > { %v1938_v43 = vsel %vm1925_vm5, %v6693_v48, %v6315_v25  ;;  %v1378_v50 = vadd.f32 %v1276_v61, %v1157_v36  ;;  %v6694_v2 = vrot.slane %v4542_v45, 1  ;;  %v6695_v25 = vrot.slane %v4549_v37, 2  ;;  %6696 = vst [vmem:[#allocation19_spill] sm:$0xff] %v4948_v19 }
 0x114   : > { %v6324_v61 = vrot.slane %v4928_v40, 3  ;;  %v4952_v36 = vmul.f32 %v4948_v19, %v2712_v14  ;;  %v2143_v60 = vmax.f32 %v2107_v16, 0.0  ;;  %v6323_v34 = vrot.slane %v4934_v31, 4 }
 0x115   : > { %v411_v48 = vsel %vm380_vm0, %v6694_v2, %v6317_v12  ;;  %v632_v57 = vsel %vm601_vm1, %v6695_v25, %v6318_v47  ;;  %v1598_v26 = vadd.f32 %v1496_v27, %v1378_v50  ;;  %v6697_v2 = vrot.slane %v4917_v46, 2 }
 0x116   : > { %v504_v45 = vadd.f32 %v411_v48, %v283_v38  ;;  %v6698_v12 = vrot.slane %v4553_v0, 2  ;;  %v6699_v25 = vrot.slane %v4557_v1, 3  ;;  %v6321_v18 = vrot.slane %v4952_v36, 4  ;;  %2555 = vmatmul.msk.f32.gmra.mxu3 %vm2155_vm6, %v2143_v60 }
 0x117   : > { %v4968_v27 = vmul.f32 %v4948_v19, %v2714_v15  ;;  %v1819_v38 = vadd.f32 %v1717_v58, %v1598_v26  ;;  %v293_v1 = vmul.f32 %v4618_v53, %v2688_v5  ;;  %v6700_v16 = vrot.slane %v4580_v3, 4  ;;  %v4989_v26 = vld [vmem:[%s2701_s8 + $0xc8] sm:$0xff] }
 0x118   : > { %v852_v37 = vsel %vm601_vm1, %v6698_v12, %v6697_v2  ;;  %v1073_v47 = vsel %vm1042_vm2, %v6699_v25, %v6324_v61  ;;  %v725_v0 = vadd.f32 %v632_v57, %v504_v45  ;;  %v4973_v12 = vmul.f32 %v4948_v19, %v3983_v33 }
 0x119   : > { %v1294_v50 = vsel %vm1263_vm3, %v6700_v16, %v6323_v34  ;;  %v6701_v48 = vrot.slane %v4602_v30, 4  ;;  %v6322_v57 = vrot.slane %v4968_v27, 5  ;;  %v4993_v60 = vmul.f32 %v4989_v26, %v2690_v6 }
 0x11a   : > { %v2040_v53 = vadd.f32 %v1938_v43, %v1819_v38  ;;  %v945_v45 = vadd.f32 %v852_v37, %v725_v0  ;;  %v6327_v3 = vrot.slane %v4973_v12, 6  ;;  %v4998_v2 = vmul.f32 %v4989_v26, %v2692_v7 }
 0x11b   : > { %v1514_v58 = vsel %vm1263_vm3, %v6701_v48, %v6321_v18  ;;  %v6702_v30 = vrot.slane %v4608_v35, 5  ;;  %v6328_v16 = vrot.slane %v4993_v60, 1  ;;  %v6703_v48 = vld [vmem:[#allocation27_spill] sm:$0xff]  ;;  %v6704_v35 = vrot.slane %v4613_v10, 6 }
 0x11c   : > { %v5008_v18 = vmul.f32 %v6703_v48, %v2694_v8  ;;  %v5012_v43 = vmul.f32 %v6703_v48, %v2696_v9  ;;  %v2080_v37 = vadd.f32 %v4106_v23, %v2040_v53  ;;  %v1166_v38 = vadd.f32 %v1073_v47, %v945_v45 }
 0x11d   : > { %v1735_v25 = vsel %vm1704_vm4, %v6702_v30, %v6322_v57  ;;  %v1956_v0 = vsel %vm1925_vm5, %v6704_v35, %v6327_v3  ;;  %v6332_v30 = vrot.slane %v4998_v2, 2  ;;  %v6705_v57 = vrot.slane %v4622_v62, 1  ;;  %v6707_v35 = vld [vmem:[#allocation2_spill] sm:$0xff] }
 0x11e   : > { %v6331_v61 = vrot.slane %v5008_v18, 2  ;;  %v6330_v19 = vrot.slane %v5012_v43, 3  ;;  %v5030_v47 = vmul.f32 %v6703_v48, %v2710_v13  ;;  %v2116_v53 = vmax.f32 %v2080_v37, 0.0 }
 0x11f   : > { %v431_v34 = vsel %vm380_vm0, %v6705_v57, %v6328_v16  ;;  %v1387_v10 = vadd.f32 %v1294_v50, %v1166_v38  ;;  %v6708_v3 = vrot.slane %v6707_v35, 2  ;;  %v6709_v57 = vrot.slane %v4648_v28, 2 }
 0x120   : > { %6706 = vst [vmem:[#allocation8_spill] sm:$0xff] %v5030_v47  ;;  %v514_v45 = vadd.f32 %v431_v34, %v293_v1  ;;  %v6710_v48 = vrot.slane %v4663_v22, 3  ;;  %v6329_v34 = vrot.slane %v5030_v47, 4  ;;  %v2608_v1 = vld [vmem:[%s2701_s8 + $0xe8] sm:$0xff]  ;;  %2528 = vmatmul.msk.f32.gmra.mxu0 %vm2155_vm6, %v2116_v53  ;;  %v6712_v22 = vrot.slane %v4675_v52, 4 }
 0x121   : > { %v652_v62 = vsel %vm601_vm1, %v6708_v3, %v6332_v30  ;;  %v872_v16 = vsel %vm601_vm1, %v6709_v57, %v6331_v61  ;;  %v5050_v37 = vmul.f32 %v2608_v1, %v2712_v14  ;;  %v1607_v3 = vadd.f32 %v1514_v58, %v1387_v10  ;;  %v5068_v58 = vld [vmem:[%s2701_s8 + $0x110] sm:$0xff] }
 0x122   : > { %v1093_v50 = vsel %vm1042_vm2, %v6710_v48, %v6330_v19  ;;  %v735_v38 = vadd.f32 %v652_v62, %v514_v45  ;;  %v5054_v28 = vmul.f32 %v2608_v1, %v2714_v15  ;;  %v5057_v35 = vmul.f32 %v2608_v1, %v3983_v33  ;;  %6713 = vst [vmem:[#allocation30_spill] sm:$0xff] %v5068_v58  ;;  %v6716_v30 = vld [vmem:[#allocation48_spill] sm:$0xff] }
 0x123   : > { %6711 = vst [vmem:[#allocation46_spill] sm:$0xff] %v5050_v37  ;;  %v1314_v57 = vsel %vm1263_vm3, %v6712_v22, %v6329_v34  ;;  %v6333_v48 = vrot.slane %v5050_v37, 4  ;;  %v302_v53 = vmul.f32 %v4719_v42, %v2688_v5  ;;  %v5072_v10 = vmul.f32 %v5068_v58, %v2690_v6  ;;  %v6714_v22 = vld [vmem:[#allocation51_spill] sm:$0xff]  ;;  %v5101_v37 = vld [vmem:[%s2701_s8 + $0x130] sm:$0xff] }
 0x124   : > { %v1828_v45 = vadd.f32 %v1735_v25, %v1607_v3  ;;  %v955_v62 = vadd.f32 %v872_v16, %v735_v38  ;;  %v6342_v1 = vrot.slane %v5054_v28, 5  ;;  %v6715_v34 = vrot.slane %v6714_v22, 4  ;;  %v6717_v38 = vld [vmem:[#allocation44_spill] sm:$0xff]  ;;  %6721 = vst [vmem:[#allocation39_spill] sm:$0xff] %v5101_v37 }
 0x125   : > { %v5084_v61 = vmul.f32 %v5068_v58, %v2692_v7  ;;  %v5088_v25 = vmul.f32 %v2694_v8, %v6716_v30  ;;  %v6718_v52 = vrot.slane %v6717_v38, 5  ;;  %v6722_v58 = vrot.slane %v5072_v10, 1 }
 0x126   : > { %v1534_v19 = vsel %vm1263_vm3, %v6715_v34, %v6333_v48  ;;  %v2049_v16 = vadd.f32 %v1956_v0, %v1828_v45  ;;  %v1176_v3 = vadd.f32 %v1093_v50, %v955_v62  ;;  %v6719_v34 = vrot.slane %v5057_v35, 6 }
 0x127   : > { %v1755_v22 = vsel %vm1704_vm4, %v6718_v52, %v6342_v1  ;;  %v6720_v48 = vrot.slane %v4703_v41, 6  ;;  %v6723_v47 = vrot.slane %v4723_v29, 1  ;;  %v6339_v50 = vrot.slane %v5084_v61, 2 }
 0x128   : > { %v6338_v45 = vrot.slane %v5088_v25, 2  ;;  %v5112_v62 = vmul.f32 %v2696_v9, %v6716_v30  ;;  %v2089_v41 = vadd.f32 %v4106_v23, %v2049_v16  ;;  %v1397_v52 = vadd.f32 %v1314_v57, %v1176_v3 }
 0x129   : > { %v1976_v42 = vsel %vm1925_vm5, %v6720_v48, %v6719_v34  ;;  %v449_v0 = vsel %vm380_vm0, %v6723_v47, %v6722_v58  ;;  %v5117_v38 = vmul.f32 %v2710_v13, %v6716_v30  ;;  %v6724_v29 = vrot.slane %v4728_v59, 2 }
 0x12a   : > { %v523_v48 = vadd.f32 %v449_v0, %v302_v53  ;;  %v6725_v58 = vrot.slane %v4738_v44, 2  ;;  %v6337_v16 = vrot.slane %v5112_v62, 3  ;;  %v5132_v57 = vmul.f32 %v2712_v14, %v5101_v37 }
 0x12b   : > { %v670_v47 = vsel %vm601_vm1, %v6724_v29, %v6339_v50  ;;  %v2125_v30 = vmax.f32 %v2089_v41, 0.0  ;;  %v1617_v53 = vadd.f32 %v1534_v19, %v1397_v52  ;;  %v6341_v59 = vrot.slane %v5117_v38, 4 }
 0x12c   : > { %v890_v34 = vsel %vm601_vm1, %v6725_v58, %v6338_v45  ;;  %v744_v3 = vadd.f32 %v670_v47, %v523_v48  ;;  %v6726_v0 = vrot.slane %v4742_v20, 3  ;;  %v6340_v29 = vrot.slane %v5132_v57, 4 }
 0x12d   : > { %v5143_v58 = vmul.f32 %v2714_v15, %v5101_v37  ;;  %v5147_v41 = vmul.f32 %v3983_v33, %v5101_v37  ;;  %2537 = vmatmul.msk.f32.gmra.mxu1 %vm2155_vm6, %v2125_v30  ;;  %v1838_v19 = vadd.f32 %v1755_v22, %v1617_v53  ;;  %v6728_v20 = vrot.slane %v4763_v11, 4 }
 0x12e   : > { %v1111_v44 = vsel %vm1042_vm2, %v6726_v0, %v6337_v16  ;;  %v964_v52 = vadd.f32 %v890_v34, %v744_v3  ;;  %v275_v47 = vmul.f32 %v4803_v21, %v2688_v5  ;;  %v6729_v0 = vld [vmem:[#allocation29_spill] sm:$0xff]  ;;  %v6731_v3 = vld [vmem:[#allocation34_spill] sm:$0xff] }
 0x12f   : > { %6727 = vst [vmem:[#allocation13_spill] sm:$0xff] %v5147_v41  ;;  %v1332_v48 = vsel %vm1263_vm3, %v6728_v20, %v6341_v59  ;;  %v6730_v16 = vrot.slane %v6729_v0, 4  ;;  %v6344_v50 = vrot.slane %v5143_v58, 5  ;;  %v6343_v22 = vrot.slane %v5147_v41, 6  ;;  %v5165_v34 = vld [vmem:[%s2701_s8 + $0x38] sm:$0xff] }
 0x130   : > { %v5169_v11 = vmul.f32 %v5165_v34, %v2690_v6  ;;  %v2059_v30 = vadd.f32 %v1976_v42, %v1838_v19  ;;  %v1185_v53 = vadd.f32 %v1111_v44, %v964_v52  ;;  %v5173_v21 = vmul.f32 %v5165_v34, %v2692_v7 }
 0x131   : > { %v1552_v45 = vsel %vm1263_vm3, %v6730_v16, %v6340_v29  ;;  %v5177_v16 = vmul.f32 %v6731_v3, %v2694_v8  ;;  %v6732_v20 = vrot.slane %v4788_v39, 5  ;;  %v6733_v29 = vrot.slane %v4792_v49, 6 }
 0x132   : > { %v6345_v44 = vrot.slane %v5169_v11, 1  ;;  %v5192_v19 = vmul.f32 %v6731_v3, %v2696_v9  ;;  %v2099_v52 = vadd.f32 %v4106_v23, %v2059_v30  ;;  %v1406_v59 = vadd.f32 %v1332_v48, %v1185_v53 }
 0x133   : > { %v1773_v0 = vsel %vm1704_vm4, %v6732_v20, %v6344_v50  ;;  %v1994_v42 = vsel %vm1925_vm5, %v6733_v29, %v6343_v22  ;;  %v6351_v1 = vrot.slane %v5173_v21, 2  ;;  %v6734_v20 = vrot.slane %v4807_v54, 1  ;;  %v2611_v50 = vld [vmem:[%s2701_s8 + $0x58] sm:$0xff] }
 0x134   : > { %v5205_v22 = vmul.f32 %v6731_v3, %v2710_v13  ;;  %v5209_v30 = vmul.f32 %v2611_v50, %v2712_v14  ;;  %v2135_v48 = vmax.f32 %v2099_v52, 0.0  ;;  %v1626_v53 = vadd.f32 %v1552_v45, %v1406_v59 }
 0x135   : > { %v395_v49 = vsel %vm380_vm0, %v6734_v20, %v6345_v44  ;;  %v6735_v54 = vrot.slane %v4819_v51, 2  ;;  %v6736_v44 = vrot.slane %v5177_v16, 2  ;;  %v6737_v29 = vrot.slane %v4823_v24, 2 }
 0x136   : > { %v496_v39 = vadd.f32 %v395_v49, %v275_v47  ;;  %v6738_v37 = vrot.slane %v5192_v19, 3  ;;  %v6739_v41 = vrot.slane %v4845_v17, 3  ;;  %v6350_v45 = vrot.slane %v5205_v22, 4  ;;  %2547 = vmatmul.msk.f32.gmra.mxu2 %vm2155_vm6, %v2135_v48 }
 0x137   : > { %v616_v20 = vsel %vm601_vm1, %v6735_v54, %v6351_v1  ;;  %v836_v3 = vsel %vm601_vm1, %v6737_v29, %v6736_v44  ;;  %v6349_v59 = vrot.slane %v5209_v30, 4  ;;  %v1847_v51 = vadd.f32 %v1773_v0, %v1626_v53 }
 0x138   : > { %v1057_v52 = vsel %vm1042_vm2, %v6739_v41, %v6738_v37  ;;  %v717_v47 = vadd.f32 %v616_v20, %v496_v39  ;;  %v5230_v49 = vmul.f32 %v2611_v50, %v2714_v15  ;;  %v5233_v24 = vmul.f32 %v2611_v50, %v3983_v33  ;;  %v5248_v39 = vld [vmem:[%s2701_s8 + $0x80] sm:$0xff] }
 0x139   : > { %v6740_v17 = vrot.slane %v4849_v56, 4  ;;  %v6741_v41 = vrot.slane %v4867_v4, 4  ;;  %v284_v0 = vmul.f32 %v4900_v63, %v2688_v5  ;;  %v5252_v33 = vmul.f32 %v5248_v39, %v2690_v6  ;;  %v6742_v63 = vld [vmem:[#allocation50_spill] sm:$0xff] }
 0x13a   : > { %v2068_v50 = vadd.f32 %v1994_v42, %v1847_v51  ;;  %v937_v29 = vadd.f32 %v836_v3, %v717_v47  ;;  %v6357_v56 = vrot.slane %v5230_v49, 5  ;;  %v6352_v48 = vrot.slane %v5233_v24, 6 }
 0x13b   : > { %v1278_v37 = vsel %vm1263_vm3, %v6740_v17, %v6350_v45  ;;  %v1498_v44 = vsel %vm1263_vm3, %v6741_v41, %v6349_v59  ;;  %v6353_v53 = vrot.slane %v5252_v33, 1  ;;  %v5259_v4 = vmul.f32 %v5248_v39, %v2692_v7  ;;  %v6745_v59 = vld [vmem:[#allocation47_spill] sm:$0xff] }
 0x13c   : > { %v5263_v54 = vmul.f32 %v6742_v63, %v2694_v8  ;;  %v5267_v20 = vmul.f32 %v6742_v63, %v2696_v9  ;;  %v2108_v42 = vadd.f32 %v4106_v23, %v2068_v50  ;;  %v1158_v3 = vadd.f32 %v1057_v52, %v937_v29 }
 0x13d   : > { %v6743_v51 = vrot.slane %v4873_v55, 5  ;;  %v6744_v17 = vrot.slane %v4883_v32, 6  ;;  %v6746_v45 = vrot.slane %v6745_v59, 1  ;;  %v6356_v23 = vrot.slane %v5259_v4, 2 }
 0x13e   : > { %v6355_v52 = vrot.slane %v5263_v54, 2  ;;  %v6354_v55 = vrot.slane %v5267_v20, 3  ;;  %v2144_v50 = vmax.f32 %v2108_v42, 0.0  ;;  %v1379_v29 = vadd.f32 %v1278_v37, %v1158_v3 }
 0x13f   : > { %v1719_v47 = vsel %vm1704_vm4, %v6743_v51, %v6357_v56  ;;  %v1940_v41 = vsel %vm1925_vm5, %v6744_v17, %v6352_v48  ;;  %v413_v1 = vsel %vm380_vm0, %v6746_v45, %v6353_v53  ;;  %v5290_v32 = vmul.f32 %v6742_v63, %v2710_v13  ;;  %v6747_v17 = vld [vmem:[#allocation42_spill] sm:$0xff] }
 0x140   : > { %v505_v51 = vadd.f32 %v413_v1, %v284_v0  ;;  %v6748_v59 = vrot.slane %v6747_v17, 2  ;;  %v6749_v48 = vrot.slane %v4917_v46, 2  ;;  %v6750_v1 = vrot.slane %v4928_v40, 3  ;;  %v2613_v0 = vld [vmem:[%s2701_s8 + $0xa0] sm:$0xff]  ;;  %2556 = vmatmul.msk.f32.gmra.mxu3 %vm2155_vm6, %v2144_v50  ;;  %v5320_v40 = vld [vmem:[%s6004_s1 + $0x8] ss:$0 sm:$0xff] }
 0x141   : > { %v5309_v63 = vmul.f32 %v2613_v0, %v2712_v14  ;;  %v1599_v42 = vadd.f32 %v1498_v44, %v1379_v29  ;;  %v6361_v17 = vrot.slane %v5290_v32, 4  ;;  %v5314_v46 = vmul.f32 %v2613_v0, %v2714_v15  ;;  %v5328_v44 = vld [vmem:[%s2701_s8 + $0xd0] sm:$0xff] }
 0x142   : > { %v634_v45 = vsel %vm601_vm1, %v6748_v59, %v6356_v23  ;;  %v854_v53 = vsel %vm601_vm1, %v6749_v48, %v6355_v52  ;;  %v1075_v37 = vsel %vm1042_vm2, %v6750_v1, %v6354_v55  ;;  %v5323_v59 = vmul.f32 %v5320_v40, %v2613_v0 }
 0x143   : > { %v726_v3 = vadd.f32 %v634_v45, %v505_v51  ;;  %v6358_v48 = vrot.slane %v5309_v63, 4  ;;  %v294_v50 = vmul.f32 %v4989_v26, %v2688_v5  ;;  %v5332_v29 = vmul.f32 %v5328_v44, %v2690_v6 }
 0x144   : > { %6751 = vst [vmem:[#allocation7_spill] sm:$0xff] %v5323_v59  ;;  %v1820_v51 = vadd.f32 %v1719_v47, %v1599_v42  ;;  %v6752_v1 = vrot.slane %v4934_v31, 4  ;;  %v6360_v0 = vrot.slane %v5314_v46, 5  ;;  %v6753_v26 = vrot.slane %v4952_v36, 4  ;;  %v6755_v36 = vld [vmem:[#allocation25_spill] sm:$0xff] }
 0x145   : > { %v946_v45 = vadd.f32 %v854_v53, %v726_v3  ;;  %v6359_v23 = vrot.slane %v5323_v59, 6  ;;  %v6362_v56 = vrot.slane %v5332_v29, 1  ;;  %v5349_v53 = vmul.f32 %v5328_v44, %v2692_v7 }
 0x146   : > { %v1296_v55 = vsel %vm1263_vm3, %v6752_v1, %v6361_v17  ;;  %v1516_v52 = vsel %vm1263_vm3, %v6753_v26, %v6358_v48  ;;  %v2041_v47 = vadd.f32 %v1940_v41, %v1820_v51  ;;  %v6754_v42 = vrot.slane %v4968_v27, 5 }
 0x147   : > { %v1167_v31 = vadd.f32 %v1075_v37, %v946_v45  ;;  %v5358_v1 = vmul.f32 %v6755_v36, %v2694_v8  ;;  %v6756_v26 = vrot.slane %v4973_v12, 6  ;;  %v6757_v41 = vrot.slane %v4993_v60, 1  ;;  %v5378_v45 = vld [vmem:[%s6005_s2] ss:$0 sm:$0xff] }
 0x148   : > { %v1737_v3 = vsel %vm1704_vm4, %v6754_v42, %v6360_v0  ;;  %v6364_v27 = vrot.slane %v5349_v53, 2  ;;  %v5373_v51 = vmul.f32 %v6755_v36, %v2696_v9  ;;  %v2081_v12 = vadd.f32 %v5378_v45, %v2041_v47 }
 0x149   : > { %v1958_v48 = vsel %vm1925_vm5, %v6756_v26, %v6359_v23  ;;  %v433_v37 = vsel %vm380_vm0, %v6757_v41, %v6362_v56  ;;  %v1388_v42 = vadd.f32 %v1296_v55, %v1167_v31  ;;  %v6366_v23 = vrot.slane %v5358_v1, 2  ;;  %v2617_v56 = vld [vmem:[%s2701_s8 + $0xf0] sm:$0xff] }
 0x14a   : > { %v515_v26 = vadd.f32 %v433_v37, %v294_v50  ;;  %v6758_v60 = vrot.slane %v4998_v2, 2  ;;  %v6365_v0 = vrot.slane %v5373_v51, 3  ;;  %v5390_v17 = vmul.f32 %v6755_v36, %v2710_v13 }
 0x14b   : > { %v5394_v59 = vmul.f32 %v2617_v56, %v2712_v14  ;;  %v2117_v55 = vmax.f32 %v2081_v12, 0.0  ;;  %v1608_v50 = vadd.f32 %v1516_v52, %v1388_v42  ;;  %v6761_v2 = vrot.slane %v5008_v18, 2 }
 0x14c   : > { %v654_v41 = vsel %vm601_vm1, %v6758_v60, %v6364_v27  ;;  %6759 = vst [vmem:[#allocation28_spill] sm:$0xff] %v5390_v17  ;;  %v6762_v37 = vrot.slane %v5012_v43, 3  ;;  %v6367_v60 = vrot.slane %v5390_v17, 4  ;;  %v5409_v12 = vmul.f32 %v2617_v56, %v2714_v15 }
 0x14d   : > { %6760 = vst [vmem:[#allocation49_spill] sm:$0xff] %v5394_v59  ;;  %v736_v47 = vadd.f32 %v654_v41, %v515_v26  ;;  %v874_v31 = vsel %vm601_vm1, %v6761_v2, %v6366_v23  ;;  %v6368_v27 = vrot.slane %v5394_v59, 4  ;;  %2529 = vmatmul.msk.f32.gmra.mxu0 %vm2155_vm6, %v2117_v55  ;;  %v1829_v52 = vadd.f32 %v1737_v3, %v1608_v50  ;;  %v6763_v26 = vld [vmem:[#allocation8_spill] sm:$0xff]  ;;  %v5424_v23 = vld [vmem:[%s2701_s8 + $0x118] sm:$0xff]  ;;  %v6767_v50 = vld [vmem:[#allocation46_spill] sm:$0xff] }
 0x14e   : > { %v1095_v36 = vsel %vm1042_vm2, %v6762_v37, %v6365_v0  ;;  %v5413_v18 = vmul.f32 %v2617_v56, %v5320_v40  ;;  %v6764_v43 = vrot.slane %v6763_v26, 4  ;;  %v6765_v37 = vld [vmem:[#allocation30_spill] sm:$0xff]  ;;  %6766 = vst [vmem:[#allocation24_spill] sm:$0xff] %v5424_v23  ;;  %v5428_v3 = vmul.f32 %v5424_v23, %v2690_v6 }
 0x14f   : > { %v956_v42 = vadd.f32 %v874_v31, %v736_v47  ;;  %v303_v0 = vmul.f32 %v6765_v37, %v2688_v5  ;;  %v2050_v56 = vadd.f32 %v1958_v48, %v1829_v52  ;;  %v6768_v47 = vrot.slane %v6767_v50, 4 }
 0x150   : > { %v1316_v41 = vsel %vm1263_vm3, %v6764_v43, %v6367_v60  ;;  %v5437_v26 = vmul.f32 %v5424_v23, %v2692_v7  ;;  %v6372_v37 = vrot.slane %v5428_v3, 1  ;;  %v6769_v60 = vld [vmem:[#allocation37_spill] sm:$0xff]  ;;  %v6771_v50 = vrot.slane %v5054_v28, 5 }
 0x151   : > { %v1177_v55 = vadd.f32 %v1095_v36, %v956_v42  ;;  %v1536_v31 = vsel %vm1263_vm3, %v6768_v47, %v6368_v27  ;;  %v5443_v2 = vmul.f32 %v2694_v8, %v6769_v60  ;;  %v5447_v48 = vmul.f32 %v2696_v9, %v6769_v60  ;;  %v264_v27 = vld [vmem:[%s2701_s8 + $0x138] sm:$0xff] }
 0x152   : > { %v2090_v36 = vadd.f32 %v5378_v45, %v2050_v56  ;;  %v6770_v42 = vrot.slane %v5409_v12, 5  ;;  %v6375_v43 = vrot.slane %v5437_v26, 2  ;;  %v6772_v23 = vrot.slane %v5072_v10, 1 }
 0x153   : > { %v1398_v52 = vadd.f32 %v1316_v41, %v1177_v55  ;;  %v6374_v17 = vrot.slane %v5443_v2, 2  ;;  %v5466_v41 = vmul.f32 %v2710_v13, %v6769_v60  ;;  %v6776_v60 = vrot.slane %v5088_v25, 2 }
 0x154   : > { %v1757_v47 = vsel %vm1704_vm4, %v6771_v50, %v6770_v42  ;;  %v451_v59 = vsel %vm380_vm0, %v6772_v23, %v6372_v37  ;;  %v2126_v28 = vmax.f32 %v2090_v36, 0.0  ;;  %v6773_v50 = vrot.slane %v5084_v61, 2 }
 0x155   : > { %v1618_v55 = vadd.f32 %v1536_v31, %v1398_v52  ;;  %v524_v42 = vadd.f32 %v451_v59, %v303_v0  ;;  %v6774_v23 = vrot.slane %v5413_v18, 6  ;;  %v6775_v37 = vrot.slane %v5057_v35, 6 }
 0x156   : > { %v672_v10 = vsel %vm601_vm1, %v6773_v50, %v6375_v43  ;;  %v892_v36 = vsel %vm601_vm1, %v6776_v60, %v6374_v17  ;;  %v6373_v59 = vrot.slane %v5466_v41, 4  ;;  %v5485_v0 = vmul.f32 %v2712_v14, %v264_v27  ;;  %2538 = vmatmul.msk.f32.gmra.mxu1 %vm2155_vm6, %v2126_v28 }
 0x157   : > { %v1978_v56 = vsel %vm1925_vm5, %v6775_v37, %v6774_v23  ;;  %v1839_v61 = vadd.f32 %v1757_v47, %v1618_v55  ;;  %v745_v31 = vadd.f32 %v672_v10, %v524_v42  ;;  %v5489_v52 = vmul.f32 %v2714_v15, %v264_v27  ;;  %v5506_v55 = vld [vmem:[%s2701_s8 + $0x40] sm:$0xff] }
 0x158   : > { %v5492_v35 = vmul.f32 %v5320_v40, %v264_v27  ;;  %v6777_v37 = vrot.slane %v5447_v48, 3  ;;  %v6778_v25 = vrot.slane %v5112_v62, 3  ;;  %v6779_v23 = vrot.slane %v5117_v38, 4 }
 0x159   : > { %v6376_v47 = vrot.slane %v5485_v0, 4  ;;  %v5510_v27 = vmul.f32 %v5506_v55, %v2690_v6  ;;  %v2060_v42 = vadd.f32 %v1978_v56, %v1839_v61  ;;  %v965_v10 = vadd.f32 %v892_v36, %v745_v31 }
 0x15a   : > { %v1113_v50 = vsel %vm1042_vm2, %v6778_v25, %v6777_v37  ;;  %v1334_v28 = vsel %vm1263_vm3, %v6779_v23, %v6373_v59  ;;  %v6377_v62 = vrot.slane %v5489_v52, 5  ;;  %v276_v60 = vmul.f32 %v5165_v34, %v2688_v5  ;;  %v6780_v23 = vld [vmem:[#allocation36_spill] sm:$0xff] }
 0x15b   : > { %v6380_v38 = vrot.slane %v5510_v27, 1  ;;  %v5519_v25 = vmul.f32 %v5506_v55, %v2692_v7  ;;  %v5523_v59 = vmul.f32 %v6780_v23, %v2694_v8  ;;  %v2100_v56 = vadd.f32 %v5378_v45, %v2060_v42 }
 0x15c   : > { %v1186_v36 = vadd.f32 %v1113_v50, %v965_v10  ;;  %v6781_v34 = vrot.slane %v5132_v57, 4  ;;  %v6782_v31 = vrot.slane %v5143_v58, 5  ;;  %v6783_v43 = vrot.slane %v5169_v11, 1 }
 0x15d   : > { %v6379_v50 = vrot.slane %v5519_v25, 2  ;;  %v6378_v42 = vrot.slane %v5523_v59, 2  ;;  %v5545_v57 = vmul.f32 %v6780_v23, %v2696_v9  ;;  %v2136_v10 = vmax.f32 %v2100_v56, 0.0 }
 0x15e   : > { %v1554_v61 = vsel %vm1263_vm3, %v6781_v34, %v6376_v47  ;;  %v1775_v17 = vsel %vm1704_vm4, %v6782_v31, %v6377_v62  ;;  %v397_v37 = vsel %vm380_vm0, %v6783_v43, %v6380_v38  ;;  %v1407_v34 = vadd.f32 %v1334_v28, %v1186_v36  ;;  %v2620_v28 = vld [vmem:[%s2701_s8 + $0x60] sm:$0xff] }
 0x15f   : > { %v497_v47 = vadd.f32 %v397_v37, %v276_v60  ;;  %v5549_v58 = vmul.f32 %v6780_v23, %v2710_v13  ;;  %v6784_v11 = vrot.slane %v5173_v21, 2  ;;  %v6785_v31 = vrot.slane %v5177_v16, 2  ;;  %2548 = vmatmul.msk.f32.gmra.mxu2 %vm2155_vm6, %v2136_v10 }
 0x160   : > { %v6383_v56 = vrot.slane %v5545_v57, 3  ;;  %v5564_v60 = vmul.f32 %v2620_v28, %v2712_v14  ;;  %v1627_v37 = vadd.f32 %v1554_v61, %v1407_v34  ;;  %v5569_v36 = vmul.f32 %v2620_v28, %v2714_v15 }
 0x161   : > { %v618_v43 = vsel %vm601_vm1, %v6784_v11, %v6379_v50  ;;  %v838_v62 = vsel %vm601_vm1, %v6785_v31, %v6378_v42  ;;  %v6382_v21 = vrot.slane %v5549_v58, 4  ;;  %v6787_v16 = vrot.slane %v5492_v35, 6  ;;  %v6788_v11 = vld [vmem:[#allocation13_spill] sm:$0xff] }
 0x162   : > { %v718_v23 = vadd.f32 %v618_v43, %v497_v47  ;;  %6786 = vst [vmem:[#allocation32_spill] sm:$0xff] %v5569_v36  ;;  %v6789_v31 = vrot.slane %v6788_v11, 6  ;;  %v6790_v50 = vrot.slane %v5192_v19, 3  ;;  %v6381_v61 = vrot.slane %v5564_v60, 4 }
 0x163   : > { %v5583_v47 = vmul.f32 %v2620_v28, %v5320_v40  ;;  %v1848_v10 = vadd.f32 %v1775_v17, %v1627_v37  ;;  %v6384_v43 = vrot.slane %v5569_v36, 5  ;;  %v285_v11 = vmul.f32 %v5248_v39, %v2688_v5 }
 0x164   : > { %v1996_v42 = vsel %vm1925_vm5, %v6789_v31, %v6787_v16  ;;  %v1059_v38 = vsel %vm1042_vm2, %v6790_v50, %v6383_v56  ;;  %v938_v34 = vadd.f32 %v838_v62, %v718_v23  ;;  %v6791_v16 = vrot.slane %v5205_v22, 4  ;;  %v5599_v31 = vld [vmem:[%s2701_s8 + $0x88] sm:$0xff] }
 0x165   : > { %v6792_v50 = vrot.slane %v5209_v30, 4  ;;  %v5603_v17 = vmul.f32 %v5599_v31, %v2690_v6  ;;  %v5607_v39 = vmul.f32 %v5599_v31, %v2692_v7  ;;  %v2069_v22 = vadd.f32 %v1996_v42, %v1848_v10  ;;  %v6794_v23 = vld [vmem:[#allocation19_spill] sm:$0xff] }
 0x166   : > { %v1280_v19 = vsel %vm1263_vm3, %v6791_v16, %v6382_v21  ;;  %v1159_v62 = vadd.f32 %v1059_v38, %v938_v34  ;;  %v5612_v30 = vmul.f32 %v6794_v23, %v2694_v8  ;;  %v6795_v16 = vrot.slane %v5230_v49, 5 }
 0x167   : > { %v1500_v28 = vsel %vm1263_vm3, %v6792_v50, %v6381_v61  ;;  %6793 = vst [vmem:[#allocation18_spill] sm:$0xff] %v5607_v39  ;;  %v6386_v61 = vrot.slane %v5603_v17, 1  ;;  %v6388_v21 = vrot.slane %v5607_v39, 2  ;;  %v5623_v42 = vmul.f32 %v6794_v23, %v2696_v9 }
 0x168   : > { %v1721_v50 = vsel %vm1704_vm4, %v6795_v16, %v6384_v43  ;;  %v2109_v38 = vadd.f32 %v5378_v45, %v2069_v22  ;;  %v1380_v10 = vadd.f32 %v1280_v19, %v1159_v62  ;;  %v5629_v56 = vmul.f32 %v6794_v23, %v2710_v13  ;;  %v2622_v22 = vld [vmem:[%s2701_s8 + $0xa8] sm:$0xff] }
 0x169   : > { %v6796_v49 = vrot.slane %v5252_v33, 1  ;;  %v6797_v43 = vrot.slane %v5259_v4, 2  ;;  %v5644_v62 = vmul.f32 %v2622_v22, %v2712_v14  ;;  %v6798_v36 = vrot.slane %v5583_v47, 6 }
 0x16a   : > { %v2145_v23 = vmax.f32 %v2109_v38, 0.0  ;;  %v1600_v34 = vadd.f32 %v1500_v28, %v1380_v10  ;;  %v6799_v33 = vrot.slane %v5233_v24, 6  ;;  %v6800_v39 = vrot.slane %v5612_v30, 2 }
 0x16b   : > { %v415_v16 = vsel %vm380_vm0, %v6796_v49, %v6386_v61  ;;  %v636_v37 = vsel %vm601_vm1, %v6797_v43, %v6388_v21  ;;  %v6801_v4 = vrot.slane %v5263_v54, 2  ;;  %v1297_v21 = vrot.slane %v5629_v56, 4 }
 0x16c   : > { %v1942_v49 = vsel %vm1925_vm5, %v6799_v33, %v6798_v36  ;;  %v506_v61 = vadd.f32 %v415_v16, %v285_v11  ;;  %v6391_v19 = vrot.slane %v5644_v62, 4  ;;  %v5659_v38 = vmul.f32 %v2622_v22, %v2714_v15  ;;  %2557 = vmatmul.msk.f32.gmra.mxu3 %vm2155_vm6, %v2145_v23  ;;  %v6804_v33 = vld [vmem:[#allocation14_spill] sm:$0xff] }
 0x16d   : > { %v856_v43 = vsel %vm601_vm1, %v6801_v4, %v6800_v39  ;;  %v1821_v28 = vadd.f32 %v1721_v50, %v1600_v34  ;;  %v5663_v36 = vmul.f32 %v2622_v22, %v5320_v40  ;;  %v295_v11 = vmul.f32 %v5328_v44, %v2688_v5 }
 0x16e   : > { %v727_v24 = vadd.f32 %v636_v37, %v506_v61  ;;  %v6802_v54 = vrot.slane %v5623_v42, 3  ;;  %v6803_v39 = vrot.slane %v5267_v20, 3  ;;  %v6389_v16 = vrot.slane %v5659_v38, 5 }
 0x16f   : > { %v6805_v4 = vrot.slane %v6804_v33, 1  ;;  %v6806_v23 = vrot.slane %v5332_v29, 1  ;;  %v2042_v37 = vadd.f32 %v1942_v49, %v1821_v28  ;;  %v6390_v34 = vrot.slane %v5663_v36, 6  ;;  %v6812_v28 = vld [vmem:[#allocation16_spill] sm:$0xff] }
 0x170   : > { %v1077_v10 = vsel %vm1042_vm2, %v6803_v39, %v6802_v54  ;;  %v947_v50 = vadd.f32 %v856_v43, %v727_v24  ;;  %v6807_v20 = vrot.slane %v5290_v32, 4  ;;  %v6808_v54 = vrot.slane %v5309_v63, 4  ;;  %v6809_v39 = vld [vmem:[#allocation15_spill] sm:$0xff] }
 0x171   : > { %v435_v61 = vsel %vm380_vm0, %v6806_v23, %v6805_v4  ;;  %v6810_v33 = vrot.slane %v6809_v39, 2  ;;  %v6811_v49 = vrot.slane %v5349_v53, 2  ;;  %v6813_v24 = vrot.slane %v6812_v28, 2  ;;  %v6816_v53 = vld [vmem:[#allocation7_spill] sm:$0xff]  ;;  %v6823_v28 = vld [vmem:[#allocation28_spill] sm:$0xff] }
 0x172   : > { %v516_v44 = vadd.f32 %v435_v61, %v295_v11  ;;  %v1298_v22 = vsel %vm1263_vm3, %v6807_v20, %v1297_v21  ;;  %v1518_v29 = vsel %vm1263_vm3, %v6808_v54, %v6391_v19  ;;  %v6814_v11 = vrot.slane %v5358_v1, 2 }
 0x173   : > { %v656_v43 = vsel %vm601_vm1, %v6811_v49, %v6810_v33  ;;  %v2082_v4 = vadd.f32 %v5378_v45, %v2042_v37  ;;  %v1168_v23 = vadd.f32 %v1077_v10, %v947_v50  ;;  %v6815_v63 = vrot.slane %v5314_v46, 5  ;;  %v6818_v33 = vld [vmem:[#allocation17_spill] sm:$0xff]  ;;  %v6821_v10 = vld [vmem:[#allocation20_spill] sm:$0xff] }
 0x174   : > { %v876_v32 = vsel %vm601_vm1, %v6814_v11, %v6813_v24  ;;  %v737_v20 = vadd.f32 %v656_v43, %v516_v44  ;;  %v6817_v54 = vrot.slane %v6816_v53, 6  ;;  %v6819_v1 = vrot.slane %v6818_v33, 3  ;;  %v6825_v11 = vld [vmem:[#allocation21_spill] sm:$0xff] }
 0x175   : > { %v1739_v61 = vsel %vm1704_vm4, %v6815_v63, %v6389_v16  ;;  %v6820_v49 = vrot.slane %v5373_v51, 3  ;;  %v6822_v50 = vrot.slane %v6821_v10, 4  ;;  %v6824_v24 = vrot.slane %v6823_v28, 4  ;;  %v6827_v43 = vld [vmem:[#allocation49_spill] sm:$0xff]  ;;  %v265_v16 = vld [vmem:[%s2701_s8 + $0x140] sm:$0xff]  ;;  %v6829_v51 = vld [vmem:[#allocation24_spill] sm:$0xff] }
 0x176   : > { %v1960_v39 = vsel %vm1925_vm5, %v6817_v54, %v6390_v34  ;;  %v6826_v44 = vrot.slane %v6825_v11, 4  ;;  %v6828_v63 = vrot.slane %v6827_v43, 4  ;;  %v2118_v54 = vmax.f32 %v2082_v4, 0.0  ;;  %v6830_v28 = vld [vmem:[#allocation39_spill] sm:$0xff]  ;;  %v5741_v43 = vpop.f32.mrf.mxu1 }
 0x177   : > { %v1097_v37 = vsel %vm1042_vm2, %v6820_v49, %v6819_v1  ;;  %v1318_v46 = vsel %vm1263_vm3, %v6824_v24, %v6822_v50  ;;  %v1389_v34 = vadd.f32 %v1298_v22, %v1168_v23  ;;  %v957_v33 = vadd.f32 %v876_v32, %v737_v20  ;;  %v2623_v1 = vld [vmem:[%s2701_s8 + $0x120] sm:$0xff] }
 0x178   : > { %v1538_v53 = vsel %vm1263_vm3, %v6828_v63, %v6826_v44  ;;  %v304_v19 = vmul.f32 %v6829_v51, %v2688_v5  ;;  %v342_v49 = vmul.f32 %v2623_v1, %v2690_v6  ;;  %v563_v10 = vmul.f32 %v2623_v1, %v2692_v7  ;;  %2530 = vmatmul.msk.f32.gmra.mxu0 %vm2155_vm6, %v2118_v54  ;;  %v5739_v7 = vpop.f32.mrf.mxu0  ;;  %v5755_v1 = vpop.f32.mrf.mxu3 }
 0x179   : > { %v784_v50 = vmul.f32 %v2694_v8, %v6830_v28  ;;  %v1004_v24 = vmul.f32 %v2696_v9, %v6830_v28  ;;  %v1609_v11 = vadd.f32 %v1518_v29, %v1389_v34  ;;  %v1178_v4 = vadd.f32 %v1097_v37, %v957_v33  ;;  %v6831_v9 = vld [vmem:[#allocation22_spill] sm:$0xff]  ;;  %v6834_v37 = vld [vmem:[#allocation23_spill] sm:$0xff]  ;;  %v5753_v33 = vpop.f32.mrf.mxu2 }
 0x17a   : > { %v1225_v22 = vmul.f32 %v2710_v13, %v6830_v28  ;;  %v1446_v32 = vmul.f32 %v2712_v14, %v265_v16  ;;  %v452_v23 = vrot.slane %v342_v49, 1  ;;  %v673_v20 = vrot.slane %v563_v10, 2 }
 0x17b   : > { %v893_v6 = vrot.slane %v784_v50, 2  ;;  %v1114_v44 = vrot.slane %v1004_v24, 3  ;;  %v1830_v8 = vadd.f32 %v1739_v61, %v1609_v11  ;;  %v1399_v63 = vadd.f32 %v1318_v46, %v1178_v4 }
 0x17c   : > { %v6832_v51 = vrot.slane %v6831_v9, 5  ;;  %v6833_v34 = vrot.slane %v5409_v12, 5  ;;  %v6835_v13 = vrot.slane %v6834_v37, 6  ;;  %v6836_v14 = vrot.slane %v5413_v18, 6 }
 0x17d   : > { %v6837_v49 = vrot.slane %v5428_v3, 1  ;;  %v6838_v46 = vrot.slane %v5437_v26, 2  ;;  %v1335_v10 = vrot.slane %v1225_v22, 4  ;;  %v1555_v28 = vrot.slane %v1446_v32, 4 }
 0x17e   : > { %v1759_v29 = vsel %vm1704_vm4, %v6833_v34, %v6832_v51  ;;  %v1980_v54 = vsel %vm1925_vm5, %v6836_v14, %v6835_v13  ;;  %v2051_v50 = vadd.f32 %v1960_v39, %v1830_v8  ;;  %v1619_v24 = vadd.f32 %v1538_v53, %v1399_v63  ;;  %v6844_v8 = vld [vmem:[#allocation33_spill] sm:$0xff] }
 0x17f   : > { %v453_v61 = vsel %vm380_vm0, %v6837_v49, %v452_v23  ;;  %v674_v12 = vsel %vm601_vm1, %v6838_v46, %v673_v20  ;;  %v6839_v18 = vrot.slane %v5443_v2, 2  ;;  %v6840_v9 = vrot.slane %v5447_v48, 3 }
 0x180   : > { %v525_v11 = vadd.f32 %v453_v61, %v304_v19  ;;  %v1666_v3 = vmul.f32 %v2714_v15, %v265_v16  ;;  %v1887_v23 = vmul.f32 %v5320_v40, %v265_v16  ;;  %v277_v26 = vmul.f32 %v5506_v55, %v2688_v5  ;;  %v6841_v19 = vld [vmem:[#allocation31_spill] sm:$0xff] }
 0x181   : > { %v894_v4 = vsel %vm601_vm1, %v6839_v18, %v893_v6  ;;  %v1115_v51 = vsel %vm1042_vm2, %v6840_v9, %v1114_v44  ;;  %v2091_v22 = vadd.f32 %v5378_v45, %v2051_v50  ;;  %v1840_v39 = vadd.f32 %v1759_v29, %v1619_v24  ;;  %v6847_v29 = vld [vmem:[#allocation35_spill] sm:$0xff]  ;;  %v2284_v50 = vpop.f32.mrf.mxu0  ;;  %v2311_v24 = vpop.f32.mrf.mxu1 }
 0x182   : > { %v746_v53 = vadd.f32 %v674_v12, %v525_v11  ;;  %v6842_v32 = vrot.slane %v6841_v19, 1  ;;  %v6843_v2 = vrot.slane %v5510_v27, 1  ;;  %v1776_v48 = vrot.slane %v1666_v3, 5  ;;  %v2365_v9 = vpop.f32.mrf.mxu3 }
 0x183   : > { %v1997_v6 = vrot.slane %v1887_v23, 6  ;;  %v6845_v15 = vrot.slane %v6844_v8, 2  ;;  %v6846_v40 = vrot.slane %v5519_v25, 2  ;;  %v2127_v55 = vmax.f32 %v2091_v22, 0.0  ;;  %v6857_v23 = vld [vmem:[#allocation40_spill] sm:$0xff] }
 0x184   : > { %v399_v20 = vsel %vm380_vm0, %v6843_v2, %v6842_v32  ;;  %v2061_v63 = vadd.f32 %v1980_v54, %v1840_v39  ;;  %v966_v34 = vadd.f32 %v894_v4, %v746_v53  ;;  %v6848_v37 = vrot.slane %v6847_v29, 2  ;;  %v2338_v4 = vpop.f32.mrf.mxu2  ;;  %v5823_v32 = vld [vmem:[%s6007_s4] ss:$0 sm:$0xff]  ;;  %v6866_v8 = vld [vmem:[#allocation4_spill] sm:$0xff] }
 0x185   : > { %v498_v44 = vadd.f32 %v399_v20, %v277_v26  ;;  %v620_v16 = vsel %vm601_vm1, %v6846_v40, %v6845_v15  ;;  %v6849_v13 = vrot.slane %v5523_v59, 2  ;;  %v6850_v14 = vrot.slane %v5466_v41, 4  ;;  %2539 = vmatmul.msk.f32.gmra.mxu1 %vm2155_vm6, %v2127_v55  ;;  %v6868_v15 = vld [vmem:[#allocation18_spill] sm:$0xff] }
 0x186   : > { %v6851_v61 = vrot.slane %v5485_v0, 4  ;;  %v6852_v25 = vrot.slane %v5489_v52, 5  ;;  %v2101_v59 = vadd.f32 %v5378_v45, %v2061_v63  ;;  %v1187_v11 = vadd.f32 %v1115_v51, %v966_v34  ;;  %v6854_v0 = vld [vmem:[#allocation38_spill] sm:$0xff]  ;;  %v6860_v51 = vld [vmem:[#allocation41_spill] sm:$0xff]  ;;  %v6872_v63 = vld [vmem:[#allocation32_spill] sm:$0xff] }
 0x187   : > { %v840_v27 = vsel %vm601_vm1, %v6849_v13, %v6848_v37  ;;  %v1336_v49 = vsel %vm1263_vm3, %v6850_v14, %v1335_v10  ;;  %v719_v54 = vadd.f32 %v620_v16, %v498_v44  ;;  %v6853_v41 = vrot.slane %v5492_v35, 6  ;;  %v6874_v37 = vld [vmem:[#allocation45_spill] sm:$0xff] }
 0x188   : > { %v1556_v46 = vsel %vm1263_vm3, %v6851_v61, %v1555_v28  ;;  %v1777_v12 = vsel %vm1704_vm4, %v6852_v25, %v1776_v48  ;;  %v6855_v18 = vrot.slane %v6854_v0, 3  ;;  %v6856_v28 = vrot.slane %v5545_v57, 3  ;;  %v6863_v48 = vld [vmem:[#allocation3_spill] sm:$0xff]  ;;  %v6877_v61 = vld [vmem:[#allocation5_spill] sm:$0xff] }
 0x189   : > { %v1998_v10 = vsel %vm1925_vm5, %v6853_v41, %v1997_v6  ;;  %v939_v3 = vadd.f32 %v840_v27, %v719_v54  ;;  %v6858_v26 = vrot.slane %v6857_v23, 4  ;;  %v6859_v22 = vrot.slane %v5549_v58, 4  ;;  %v6885_v23 = vld [vmem:[#allocation10_spill] sm:$0xff] }
 0x18a   : > { %v1061_v52 = vsel %vm1042_vm2, %v6856_v28, %v6855_v18  ;;  %v6861_v53 = vrot.slane %v6860_v51, 4  ;;  %v6862_v35 = vrot.slane %v5564_v60, 4  ;;  %v286_v57 = vmul.f32 %v5599_v31, %v2688_v5  ;;  %v6870_v31 = vld [vmem:[#allocation43_spill] sm:$0xff]  ;;  %v6883_v28 = vld [vmem:[#allocation9_spill] sm:$0xff] }
 0x18b   : > { %v1282_v39 = vsel %vm1263_vm3, %v6859_v22, %v6858_v26  ;;  %v2137_v2 = vmax.f32 %v2101_v59, 0.0  ;;  %v1408_v20 = vadd.f32 %v1336_v49, %v1187_v11  ;;  %v6864_v58 = vrot.slane %v6863_v48, 1  ;;  %v6880_v11 = vld [vmem:[#allocation6_spill] sm:$0xff] }
 0x18c   : > { %v1502_v19 = vsel %vm1263_vm3, %v6862_v35, %v6861_v53  ;;  %v6865_v6 = vrot.slane %v5603_v17, 1  ;;  %v6867_v60 = vrot.slane %v6866_v8, 2  ;;  %v6869_v40 = vrot.slane %v6868_v15, 2 }
 0x18d   : > { %v1160_v5 = vadd.f32 %v1061_v52, %v939_v3  ;;  %v6871_v55 = vrot.slane %v6870_v31, 5  ;;  %v6873_v34 = vrot.slane %v6872_v63, 5  ;;  %v6875_v13 = vrot.slane %v6874_v37, 6  ;;  %2549 = vmatmul.msk.f32.gmra.mxu2 %vm2155_vm6, %v2137_v2  ;;  %v6888_v31 = vld [vmem:[#allocation11_spill] sm:$0xff] }
 0x18e   : > { %v417_v44 = vsel %vm380_vm0, %v6865_v6, %v6864_v58  ;;  %v638_v16 = vsel %vm601_vm1, %v6869_v40, %v6867_v60  ;;  %v6876_v17 = vrot.slane %v5583_v47, 6  ;;  %v1628_v49 = vadd.f32 %v1556_v46, %v1408_v20  ;;  %v2341_v58 = vpop.f32.mrf.mxu2  ;;  %v2368_v6 = vpop.f32.mrf.mxu3 }
 0x18f   : > { %v1723_v29 = vsel %vm1704_vm4, %v6873_v34, %v6871_v55  ;;  %v507_v14 = vadd.f32 %v417_v44, %v286_v57  ;;  %v6878_v25 = vrot.slane %v6877_v61, 2  ;;  %v6879_v54 = vrot.slane %v5612_v30, 2  ;;  %v2314_v57 = vpop.f32.mrf.mxu1 }
 0x190   : > { %v1944_v27 = vsel %vm1925_vm5, %v6876_v17, %v6875_v13  ;;  %v6881_v41 = vrot.slane %v6880_v11, 3  ;;  %v6882_v0 = vrot.slane %v5623_v42, 3  ;;  %v6884_v47 = vrot.slane %v6883_v28, 4 }
 0x191   : > { %v858_v59 = vsel %vm601_vm1, %v6879_v54, %v6878_v25  ;;  %v1381_v3 = vadd.f32 %v1282_v39, %v1160_v5  ;;  %v728_v46 = vadd.f32 %v638_v16, %v507_v14  ;;  %v6886_v26 = vrot.slane %v6885_v23, 4 }
 0x192   : > { %v1079_v18 = vsel %vm1042_vm2, %v6882_v0, %v6881_v41  ;;  %v1300_v52 = vsel %vm1263_vm3, %v1297_v21, %v6884_v47  ;;  %v6887_v30 = vrot.slane %v5644_v62, 4  ;;  %v2282_v51 = vadd.f32 %v5823_v32, %v5739_v7 }
 0x193   : > { %v1849_v42 = vadd.f32 %v1777_v12, %v1628_v49  ;;  %v2309_v56 = vadd.f32 %v5823_v32, %v5741_v43  ;;  %v2336_v21 = vadd.f32 %v5823_v32, %v5753_v33  ;;  %v2363_v62 = vadd.f32 %v5823_v32, %v5755_v1  ;;  %v2287_v12 = vpop.f32.mrf.mxu0 }
 0x194   : > { %v1520_v22 = vsel %vm1263_vm3, %v6887_v30, %v6886_v26  ;;  %v1601_v39 = vadd.f32 %v1502_v19, %v1381_v3  ;;  %v948_v53 = vadd.f32 %v858_v59, %v728_v46  ;;  %v2389_v35 = vmax.f32 %v2282_v51, 0.0 }
 0x195   : > { %v2285_v7 = vadd.f32 %v5823_v32, %v2284_v50  ;;  %v2070_v2 = vadd.f32 %v1998_v10, %v1849_v42  ;;  %v2398_v20 = vmax.f32 %v2309_v56, 0.0  ;;  %v2407_v48 = vmax.f32 %v2336_v21, 0.0 }
 0x196   : > { %v2416_v43 = vmax.f32 %v2363_v62, 0.0  ;;  %v1822_v33 = vadd.f32 %v1723_v29, %v1601_v39  ;;  %v1169_v44 = vadd.f32 %v1079_v18, %v948_v53  ;;  %2425 = vst.msk [vmem:[%s5872_s27] sm:$0xff] %vm2155_vm6, %v2389_v35  ;;  %v2312_v19 = vadd.f32 %v5823_v32, %v2311_v24  ;;  %v2344_v47 = vpop.f32.mrf.mxu2 }
 0x197   : > { %v2390_v1 = vmax.f32 %v2285_v7, 0.0  ;;  %v2110_v8 = vadd.f32 %v5378_v45, %v2070_v2  ;;  %2434 = vst.msk [vmem:[%s5872_s27 + $0x48] sm:$0xff] %vm2155_vm6, %v2398_v20  ;;  %v2339_v50 = vadd.f32 %v5823_v32, %v2338_v4  ;;  %v2366_v10 = vadd.f32 %v5823_v32, %v2365_v9  ;;  %v2317_v0 = vpop.f32.mrf.mxu1 }
 0x198   : > { %v2288_v60 = vadd.f32 %v5823_v32, %v2287_v12  ;;  %v2043_v15 = vadd.f32 %v1944_v27, %v1822_v33  ;;  %v1390_v40 = vadd.f32 %v1300_v52, %v1169_v44  ;;  %2443 = vst.msk [vmem:[%s5872_s27 + $0x90] sm:$0xff] %vm2155_vm6, %v2407_v48  ;;  %v2399_v16 = vmax.f32 %v2312_v19, 0.0  ;;  %v6891_v27 = vld [vmem:[#allocation12_spill] sm:$0xff]  ;;  %v2371_v52 = vpop.f32.mrf.mxu3 }
 0x199   : > { %v2315_v5 = vadd.f32 %v5823_v32, %v2314_v57  ;;  %v2146_v24 = vmax.f32 %v2110_v8, 0.0  ;;  %v6889_v55 = vrot.slane %v6888_v31, 5  ;;  %v6890_v63 = vrot.slane %v5659_v38, 5  ;;  %2452 = vst.msk [vmem:[%s5872_s27 + $0xd8] sm:$0xff] %vm2155_vm6, %v2416_v43 }
 0x19a   : > { %v2408_v4 = vmax.f32 %v2339_v50, 0.0  ;;  %v2417_v9 = vmax.f32 %v2366_v10, 0.0  ;;  %v2083_v29 = vadd.f32 %v5378_v45, %v2043_v15  ;;  %v1610_v37 = vadd.f32 %v1520_v22, %v1390_v40  ;;  %2426 = vst.msk [vmem:[%s5872_s27 + $0x8] sm:$0xff] %vm2155_vm6, %v2390_v1 }
 0x19b   : > { %v1741_v34 = vsel %vm1704_vm4, %v6890_v63, %v6889_v55  ;;  %v2391_v13 = vmax.f32 %v2288_v60, 0.0  ;;  %v2342_v17 = vadd.f32 %v5823_v32, %v2341_v58  ;;  %2558 = vmatmul.msk.f32.gmra.mxu3 %vm2155_vm6, %v2146_v24  ;;  %v6892_v38 = vrot.slane %v6891_v27, 6  ;;  %2435 = vst.msk [vmem:[%s5872_s27 + $0x50] sm:$0xff] %vm2155_vm6, %v2399_v16  ;;  %v2290_v41 = vpop.f32.mrf.mxu0 }
 0x19c   : > { %v6893_v14 = vrot.slane %v5663_v36, 6  ;;  %v2400_v61 = vmax.f32 %v2315_v5, 0.0  ;;  %v2369_v25 = vadd.f32 %v5823_v32, %v2368_v6  ;;  %v2119_v54 = vmax.f32 %v2083_v29, 0.0  ;;  %2444 = vst.msk [vmem:[%s5872_s27 + $0x98] sm:$0xff] %vm2155_vm6, %v2408_v4 }
 0x19d   : > { %v1831_v59 = vadd.f32 %v1741_v34, %v1610_v37  ;;  %v2409_v11 = vmax.f32 %v2342_v17, 0.0  ;;  %2453 = vst.msk [vmem:[%s5872_s27 + $0xe0] sm:$0xff] %vm2155_vm6, %v2417_v9  ;;  %v2291_v18 = vadd.f32 %v5823_v32, %v2290_v41  ;;  %v2318_v28 = vadd.f32 %v5823_v32, %v2317_v0 }
 0x19e   : > { %v1962_v49 = vsel %vm1925_vm5, %v6893_v14, %v6892_v38  ;;  %v2418_v36 = vmax.f32 %v2369_v25, 0.0  ;;  %2531 = vmatmul.msk.f32.gmra.mxu0 %vm2155_vm6, %v2119_v54  ;;  %2427 = vst.msk [vmem:[%s5872_s27 + $0x10] sm:$0xff] %vm2155_vm6, %v2391_v13  ;;  %v2345_v46 = vadd.f32 %v5823_v32, %v2344_v47  ;;  %v2372_v23 = vadd.f32 %v5823_v32, %v2371_v52  ;;  %v2347_v53 = vpop.f32.mrf.mxu2 }
 0x19f   : > { %v2052_v3 = vadd.f32 %v1962_v49, %v1831_v59  ;;  %2436 = vst.msk [vmem:[%s5872_s27 + $0x58] sm:$0xff] %vm2155_vm6, %v2400_v61  ;;  %v2392_v26 = vmax.f32 %v2291_v18, 0.0  ;;  %v2401_v30 = vmax.f32 %v2318_v28, 0.0  ;;  %v2348_v7 = vadd.f32 %v5823_v32, %v2347_v53 }
 0x1a0   : > { %2445 = vst.msk [vmem:[%s5872_s27 + $0xa0] sm:$0xff] %vm2155_vm6, %v2409_v11  ;;  %v2410_v51 = vmax.f32 %v2345_v46, 0.0  ;;  %v2419_v42 = vmax.f32 %v2372_v23, 0.0  ;;  %v2374_v35 = vpop.f32.mrf.mxu3 }
 0x1a1   : > { %v2092_v22 = vadd.f32 %v5378_v45, %v2052_v3  ;;  %2454 = vst.msk [vmem:[%s5872_s27 + $0xe8] sm:$0xff] %vm2155_vm6, %v2418_v36  ;;  %v2320_v45 = vpop.f32.mrf.mxu1  ;;  %v2375_v12 = vadd.f32 %v5823_v32, %v2374_v35  ;;  %v2411_v20 = vmax.f32 %v2348_v7, 0.0 }
 0x1a2   : > { %2428 = vst.msk [vmem:[%s5872_s27 + $0x18] sm:$0xff] %vm2155_vm6, %v2392_v26  ;;  %v2321_v39 = vadd.f32 %v5823_v32, %v2320_v45 }
 0x1a3   : > { %v2128_v56 = vmax.f32 %v2092_v22, 0.0  ;;  %2437 = vst.msk [vmem:[%s5872_s27 + $0x60] sm:$0xff] %vm2155_vm6, %v2401_v30  ;;  %v2293_v21 = vpop.f32.mrf.mxu0  ;;  %v2420_v48 = vmax.f32 %v2375_v12, 0.0 }
 0x1a4   : > { %2446 = vst.msk [vmem:[%s5872_s27 + $0xa8] sm:$0xff] %vm2155_vm6, %v2410_v51  ;;  %v2294_v62 = vadd.f32 %v5823_v32, %v2293_v21  ;;  %v2402_v2 = vmax.f32 %v2321_v39, 0.0 }
 0x1a5   : > { %2540 = vmatmul.msk.f32.gmra.mxu1 %vm2155_vm6, %v2128_v56  ;;  %2455 = vst.msk [vmem:[%s5872_s27 + $0xf0] sm:$0xff] %vm2155_vm6, %v2419_v42 }
 0x1a6   : > { %v2393_v57 = vmax.f32 %v2294_v62, 0.0  ;;  %2438 = vst.msk [vmem:[%s5872_s27 + $0x68] sm:$0xff] %vm2155_vm6, %v2402_v2  ;;  %v2350_v43 = vpop.f32.mrf.mxu2 }
 0x1a7   : > { %2447 = vst.msk [vmem:[%s5872_s27 + $0xb0] sm:$0xff] %vm2155_vm6, %v2411_v20  ;;  %v2351_v58 = vadd.f32 %v5823_v32, %v2350_v43 }
 0x1a8   : > { %2429 = vst.msk [vmem:[%s5872_s27 + $0x20] sm:$0xff] %vm2155_vm6, %v2393_v57  ;;  %v2377_v33 = vpop.f32.mrf.mxu3 }
 0x1a9   : > { %2456 = vst.msk [vmem:[%s5872_s27 + $0xf8] sm:$0xff] %vm2155_vm6, %v2420_v48  ;;  %v2412_v6 = vmax.f32 %v2351_v58, 0.0  ;;  %v2378_v44 = vadd.f32 %v5823_v32, %v2377_v33 }
 0x1aa   : > { %v2323_v10 = vpop.f32.mrf.mxu1 }
 0x1ab   : > { %2448 = vst.msk [vmem:[%s5872_s27 + $0xb8] sm:$0xff] %vm2155_vm6, %v2412_v6  ;;  %v2296_v1 = vpop.f32.mrf.mxu0  ;;  %v2421_v8 = vmax.f32 %v2378_v44, 0.0  ;;  %v2324_v60 = vadd.f32 %v5823_v32, %v2323_v10 }
 0x1ac   : > { %v2297_v19 = vadd.f32 %v5823_v32, %v2296_v1 }
 0x1ad   : > { %2457 = vst.msk [vmem:[%s5872_s27 + $0x100] sm:$0xff] %vm2155_vm6, %v2421_v8  ;;  %v2403_v15 = vmax.f32 %v2324_v60, 0.0 }
 0x1ae   : > { %v2394_v50 = vmax.f32 %v2297_v19, 0.0 }
 0x1af   : > { %2439 = vst.msk [vmem:[%s5872_s27 + $0x70] sm:$0xff] %vm2155_vm6, %v2403_v15 }
 0x1b0   : > { %2430 = vst.msk [vmem:[%s5872_s27 + $0x28] sm:$0xff] %vm2155_vm6, %v2394_v50 }
 0x1b9   : > { %v2353_v40 = vpop.f32.mrf.mxu2 }
 0x1ba   : > { %v2354_v16 = vadd.f32 %v5823_v32, %v2353_v40 }
 0x1bc   : > { %v2413_v5 = vmax.f32 %v2354_v16, 0.0 }
 0x1be   : > { %2449 = vst.msk [vmem:[%s5872_s27 + $0xc0] sm:$0xff] %vm2155_vm6, %v2413_v5 }
 0x1c3   : > { %v2380_v24 = vpop.f32.mrf.mxu3 }
 0x1c4   : > { %v2381_v31 = vadd.f32 %v5823_v32, %v2380_v24 }
 0x1c6   : > { %v2422_v55 = vmax.f32 %v2381_v31, 0.0 }
 0x1c8   : > { %2458 = vst.msk [vmem:[%s5872_s27 + $0x108] sm:$0xff] %vm2155_vm6, %v2422_v55 }
 0x1ca   : > { %v2299_v63 = vpop.f32.mrf.mxu0 }
 0x1cb   : > { %v2300_v34 = vadd.f32 %v5823_v32, %v2299_v63 }
 0x1cd   : > { %v2395_v4 = vmax.f32 %v2300_v34, 0.0 }
 0x1cf   : > { %2431 = vst.msk [vmem:[%s5872_s27 + $0x30] sm:$0xff] %vm2155_vm6, %v2395_v4 }
 0x1d3   : > { %v2326_v9 = vpop.f32.mrf.mxu1 }
 0x1d4   : > { %v2327_v29 = vadd.f32 %v5823_v32, %v2326_v9 }
 0x1d6   : > { %v2404_v37 = vmax.f32 %v2327_v29, 0.0 }
 0x1d8   : > { %2440 = vst.msk [vmem:[%s5872_s27 + $0x78] sm:$0xff] %vm2155_vm6, %v2404_v37 }
 0x1e2   : > { %v2356_v13 = vpop.f32.mrf.mxu2 }
 0x1e3   : > { %v2357_v17 = vadd.f32 %v5823_v32, %v2356_v13 }
 0x1e5   : > { %v2414_v27 = vmax.f32 %v2357_v17, 0.0 }
 0x1e7   : > { %2450 = vst.msk [vmem:[%s5872_s27 + $0xc8] sm:$0xff] %vm2155_vm6, %v2414_v27 }
 0x1ef   : > { %v2383_v38 = vpop.f32.mrf.mxu3 }
 0x1f0   : > { %v2384_v14 = vadd.f32 %v5823_v32, %v2383_v38 }
 0x1f2   : > { %v2423_v25 = vmax.f32 %v2384_v14, 0.0 }
 0x1f4   : > { %2459 = vst.msk [vmem:[%s5872_s27 + $0x110] sm:$0xff] %vm2155_vm6, %v2423_v25 }
 0x1f5   : > { %v2302_v49 = vpop.f32.mrf.mxu0 }
 0x1f6   : > { %v2303_v61 = vadd.f32 %v5823_v32, %v2302_v49 }
 0x1f8   : > { %v2396_v54 = vmax.f32 %v2303_v61, 0.0 }
 0x1fa   : > { %2432 = vst.msk [vmem:[%s5872_s27 + $0x38] sm:$0xff] %vm2155_vm6, %v2396_v54 }
 0x202   : > { %v2329_v59 = vpop.f32.mrf.mxu1 }
 0x203   : > { %v2330_v11 = vadd.f32 %v5823_v32, %v2329_v59 }
 0x205   : > { %v2405_v41 = vmax.f32 %v2330_v11, 0.0 }
 0x207   : > { %2441 = vst.msk [vmem:[%s5872_s27 + $0x80] sm:$0xff] %vm2155_vm6, %v2405_v41 }
 0x210   : > { %v2359_v0 = vpop.f32.mrf.mxu2 }
 0x211   : > { %v2360_v36 = vadd.f32 %v5823_v32, %v2359_v0 }
 0x213   : > { %v2415_v18 = vmax.f32 %v2360_v36, 0.0 }
 0x215   : > { %2451 = vst.msk [vmem:[%s5872_s27 + $0xd0] sm:$0xff] %vm2155_vm6, %v2415_v18 }
 0x21b   : > { %v2305_v28 = vpop.f32.mrf.mxu0 }
 0x21c   : > { %v2306_v47 = vadd.f32 %v5823_v32, %v2305_v28 }
 0x21e   : > { %v2397_v52 = vmax.f32 %v2306_v47, 0.0  ;;  %v2386_v3 = vpop.f32.mrf.mxu3 }
 0x21f   : > { %v2387_v46 = vadd.f32 %v5823_v32, %v2386_v3 }
 0x220   : > { %2433 = vst.msk [vmem:[%s5872_s27 + $0x40] sm:$0xff] %vm2155_vm6, %v2397_v52 }
 0x221   : > { %v2424_v26 = vmax.f32 %v2387_v46, 0.0 }
 0x222   : > { %v2332_v23 = vpop.f32.mrf.mxu1 }
 0x223   : > { %v2333_v30 = vadd.f32 %v5823_v32, %v2332_v23  ;;  %2460 = vst.msk [vmem:[%s5872_s27 + $0x118] sm:$0xff] %vm2155_vm6, %v2424_v26 }
 0x225   : > { %v2406_v22 = vmax.f32 %v2333_v30, 0.0 }
 0x227   : > { %2442 = vst.msk [vmem:[%s5872_s27 + $0x88] sm:$0xff] %vm2155_vm6, %v2406_v22 }
 0x228 PF: > { %s15_s18 = sadd.s32 1, %s2630_s18  }
 0x229   : > { %p12_p4 = scmp.ge.s32.totalorder %s15_s18, 4  }
 0x22b   :  { %14 = sbr.rel (!%p12_p4) target bundleno = 1 (0x1), region = 70 }

</bundles_post_ra>
